<compile_context>
chip_gen: v5e
topology: v5e:2x2
jax: 0.10.0
libtpu: 0.0.40
codegen_flags: <defaults>
</compile_context>

<pallas_src>
import functools

import jax
import jax.numpy as jnp
from jax.experimental import pallas as pl
from jax.experimental.pallas import tpu as pltpu


# ----------------------------------------------------------------------------
# Pallas kernel: both directions of one GRU layer (PyTorch gate order r, z, n).
# Grid is (direction, time_chunk); direction is "parallel" (one direction per
# TensorCore on multi-core parts), time is "arbitrary" (sequential recurrence,
# hidden state carried in VMEM scratch).
# ----------------------------------------------------------------------------
def _bidir_gru_kernel(gi_ref, w_hh_ref, b_hn_ref, h0_ref, lens_ref,
                      out_ref, h_ref):
    # gi_ref:   (1, TT, 3, B, H) bf16  precomputed x @ W_ih^T + b_ih (+ b_hh r,z)
    # w_hh_ref: (1, 3, H, H)     bf16  per-gate hidden->gate weights (pre-T)
    # b_hn_ref: (1, 1, H)        f32   hidden bias of the n gate
    # h0_ref:   (1, B, H)        f32   initial hidden state for this direction
    # lens_ref: (B, 1)           i32   valid lengths (resident, no per-step DMA)
    # out_ref:  (1, TT, B, H)          per-timestep hidden outputs (0 when pad)
    # h_ref:    (B, H)           f32   carried hidden state (VMEM scratch)
    d = pl.program_id(0)
    c = pl.program_id(1)
    num_chunks = pl.num_programs(1)
    tt = gi_ref.shape[1]
    bdim, hdim = h_ref.shape

    @pl.when(c == 0)
    def _():
        h_ref[...] = h0_ref[0]

    # Loop-invariant values: loaded/built once per chunk (not per step).
    w_r = w_hh_ref[0, 0]                                     # (H, H) bf16
    w_z = w_hh_ref[0, 1]
    w_n = w_hh_ref[0, 2]
    b_hn = jnp.broadcast_to(b_hn_ref[0], (bdim, hdim))       # (B, H) f32, hoisted
    lens = lens_ref[...]                                     # (B, 1) int32

    gi_view = gi_ref.at[0]                                   # (TT, 3, B, H) view
    out_view = out_ref.at[0]                                 # (TT, B, H)    view

    # Global time index of row 0 of the chunk currently resident in VMEM
    # (index_map hands backward chunks in reverse order).
    tbase = jnp.where(d == 0, c, num_chunks - 1 - c) * tt

    def step(i, carry):
        # Forward walks rows 0..tt-1, backward walks tt-1..0 — one shared body.
        row = jnp.where(d == 0, i, tt - 1 - i)
        gi = gi_view[row].astype(jnp.float32)                # (3, B, H)
        h_prev = h_ref[...]                                  # (B, H) f32
        hb = h_prev.astype(w_r.dtype)
        gh_r = jnp.dot(hb, w_r, preferred_element_type=jnp.float32)
        gh_z = jnp.dot(hb, w_z, preferred_element_type=jnp.float32)
        gh_n = jnp.dot(hb, w_n, preferred_element_type=jnp.float32)
        r = jax.nn.sigmoid(gi[0] + gh_r)
        z = jax.nn.sigmoid(gi[1] + gh_z)
        n = jnp.tanh(gi[2] + r * (gh_n + b_hn))
        h_new = (1.0 - z) * n + z * h_prev
        # Packed-sequence semantics: state only advances on valid steps,
        # outputs at padded steps are exactly zero.
        valid = lens > (tbase + row)                         # (B, 1) bool
        h_ref[...] = jnp.where(valid, h_new, h_prev)
        out_view[row] = jnp.where(valid, h_new, 0.0).astype(out_ref.dtype)
        return carry

    jax.lax.fori_loop(0, tt, step, 0, unroll=True)


def bidirectional_gru_layer(gi, w_hh, b_hn, h0, lens, *, tt, out_dtype):
    """One fused bidirectional GRU layer.

    gi:   (2, T, 3, B, H) bf16  precomputed input gates (dir, time, gate, b, h)
    w_hh: (2, 3, H, H)    bf16  per-gate hidden weights per direction
    b_hn: (2, 1, H)       f32   n-gate hidden bias per direction
    h0:   (2, B, H)       f32   initial hidden state per direction
    lens: (B, 1)          i32   valid lengths
    Returns (2, T, B, H) `out_dtype` per-direction outputs (zero past length).
    """
    _, T, _, B, H = gi.shape
    assert T % tt == 0
    num_chunks = T // tt

    def t_chunk(d, c):
        # forward walks chunks 0..C-1, backward walks C-1..0
        return (1 - d) * c + d * (num_chunks - 1 - c)

    gi_map = lambda d, c: (d, t_chunk(d, c), 0, 0, 0)
    out_map = lambda d, c: (d, t_chunk(d, c), 0, 0)
    per_dir3 = lambda d, c: (d, 0, 0)
    per_dir4 = lambda d, c: (d, 0, 0, 0)

    # Explicit scoped-VMEM budget: double-buffered streaming blocks + resident
    # per-direction parameters + scratch, with headroom; capped so the request
    # stays inside v7x's 64 MiB per-TensorCore VMEM.
    out_isz = jnp.dtype(out_dtype).itemsize
    block_bytes = (
        2 * (tt * 3 * B * H * 2)            # gi blocks (bf16), double-buffered
        + 2 * (tt * B * H * out_isz)        # out blocks, double-buffered
        + 2 * (3 * H * H * 2 + H * 4 + B * H * 4)  # w_hh, b_hn, h0 per dir
        + B * 4                             # lens
        + B * H * 4                         # h scratch
    )
    vmem_limit = int(min(max(4 * block_bytes, 16 * 1024 * 1024),
                         64 * 1024 * 1024))

    return pl.pallas_call(
        _bidir_gru_kernel,
        out_shape=jax.ShapeDtypeStruct((2, T, B, H), out_dtype),
        grid_spec=pltpu.PrefetchScalarGridSpec(
            num_scalar_prefetch=0,
            grid=(2, num_chunks),
            in_specs=[
                pl.BlockSpec((1, tt, 3, B, H), gi_map),       # gi chunk (bf16)
                pl.BlockSpec((1, 3, H, H), per_dir4),         # W_hh per gate
                pl.BlockSpec((1, 1, H), per_dir3),            # b_hh (n gate)
                pl.BlockSpec((1, B, H), per_dir3),            # h0
                pl.BlockSpec((B, 1), lambda d, c: (0, 0)),    # lengths (resident)
            ],
            out_specs=pl.BlockSpec((1, tt, B, H), out_map),
            scratch_shapes=[pltpu.VMEM((B, H), jnp.float32)],
        ),
        compiler_params=pltpu.CompilerParams(
            dimension_semantics=("parallel", "arbitrary"),
            vmem_limit_bytes=vmem_limit),
    )(gi, w_hh, b_hn, h0, lens)


# ----------------------------------------------------------------------------
# Hoisted input projection: one big MXU-friendly matmul for all timesteps and
# both directions (bf16 inputs, f32 accumulation), emitted gate-major and
# stored bf16 (it is the dominant HBM stream of the recurrent kernel).
# ----------------------------------------------------------------------------
def _input_projection(x, w_ih_bf16, gate_bias):
    # x: (B, T, H) for layer 0, or (E=2, T, B, H) stacked directions of the
    #    previous layer (== the [fwd; bwd] feature concatenation, never
    #    materialized as 2H).
    # w_ih_bf16: (2, in_size, 3, H); gate_bias: (2, 3, H)  (b_ih with
    #    b_hh_{r,z} pre-folded; b_hh_n stays in the recurrent kernel).
    if x.ndim == 3:
        gi = jnp.einsum("bth,dhgk->dtgbk", x.astype(jnp.bfloat16), w_ih_bf16,
                        preferred_element_type=jnp.float32)
    else:
        e, _, _, h = x.shape
        w = w_ih_bf16.reshape(2, e, h, 3, w_ih_bf16.shape[-1])
        gi = jnp.einsum("etbh,dehgk->dtgbk", x.astype(jnp.bfloat16), w,
                        preferred_element_type=jnp.float32)
    gi = gi + gate_bias[:, None, :, None, :]
    return gi.astype(jnp.bfloat16)                       # (2, T, 3, B, H)


# ----------------------------------------------------------------------------
# Masked BatchNorm1d (training mode, biased variance) over valid tokens only,
# matching apply_bn() which concatenates valid timesteps before BN.
# Operates on the stacked (2, T, B, H) activation (f32 math from bf16 input).
# ----------------------------------------------------------------------------
def _masked_batchnorm(x, mask_tb1, gamma, beta, eps=1e-5):
    x = x.astype(jnp.float32)
    H = x.shape[-1]
    g = gamma.reshape(2, 1, 1, H)
    b = beta.reshape(2, 1, 1, H)
    m = mask_tb1[None]                                     # (1, T, B, 1)
    n = jnp.maximum(jnp.sum(mask_tb1), 1.0)                # guard all-pad batch
    mean = jnp.sum(x * m, axis=(1, 2), keepdims=True) / n
    var = jnp.sum(jnp.square(x - mean) * m, axis=(1, 2), keepdims=True) / n
    y = (x - mean) * jax.lax.rsqrt(var + eps) * g + b
    return y * m                                           # keep pads at zero


# ----------------------------------------------------------------------------
# Full EncoderRNN forward.
# ----------------------------------------------------------------------------
@functools.partial(jax.jit, static_argnames=("use_bn", "tt"))
def encoder_rnn_forward(params, token_ids, use_bn, tt=8):
    B0, T0 = token_ids.shape
    H = params["embed"].shape[1]
    num_layers = len(params["layers"])

    # xlens = xs.gt(0).sum(dim=-1)
    xlens = jnp.sum((token_ids > 0).astype(jnp.int32), axis=-1)            # [B0]

    # Pad batch to a multiple of 8 sublanes and time to a multiple of tt;
    # padded rows get length 0 so they are fully masked everywhere.
    B = max(8, -(-B0 // 8) * 8)
    T = -(-T0 // tt) * tt
    ids = jnp.zeros((B, T), token_ids.dtype).at[:B0, :T0].set(token_ids)
    lens = jnp.zeros((B,), jnp.int32).at[:B0].set(xlens)
    lens_b1 = lens[:, None]                                                # (B,1)

    # Validity mask standing in for pack_padded_sequence (used only by BN).
    mask = (jnp.arange(T)[:, None] < lens[None, :]).astype(jnp.float32)[..., None]

    # Embedding lookup (glue).
    x = params["embed"][ids].astype(jnp.float32)                           # (B,T,H)

    for i, lp in enumerate(params["layers"]):
        if use_bn and i > 0:
            bn = params["bn"][i - 1]
            x = _masked_batchnorm(x, mask, bn["gamma"], bn["beta"])

        # (2, in, 3H) -> gate-major (2, in, 3, H), bf16 for the MXU.
        w_ih = jnp.stack([lp["w_ih_f"], lp["w_ih_b"]])
        w_ih = w_ih.reshape(2, -1, 3, H).astype(jnp.bfloat16)
        # (2, H, 3H) -> per-gate (2, 3, H, H), bf16.
        w_hh = jnp.stack([lp["w_hh_f"], lp["w_hh_b"]])
        w_hh = w_hh.reshape(2, H, 3, H).transpose(0, 2, 1, 3).astype(jnp.bfloat16)

        b_ih = jnp.stack([lp["b_ih_f"], lp["b_ih_b"]])[:, 0, :]            # (2,3H)
        b_hh = jnp.stack([lp["b_hh_f"], lp["b_hh_b"]])[:, 0, :]            # (2,3H)
        # Fold b_ih and the r/z parts of b_hh into the precomputed gates;
        # b_hh_n stays separate (it sits inside r * (...)).
        gate_bias = b_ih.at[:, :2 * H].add(b_hh[:, :2 * H]).reshape(2, 3, H)
        b_hn = b_hh[:, None, 2 * H:]                                       # (2,1,H)

        gi = _input_projection(x, w_ih, gate_bias)                         # (2,T,3,B,H)

        h0 = jnp.broadcast_to(
            params["init_state"][2 * i:2 * i + 2, 0][:, None, :], (2, B, H))

        out_dtype = jnp.float32 if i == num_layers - 1 else jnp.bfloat16
        x = bidirectional_gru_layer(gi, w_hh, b_hn, h0, lens_b1,
                                    tt=tt, out_dtype=out_dtype)            # (2,T,B,H)

    # Padded batch-first view of the PackedSequence output:
    # (2,T,B,H) -> (B,T,2,H) -> (B,T,2H), then strip padding.
    out = jnp.transpose(x, (2, 1, 0, 3)).reshape(B, T, 2 * H)
    # TODO(synk): PackedSequence has no JAX analog; padded output + xlens returned instead.
    return out[:B0, :T0], xlens


# ----------------------------------------------------------------------------
# Deterministic parameter initialization (shapes from EncoderRNN.__init__).
# ----------------------------------------------------------------------------
def init_params(key, n_words, hidden_size, num_layers, use_bn):
    H = hidden_size
    k_embed, k_init, k_layers = jax.random.split(key, 3)
    params = {
        "embed": jax.random.normal(k_embed, (n_words, H), jnp.float32),
        "init_state": jax.random.normal(k_init, (2 * num_layers, 1, H), jnp.float32),
        "layers": [],
        "bn": [],
    }
    scale = 1.0 / jnp.sqrt(H)
    lkeys = jax.random.split(k_layers, num_layers)
    for i in range(num_layers):
        insize = H if i == 0 else 2 * H
        ks = jax.random.split(lkeys[i], 8)
        u = lambda k, shape: jax.random.uniform(k, shape, jnp.float32, -scale, scale)
        # Weights stored pre-transposed for the matmuls: (in, 3H) / (H, 3H).
        params["layers"].append({
            "w_ih_f": u(ks[0], (insize, 3 * H)),
            "w_hh_f": u(ks[1], (H, 3 * H)),
            "b_ih_f": u(ks[2], (1, 3 * H)),
            "b_hh_f": u(ks[3], (1, 3 * H)),
            "w_ih_b": u(ks[4], (insize, 3 * H)),
            "w_hh_b": u(ks[5], (H, 3 * H)),
            "b_ih_b": u(ks[6], (1, 3 * H)),
            "b_hh_b": u(ks[7], (1, 3 * H)),
        })
    if use_bn:
        for _ in range(num_layers - 1):
            params["bn"].append({
                "gamma": jnp.ones((2 * H,), jnp.float32),
                "beta": jnp.zeros((2 * H,), jnp.float32),
            })
    return params


if __name__ == "__main__":
    key = jax.random.PRNGKey(0)
    B, T, H = 2, 8, 32
    n_words, num_layers, use_bn = 50, 2, True

    pkey, dkey = jax.random.split(key)
    params = init_params(pkey, n_words, H, num_layers, use_bn)

    # Token ids: zeros are <PAD>; pad only at the tail (lengths 8 and 5).
    lens = jnp.array([8, 5], dtype=jnp.int32)
    ids = jax.random.randint(dkey, (B, T), 1, n_words, dtype=jnp.int32)
    ids = ids * (jnp.arange(T)[None, :] < lens[:, None]).astype(jnp.int32)

    out, xlens = encoder_rnn_forward(params, ids, use_bn=use_bn, tt=8)
    jax.block_until_ready(out)
    assert out.shape == (B, T, 2 * H)
    print("KERNEL_OK")
</pallas_src>

<mosaic_0001>
module attributes {stable_mosaic.version = 11 : i64} {
  func.func @_bidir_gru_kernel(%arg0: i32, %arg1: i32, %arg2: memref<1x8x3x8x32xbf16, #tpu.memory_space<vmem>>, %arg3: memref<1x3x32x32xbf16, #tpu.memory_space<vmem>>, %arg4: memref<1x1x32xf32, #tpu.memory_space<vmem>>, %arg5: memref<1x8x32xf32, #tpu.memory_space<vmem>>, %arg6: memref<8x1xi32, #tpu.memory_space<vmem>>, %arg7: memref<1x8x8x32xbf16, #tpu.memory_space<vmem>>, %arg8: memref<8x32xf32, #tpu.memory_space<vmem>>) attributes {dimension_semantics = [#tpu.dimension_semantics<parallel>, #tpu.dimension_semantics<arbitrary>], iteration_bounds = array<i64: 2, 1>, scalar_prefetch = 0 : i64, scratch_operands = 1 : i64, tpu.core_type = #tpu.core_type<tc>, window_params = [{transform_indices = @transform_0, window_bounds = array<i64: 1, 8, 3, 8, 32>}, {transform_indices = @transform_1, window_bounds = array<i64: 1, 3, 32, 32>}, {transform_indices = @transform_2, window_bounds = array<i64: 1, 1, 32>}, {transform_indices = @transform_3, window_bounds = array<i64: 1, 8, 32>}, {pipeline_mode = #tpu.pipeline_mode<synchronous>, transform_indices = @transform_4, window_bounds = array<i64: 8, 1>}, {transform_indices = @transform_5, window_bounds = array<i64: 1, 8, 8, 32>}]} {
    %c0_i32 = arith.constant 0 : i32
    %0 = arith.cmpi eq, %arg1, %c0_i32 : i32
    %1 = arith.extui %0 : i1 to i32
    %c0_i32_0 = arith.constant 0 : i32
    %2 = arith.cmpi ne, %1, %c0_i32_0 : i32
    scf.if %2 {
      %c0_220 = arith.constant 0 : index
      %c0_221 = arith.constant 0 : index
      %c0_222 = arith.constant 0 : index
      %490 = vector.load %arg5[%c0_220, %c0_221, %c0_222] : memref<1x8x32xf32, #tpu.memory_space<vmem>>, vector<1x8x32xf32>
      %491 = vector.shape_cast %490 : vector<1x8x32xf32> to vector<8x32xf32>
      %c0_223 = arith.constant 0 : index
      %c0_224 = arith.constant 0 : index
      %492 = vector.load %arg8[%c0_223, %c0_224] : memref<8x32xf32, #tpu.memory_space<vmem>>, vector<8x32xf32>
      tpu.vector_store %arg8[%c0_223, %c0_224], %491 {strides = array<i32>} : memref<8x32xf32, #tpu.memory_space<vmem>>, vector<8x32xf32>,
    } else {
    }
    %c0 = arith.constant 0 : index
    %c0_1 = arith.constant 0 : index
    %c0_2 = arith.constant 0 : index
    %c0_3 = arith.constant 0 : index
    %3 = vector.load %arg3[%c0, %c0_1, %c0_2, %c0_3] : memref<1x3x32x32xbf16, #tpu.memory_space<vmem>>, vector<1x1x32x32xbf16>
    %4 = vector.shape_cast %3 : vector<1x1x32x32xbf16> to vector<32x32xbf16>
    %c0_4 = arith.constant 0 : index
    %c1 = arith.constant 1 : index
    %c0_5 = arith.constant 0 : index
    %c0_6 = arith.constant 0 : index
    %5 = vector.load %arg3[%c0_4, %c1, %c0_5, %c0_6] : memref<1x3x32x32xbf16, #tpu.memory_space<vmem>>, vector<1x1x32x32xbf16>
    %6 = vector.shape_cast %5 : vector<1x1x32x32xbf16> to vector<32x32xbf16>
    %c0_7 = arith.constant 0 : index
    %c2 = arith.constant 2 : index
    %c0_8 = arith.constant 0 : index
    %c0_9 = arith.constant 0 : index
    %7 = vector.load %arg3[%c0_7, %c2, %c0_8, %c0_9] : memref<1x3x32x32xbf16, #tpu.memory_space<vmem>>, vector<1x1x32x32xbf16>
    %8 = vector.shape_cast %7 : vector<1x1x32x32xbf16> to vector<32x32xbf16>
    %c0_10 = arith.constant 0 : index
    %c0_11 = arith.constant 0 : index
    %c0_12 = arith.constant 0 : index
    %9 = vector.load %arg4[%c0_10, %c0_11, %c0_12] : memref<1x1x32xf32, #tpu.memory_space<vmem>>, vector<1x1x32xf32>
    %10 = vector.shape_cast %9 : vector<1x1x32xf32> to vector<1x32xf32>
    %11 = vector.shape_cast %10 : vector<1x32xf32> to vector<1x32xf32>
    %12 = vector.broadcast %11 : vector<1x32xf32> to vector<8x32xf32>
    %c0_13 = arith.constant 0 : index
    %c0_14 = arith.constant 0 : index
    %13 = vector.load %arg6[%c0_13, %c0_14] : memref<8x1xi32, #tpu.memory_space<vmem>>, vector<8x1xi32>
    %c0_i32_15 = arith.constant 0 : i32
    %14 = arith.cmpi eq, %arg0, %c0_i32_15 : i32
    %c0_i32_16 = arith.constant 0 : i32
    %15 = arith.subi %c0_i32_16, %arg1 : i32
    %16 = arith.select %14, %arg1, %15 : i32
    %c8_i32 = arith.constant 8 : i32
    %17 = arith.muli %16, %c8_i32 : i32
    %c0_i32_17 = arith.constant 0 : i32
    %c0_i32_18 = arith.constant 0 : i32
    %c0_i32_19 = arith.constant 0 : i32
    %c0_i32_20 = arith.constant 0 : i32
    %18 = arith.cmpi eq, %arg0, %c0_i32_20 : i32
    %c7_i32 = arith.constant 7 : i32
    %19 = arith.subi %c7_i32, %c0_i32_19 : i32
    %20 = arith.select %18, %c0_i32_19, %19 : i32
    %c0_i32_21 = arith.constant 0 : i32
    %c0_i32_22 = arith.constant 0 : i32
    %c0_i32_23 = arith.constant 0 : i32
    %c0_i32_24 = arith.constant 0 : i32
    %21 = tpu.memref_slice %arg2[%c0_i32_17, %c0_i32_21, %c0_i32_22, %c0_i32_23, %c0_i32_24] : memref<1x8x3x8x32xbf16, #tpu.memory_space<vmem>> -> memref<1x8x3x8x32xbf16, #tpu.memory_space<vmem>>
    %22 = tpu.memref_squeeze %21 : memref<1x8x3x8x32xbf16, #tpu.memory_space<vmem>> -> memref<8x3x8x32xbf16, #tpu.memory_space<vmem>>
    %23 = arith.index_cast %20 : i32 to index
    %c0_25 = arith.constant 0 : index
    %c0_26 = arith.constant 0 : index
    %c0_27 = arith.constant 0 : index
    %24 = vector.load %22[%23, %c0_25, %c0_26, %c0_27] : memref<8x3x8x32xbf16, #tpu.memory_space<vmem>>, vector<1x3x8x32xbf16>
    %25 = vector.shape_cast %24 : vector<1x3x8x32xbf16> to vector<3x8x32xbf16>
    %26 = arith.extf %25 : vector<3x8x32xbf16> to vector<3x8x32xf32>
    %c0_28 = arith.constant 0 : index
    %c0_29 = arith.constant 0 : index
    %27 = vector.load %arg8[%c0_28, %c0_29] : memref<8x32xf32, #tpu.memory_space<vmem>>, vector<8x32xf32>
    %28 = arith.truncf %27 : vector<8x32xf32> to vector<8x32xbf16>
    %cst = arith.constant dense<0.000000e+00> : vector<8x32xf32>
    %29 = tpu.matmul %28, %4, %cst {dimension_numbers = #tpu.dot_dimension_numbers<[1], [0], [0], [1], [0, 0, 1, 1], [], []>} : vector<8x32xbf16>, vector<32x32xbf16>, vector<8x32xf32> -> vector<8x32xf32>
    %cst_30 = arith.constant dense<0.000000e+00> : vector<8x32xf32>
    %30 = tpu.matmul %28, %6, %cst_30 {dimension_numbers = #tpu.dot_dimension_numbers<[1], [0], [0], [1], [0, 0, 1, 1], [], []>} : vector<8x32xbf16>, vector<32x32xbf16>, vector<8x32xf32> -> vector<8x32xf32>
    %cst_31 = arith.constant dense<0.000000e+00> : vector<8x32xf32>
    %31 = tpu.matmul %28, %8, %cst_31 {dimension_numbers = #tpu.dot_dimension_numbers<[1], [0], [0], [1], [0, 0, 1, 1], [], []>} : vector<8x32xbf16>, vector<32x32xbf16>, vector<8x32xf32> -> vector<8x32xf32>
    %32 = vector.extract_strided_slice %26 {offsets = [0, 0, 0], sizes = [1, 8, 32], strides = [1, 1, 1]} : vector<3x8x32xf32> to vector<1x8x32xf32>
    %33 = vector.shape_cast %32 : vector<1x8x32xf32> to vector<8x32xf32>
    %34 = arith.addf %33, %29 : vector<8x32xf32>
    %35 = arith.negf %34 : vector<8x32xf32>
    %36 = math.exp %35 : vector<8x32xf32>
    %cst_32 = arith.constant 1.000000e+00 : f32
    %37 = vector.broadcast %cst_32 : f32 to vector<8x32xf32>
    %38 = arith.addf %37, %36 : vector<8x32xf32>
    %39 = arith.divf %37, %38 : vector<8x32xf32>
    %40 = vector.extract_strided_slice %26 {offsets = [1, 0, 0], sizes = [1, 8, 32], strides = [1, 1, 1]} : vector<3x8x32xf32> to vector<1x8x32xf32>
    %41 = vector.shape_cast %40 : vector<1x8x32xf32> to vector<8x32xf32>
    %42 = arith.addf %41, %30 : vector<8x32xf32>
    %43 = arith.negf %42 : vector<8x32xf32>
    %44 = math.exp %43 : vector<8x32xf32>
    %cst_33 = arith.constant 1.000000e+00 : f32
    %45 = vector.broadcast %cst_33 : f32 to vector<8x32xf32>
    %46 = arith.addf %45, %44 : vector<8x32xf32>
    %47 = arith.divf %45, %46 : vector<8x32xf32>
    %48 = vector.extract_strided_slice %26 {offsets = [2, 0, 0], sizes = [1, 8, 32], strides = [1, 1, 1]} : vector<3x8x32xf32> to vector<1x8x32xf32>
    %49 = vector.shape_cast %48 : vector<1x8x32xf32> to vector<8x32xf32>
    %50 = arith.addf %31, %12 : vector<8x32xf32>
    %51 = arith.mulf %39, %50 : vector<8x32xf32>
    %52 = arith.addf %49, %51 : vector<8x32xf32>
    %53 = math.tanh %52 : vector<8x32xf32>
    %cst_34 = arith.constant 1.000000e+00 : f32
    %54 = vector.broadcast %cst_34 : f32 to vector<8x32xf32>
    %55 = arith.subf %54, %47 : vector<8x32xf32>
    %56 = arith.mulf %55, %53 : vector<8x32xf32>
    %57 = arith.mulf %47, %27 : vector<8x32xf32>
    %58 = arith.addf %56, %57 : vector<8x32xf32>
    %59 = arith.addi %17, %20 : i32
    %60 = vector.broadcast %59 : i32 to vector<8x1xi32>
    %61 = arith.cmpi sgt, %13, %60 : vector<8x1xi32>
    %62 = vector.shape_cast %61 : vector<8x1xi1> to vector<8x1xi1>
    %63 = vector.broadcast %62 : vector<8x1xi1> to vector<8x32xi1>
    %64 = arith.select %63, %58, %27 : vector<8x32xi1>, vector<8x32xf32>
    %c0_35 = arith.constant 0 : index
    %c0_36 = arith.constant 0 : index
    %65 = vector.load %arg8[%c0_35, %c0_36] : memref<8x32xf32, #tpu.memory_space<vmem>>, vector<8x32xf32>
    tpu.vector_store %arg8[%c0_35, %c0_36], %64 {strides = array<i32>} : memref<8x32xf32, #tpu.memory_space<vmem>>, vector<8x32xf32>,
    %cst_37 = arith.constant 0.000000e+00 : f32
    %66 = vector.shape_cast %61 : vector<8x1xi1> to vector<8x1xi1>
    %67 = vector.broadcast %66 : vector<8x1xi1> to vector<8x32xi1>
    %68 = vector.broadcast %cst_37 : f32 to vector<8x32xf32>
    %69 = arith.select %67, %58, %68 : vector<8x32xi1>, vector<8x32xf32>
    %70 = arith.truncf %69 : vector<8x32xf32> to vector<8x32xbf16>
    %c0_i32_38 = arith.constant 0 : i32
    %c0_i32_39 = arith.constant 0 : i32
    %c0_i32_40 = arith.constant 0 : i32
    %71 = tpu.memref_slice %arg7[%c0_i32_18, %c0_i32_38, %c0_i32_39, %c0_i32_40] : memref<1x8x8x32xbf16, #tpu.memory_space<vmem>> -> memref<1x8x8x32xbf16, #tpu.memory_space<vmem>>
    %72 = tpu.memref_squeeze %71 : memref<1x8x8x32xbf16, #tpu.memory_space<vmem>> -> memref<8x8x32xbf16, #tpu.memory_space<vmem>>
    %73 = arith.index_cast %20 : i32 to index
    %c0_41 = arith.constant 0 : index
    %c0_42 = arith.constant 0 : index
    %74 = vector.load %72[%73, %c0_41, %c0_42] : memref<8x8x32xbf16, #tpu.memory_space<vmem>>, vector<1x8x32xbf16>
    %75 = vector.shape_cast %74 : vector<1x8x32xbf16> to vector<8x32xbf16>
    %76 = vector.shape_cast %70 : vector<8x32xbf16> to vector<1x8x32xbf16>
    tpu.vector_store %72[%73, %c0_41, %c0_42], %76 {strides = array<i32>} : memref<8x8x32xbf16, #tpu.memory_space<vmem>>, vector<1x8x32xbf16>,
    %c1_i32 = arith.constant 1 : i32
    %c0_i32_43 = arith.constant 0 : i32
    %77 = arith.cmpi eq, %arg0, %c0_i32_43 : i32
    %c7_i32_44 = arith.constant 7 : i32
    %78 = arith.subi %c7_i32_44, %c1_i32 : i32
    %79 = arith.select %77, %c1_i32, %78 : i32
    %c0_i32_45 = arith.constant 0 : i32
    %c0_i32_46 = arith.constant 0 : i32
    %c0_i32_47 = arith.constant 0 : i32
    %c0_i32_48 = arith.constant 0 : i32
    %80 = tpu.memref_slice %arg2[%c0_i32_17, %c0_i32_45, %c0_i32_46, %c0_i32_47, %c0_i32_48] : memref<1x8x3x8x32xbf16, #tpu.memory_space<vmem>> -> memref<1x8x3x8x32xbf16, #tpu.memory_space<vmem>>
    %81 = tpu.memref_squeeze %80 : memref<1x8x3x8x32xbf16, #tpu.memory_space<vmem>> -> memref<8x3x8x32xbf16, #tpu.memory_space<vmem>>
    %82 = arith.index_cast %79 : i32 to index
    %c0_49 = arith.constant 0 : index
    %c0_50 = arith.constant 0 : index
    %c0_51 = arith.constant 0 : index
    %83 = vector.load %81[%82, %c0_49, %c0_50, %c0_51] : memref<8x3x8x32xbf16, #tpu.memory_space<vmem>>, vector<1x3x8x32xbf16>
    %84 = vector.shape_cast %83 : vector<1x3x8x32xbf16> to vector<3x8x32xbf16>
    %85 = arith.extf %84 : vector<3x8x32xbf16> to vector<3x8x32xf32>
    %c0_52 = arith.constant 0 : index
    %c0_53 = arith.constant 0 : index
    %86 = vector.load %arg8[%c0_52, %c0_53] : memref<8x32xf32, #tpu.memory_space<vmem>>, vector<8x32xf32>
    %87 = arith.truncf %86 : vector<8x32xf32> to vector<8x32xbf16>
    %cst_54 = arith.constant dense<0.000000e+00> : vector<8x32xf32>
    %88 = tpu.matmul %87, %4, %cst_54 {dimension_numbers = #tpu.dot_dimension_numbers<[1], [0], [0], [1], [0, 0, 1, 1], [], []>} : vector<8x32xbf16>, vector<32x32xbf16>, vector<8x32xf32> -> vector<8x32xf32>
    %cst_55 = arith.constant dense<0.000000e+00> : vector<8x32xf32>
    %89 = tpu.matmul %87, %6, %cst_55 {dimension_numbers = #tpu.dot_dimension_numbers<[1], [0], [0], [1], [0, 0, 1, 1], [], []>} : vector<8x32xbf16>, vector<32x32xbf16>, vector<8x32xf32> -> vector<8x32xf32>
    %cst_56 = arith.constant dense<0.000000e+00> : vector<8x32xf32>
    %90 = tpu.matmul %87, %8, %cst_56 {dimension_numbers = #tpu.dot_dimension_numbers<[1], [0], [0], [1], [0, 0, 1, 1], [], []>} : vector<8x32xbf16>, vector<32x32xbf16>, vector<8x32xf32> -> vector<8x32xf32>
    %91 = vector.extract_strided_slice %85 {offsets = [0, 0, 0], sizes = [1, 8, 32], strides = [1, 1, 1]} : vector<3x8x32xf32> to vector<1x8x32xf32>
    %92 = vector.shape_cast %91 : vector<1x8x32xf32> to vector<8x32xf32>
    %93 = arith.addf %92, %88 : vector<8x32xf32>
    %94 = arith.negf %93 : vector<8x32xf32>
    %95 = math.exp %94 : vector<8x32xf32>
    %cst_57 = arith.constant 1.000000e+00 : f32
    %96 = vector.broadcast %cst_57 : f32 to vector<8x32xf32>
    %97 = arith.addf %96, %95 : vector<8x32xf32>
    %98 = arith.divf %96, %97 : vector<8x32xf32>
    %99 = vector.extract_strided_slice %85 {offsets = [1, 0, 0], sizes = [1, 8, 32], strides = [1, 1, 1]} : vector<3x8x32xf32> to vector<1x8x32xf32>
    %100 = vector.shape_cast %99 : vector<1x8x32xf32> to vector<8x32xf32>
    %101 = arith.addf %100, %89 : vector<8x32xf32>
    %102 = arith.negf %101 : vector<8x32xf32>
    %103 = math.exp %102 : vector<8x32xf32>
    %cst_58 = arith.constant 1.000000e+00 : f32
    %104 = vector.broadcast %cst_58 : f32 to vector<8x32xf32>
    %105 = arith.addf %104, %103 : vector<8x32xf32>
    %106 = arith.divf %104, %105 : vector<8x32xf32>
    %107 = vector.extract_strided_slice %85 {offsets = [2, 0, 0], sizes = [1, 8, 32], strides = [1, 1, 1]} : vector<3x8x32xf32> to vector<1x8x32xf32>
    %108 = vector.shape_cast %107 : vector<1x8x32xf32> to vector<8x32xf32>
    %109 = arith.addf %90, %12 : vector<8x32xf32>
    %110 = arith.mulf %98, %109 : vector<8x32xf32>
    %111 = arith.addf %108, %110 : vector<8x32xf32>
    %112 = math.tanh %111 : vector<8x32xf32>
    %cst_59 = arith.constant 1.000000e+00 : f32
    %113 = vector.broadcast %cst_59 : f32 to vector<8x32xf32>
    %114 = arith.subf %113, %106 : vector<8x32xf32>
    %115 = arith.mulf %114, %112 : vector<8x32xf32>
    %116 = arith.mulf %106, %86 : vector<8x32xf32>
    %117 = arith.addf %115, %116 : vector<8x32xf32>
    %118 = arith.addi %17, %79 : i32
    %119 = vector.broadcast %118 : i32 to vector<8x1xi32>
    %120 = arith.cmpi sgt, %13, %119 : vector<8x1xi32>
    %121 = vector.shape_cast %120 : vector<8x1xi1> to vector<8x1xi1>
    %122 = vector.broadcast %121 : vector<8x1xi1> to vector<8x32xi1>
    %123 = arith.select %122, %117, %86 : vector<8x32xi1>, vector<8x32xf32>
    %c0_60 = arith.constant 0 : index
    %c0_61 = arith.constant 0 : index
    %124 = vector.load %arg8[%c0_60, %c0_61] : memref<8x32xf32, #tpu.memory_space<vmem>>, vector<8x32xf32>
    tpu.vector_store %arg8[%c0_60, %c0_61], %123 {strides = array<i32>} : memref<8x32xf32, #tpu.memory_space<vmem>>, vector<8x32xf32>,
    %cst_62 = arith.constant 0.000000e+00 : f32
    %125 = vector.shape_cast %120 : vector<8x1xi1> to vector<8x1xi1>
    %126 = vector.broadcast %125 : vector<8x1xi1> to vector<8x32xi1>
    %127 = vector.broadcast %cst_62 : f32 to vector<8x32xf32>
    %128 = arith.select %126, %117, %127 : vector<8x32xi1>, vector<8x32xf32>
    %129 = arith.truncf %128 : vector<8x32xf32> to vector<8x32xbf16>
    %c0_i32_63 = arith.constant 0 : i32
    %c0_i32_64 = arith.constant 0 : i32
    %c0_i32_65 = arith.constant 0 : i32
    %130 = tpu.memref_slice %arg7[%c0_i32_18, %c0_i32_63, %c0_i32_64, %c0_i32_65] : memref<1x8x8x32xbf16, #tpu.memory_space<vmem>> -> memref<1x8x8x32xbf16, #tpu.memory_space<vmem>>
    %131 = tpu.memref_squeeze %130 : memref<1x8x8x32xbf16, #tpu.memory_space<vmem>> -> memref<8x8x32xbf16, #tpu.memory_space<vmem>>
    %132 = arith.index_cast %79 : i32 to index
    %c0_66 = arith.constant 0 : index
    %c0_67 = arith.constant 0 : index
    %133 = vector.load %131[%132, %c0_66, %c0_67] : memref<8x8x32xbf16, #tpu.memory_space<vmem>>, vector<1x8x32xbf16>
    %134 = vector.shape_cast %133 : vector<1x8x32xbf16> to vector<8x32xbf16>
    %135 = vector.shape_cast %129 : vector<8x32xbf16> to vector<1x8x32xbf16>
    tpu.vector_store %131[%132, %c0_66, %c0_67], %135 {strides = array<i32>} : memref<8x8x32xbf16, #tpu.memory_space<vmem>>, vector<1x8x32xbf16>,
    %c2_i32 = arith.constant 2 : i32
    %c0_i32_68 = arith.constant 0 : i32
    %136 = arith.cmpi eq, %arg0, %c0_i32_68 : i32
    %c7_i32_69 = arith.constant 7 : i32
    %137 = arith.subi %c7_i32_69, %c2_i32 : i32
    %138 = arith.select %136, %c2_i32, %137 : i32
    %c0_i32_70 = arith.constant 0 : i32
    %c0_i32_71 = arith.constant 0 : i32
    %c0_i32_72 = arith.constant 0 : i32
    %c0_i32_73 = arith.constant 0 : i32
    %139 = tpu.memref_slice %arg2[%c0_i32_17, %c0_i32_70, %c0_i32_71, %c0_i32_72, %c0_i32_73] : memref<1x8x3x8x32xbf16, #tpu.memory_space<vmem>> -> memref<1x8x3x8x32xbf16, #tpu.memory_space<vmem>>
    %140 = tpu.memref_squeeze %139 : memref<1x8x3x8x32xbf16, #tpu.memory_space<vmem>> -> memref<8x3x8x32xbf16, #tpu.memory_space<vmem>>
    %141 = arith.index_cast %138 : i32 to index
    %c0_74 = arith.constant 0 : index
    %c0_75 = arith.constant 0 : index
    %c0_76 = arith.constant 0 : index
    %142 = vector.load %140[%141, %c0_74, %c0_75, %c0_76] : memref<8x3x8x32xbf16, #tpu.memory_space<vmem>>, vector<1x3x8x32xbf16>
    %143 = vector.shape_cast %142 : vector<1x3x8x32xbf16> to vector<3x8x32xbf16>
    %144 = arith.extf %143 : vector<3x8x32xbf16> to vector<3x8x32xf32>
    %c0_77 = arith.constant 0 : index
    %c0_78 = arith.constant 0 : index
    %145 = vector.load %arg8[%c0_77, %c0_78] : memref<8x32xf32, #tpu.memory_space<vmem>>, vector<8x32xf32>
    %146 = arith.truncf %145 : vector<8x32xf32> to vector<8x32xbf16>
    %cst_79 = arith.constant dense<0.000000e+00> : vector<8x32xf32>
    %147 = tpu.matmul %146, %4, %cst_79 {dimension_numbers = #tpu.dot_dimension_numbers<[1], [0], [0], [1], [0, 0, 1, 1], [], []>} : vector<8x32xbf16>, vector<32x32xbf16>, vector<8x32xf32> -> vector<8x32xf32>
    %cst_80 = arith.constant dense<0.000000e+00> : vector<8x32xf32>
    %148 = tpu.matmul %146, %6, %cst_80 {dimension_numbers = #tpu.dot_dimension_numbers<[1], [0], [0], [1], [0, 0, 1, 1], [], []>} : vector<8x32xbf16>, vector<32x32xbf16>, vector<8x32xf32> -> vector<8x32xf32>
    %cst_81 = arith.constant dense<0.000000e+00> : vector<8x32xf32>
    %149 = tpu.matmul %146, %8, %cst_81 {dimension_numbers = #tpu.dot_dimension_numbers<[1], [0], [0], [1], [0, 0, 1, 1], [], []>} : vector<8x32xbf16>, vector<32x32xbf16>, vector<8x32xf32> -> vector<8x32xf32>
    %150 = vector.extract_strided_slice %144 {offsets = [0, 0, 0], sizes = [1, 8, 32], strides = [1, 1, 1]} : vector<3x8x32xf32> to vector<1x8x32xf32>
    %151 = vector.shape_cast %150 : vector<1x8x32xf32> to vector<8x32xf32>
    %152 = arith.addf %151, %147 : vector<8x32xf32>
    %153 = arith.negf %152 : vector<8x32xf32>
    %154 = math.exp %153 : vector<8x32xf32>
    %cst_82 = arith.constant 1.000000e+00 : f32
    %155 = vector.broadcast %cst_82 : f32 to vector<8x32xf32>
    %156 = arith.addf %155, %154 : vector<8x32xf32>
    %157 = arith.divf %155, %156 : vector<8x32xf32>
    %158 = vector.extract_strided_slice %144 {offsets = [1, 0, 0], sizes = [1, 8, 32], strides = [1, 1, 1]} : vector<3x8x32xf32> to vector<1x8x32xf32>
    %159 = vector.shape_cast %158 : vector<1x8x32xf32> to vector<8x32xf32>
    %160 = arith.addf %159, %148 : vector<8x32xf32>
    %161 = arith.negf %160 : vector<8x32xf32>
    %162 = math.exp %161 : vector<8x32xf32>
    %cst_83 = arith.constant 1.000000e+00 : f32
    %163 = vector.broadcast %cst_83 : f32 to vector<8x32xf32>
    %164 = arith.addf %163, %162 : vector<8x32xf32>
    %165 = arith.divf %163, %164 : vector<8x32xf32>
    %166 = vector.extract_strided_slice %144 {offsets = [2, 0, 0], sizes = [1, 8, 32], strides = [1, 1, 1]} : vector<3x8x32xf32> to vector<1x8x32xf32>
    %167 = vector.shape_cast %166 : vector<1x8x32xf32> to vector<8x32xf32>
    %168 = arith.addf %149, %12 : vector<8x32xf32>
    %169 = arith.mulf %157, %168 : vector<8x32xf32>
    %170 = arith.addf %167, %169 : vector<8x32xf32>
    %171 = math.tanh %170 : vector<8x32xf32>
    %cst_84 = arith.constant 1.000000e+00 : f32
    %172 = vector.broadcast %cst_84 : f32 to vector<8x32xf32>
    %173 = arith.subf %172, %165 : vector<8x32xf32>
    %174 = arith.mulf %173, %171 : vector<8x32xf32>
    %175 = arith.mulf %165, %145 : vector<8x32xf32>
    %176 = arith.addf %174, %175 : vector<8x32xf32>
    %177 = arith.addi %17, %138 : i32
    %178 = vector.broadcast %177 : i32 to vector<8x1xi32>
    %179 = arith.cmpi sgt, %13, %178 : vector<8x1xi32>
    %180 = vector.shape_cast %179 : vector<8x1xi1> to vector<8x1xi1>
    %181 = vector.broadcast %180 : vector<8x1xi1> to vector<8x32xi1>
    %182 = arith.select %181, %176, %145 : vector<8x32xi1>, vector<8x32xf32>
    %c0_85 = arith.constant 0 : index
    %c0_86 = arith.constant 0 : index
    %183 = vector.load %arg8[%c0_85, %c0_86] : memref<8x32xf32, #tpu.memory_space<vmem>>, vector<8x32xf32>
    tpu.vector_store %arg8[%c0_85, %c0_86], %182 {strides = array<i32>} : memref<8x32xf32, #tpu.memory_space<vmem>>, vector<8x32xf32>,
    %cst_87 = arith.constant 0.000000e+00 : f32
    %184 = vector.shape_cast %179 : vector<8x1xi1> to vector<8x1xi1>
    %185 = vector.broadcast %184 : vector<8x1xi1> to vector<8x32xi1>
    %186 = vector.broadcast %cst_87 : f32 to vector<8x32xf32>
    %187 = arith.select %185, %176, %186 : vector<8x32xi1>, vector<8x32xf32>
    %188 = arith.truncf %187 : vector<8x32xf32> to vector<8x32xbf16>
    %c0_i32_88 = arith.constant 0 : i32
    %c0_i32_89 = arith.constant 0 : i32
    %c0_i32_90 = arith.constant 0 : i32
    %189 = tpu.memref_slice %arg7[%c0_i32_18, %c0_i32_88, %c0_i32_89, %c0_i32_90] : memref<1x8x8x32xbf16, #tpu.memory_space<vmem>> -> memref<1x8x8x32xbf16, #tpu.memory_space<vmem>>
    %190 = tpu.memref_squeeze %189 : memref<1x8x8x32xbf16, #tpu.memory_space<vmem>> -> memref<8x8x32xbf16, #tpu.memory_space<vmem>>
    %191 = arith.index_cast %138 : i32 to index
    %c0_91 = arith.constant 0 : index
    %c0_92 = arith.constant 0 : index
    %192 = vector.load %190[%191, %c0_91, %c0_92] : memref<8x8x32xbf16, #tpu.memory_space<vmem>>, vector<1x8x32xbf16>
    %193 = vector.shape_cast %192 : vector<1x8x32xbf16> to vector<8x32xbf16>
    %194 = vector.shape_cast %188 : vector<8x32xbf16> to vector<1x8x32xbf16>
    tpu.vector_store %190[%191, %c0_91, %c0_92], %194 {strides = array<i32>} : memref<8x8x32xbf16, #tpu.memory_space<vmem>>, vector<1x8x32xbf16>,
    %c3_i32 = arith.constant 3 : i32
    %c0_i32_93 = arith.constant 0 : i32
    %195 = arith.cmpi eq, %arg0, %c0_i32_93 : i32
    %c7_i32_94 = arith.constant 7 : i32
    %196 = arith.subi %c7_i32_94, %c3_i32 : i32
    %197 = arith.select %195, %c3_i32, %196 : i32
    %c0_i32_95 = arith.constant 0 : i32
    %c0_i32_96 = arith.constant 0 : i32
    %c0_i32_97 = arith.constant 0 : i32
    %c0_i32_98 = arith.constant 0 : i32
    %198 = tpu.memref_slice %arg2[%c0_i32_17, %c0_i32_95, %c0_i32_96, %c0_i32_97, %c0_i32_98] : memref<1x8x3x8x32xbf16, #tpu.memory_space<vmem>> -> memref<1x8x3x8x32xbf16, #tpu.memory_space<vmem>>
    %199 = tpu.memref_squeeze %198 : memref<1x8x3x8x32xbf16, #tpu.memory_space<vmem>> -> memref<8x3x8x32xbf16, #tpu.memory_space<vmem>>
    %200 = arith.index_cast %197 : i32 to index
    %c0_99 = arith.constant 0 : index
    %c0_100 = arith.constant 0 : index
    %c0_101 = arith.constant 0 : index
    %201 = vector.load %199[%200, %c0_99, %c0_100, %c0_101] : memref<8x3x8x32xbf16, #tpu.memory_space<vmem>>, vector<1x3x8x32xbf16>
    %202 = vector.shape_cast %201 : vector<1x3x8x32xbf16> to vector<3x8x32xbf16>
    %203 = arith.extf %202 : vector<3x8x32xbf16> to vector<3x8x32xf32>
    %c0_102 = arith.constant 0 : index
    %c0_103 = arith.constant 0 : index
    %204 = vector.load %arg8[%c0_102, %c0_103] : memref<8x32xf32, #tpu.memory_space<vmem>>, vector<8x32xf32>
    %205 = arith.truncf %204 : vector<8x32xf32> to vector<8x32xbf16>
    %cst_104 = arith.constant dense<0.000000e+00> : vector<8x32xf32>
    %206 = tpu.matmul %205, %4, %cst_104 {dimension_numbers = #tpu.dot_dimension_numbers<[1], [0], [0], [1], [0, 0, 1, 1], [], []>} : vector<8x32xbf16>, vector<32x32xbf16>, vector<8x32xf32> -> vector<8x32xf32>
    %cst_105 = arith.constant dense<0.000000e+00> : vector<8x32xf32>
    %207 = tpu.matmul %205, %6, %cst_105 {dimension_numbers = #tpu.dot_dimension_numbers<[1], [0], [0], [1], [0, 0, 1, 1], [], []>} : vector<8x32xbf16>, vector<32x32xbf16>, vector<8x32xf32> -> vector<8x32xf32>
    %cst_106 = arith.constant dense<0.000000e+00> : vector<8x32xf32>
    %208 = tpu.matmul %205, %8, %cst_106 {dimension_numbers = #tpu.dot_dimension_numbers<[1], [0], [0], [1], [0, 0, 1, 1], [], []>} : vector<8x32xbf16>, vector<32x32xbf16>, vector<8x32xf32> -> vector<8x32xf32>
    %209 = vector.extract_strided_slice %203 {offsets = [0, 0, 0], sizes = [1, 8, 32], strides = [1, 1, 1]} : vector<3x8x32xf32> to vector<1x8x32xf32>
    %210 = vector.shape_cast %209 : vector<1x8x32xf32> to vector<8x32xf32>
    %211 = arith.addf %210, %206 : vector<8x32xf32>
    %212 = arith.negf %211 : vector<8x32xf32>
    %213 = math.exp %212 : vector<8x32xf32>
    %cst_107 = arith.constant 1.000000e+00 : f32
    %214 = vector.broadcast %cst_107 : f32 to vector<8x32xf32>
    %215 = arith.addf %214, %213 : vector<8x32xf32>
    %216 = arith.divf %214, %215 : vector<8x32xf32>
    %217 = vector.extract_strided_slice %203 {offsets = [1, 0, 0], sizes = [1, 8, 32], strides = [1, 1, 1]} : vector<3x8x32xf32> to vector<1x8x32xf32>
    %218 = vector.shape_cast %217 : vector<1x8x32xf32> to vector<8x32xf32>
    %219 = arith.addf %218, %207 : vector<8x32xf32>
    %220 = arith.negf %219 : vector<8x32xf32>
    %221 = math.exp %220 : vector<8x32xf32>
    %cst_108 = arith.constant 1.000000e+00 : f32
    %222 = vector.broadcast %cst_108 : f32 to vector<8x32xf32>
    %223 = arith.addf %222, %221 : vector<8x32xf32>
    %224 = arith.divf %222, %223 : vector<8x32xf32>
    %225 = vector.extract_strided_slice %203 {offsets = [2, 0, 0], sizes = [1, 8, 32], strides = [1, 1, 1]} : vector<3x8x32xf32> to vector<1x8x32xf32>
    %226 = vector.shape_cast %225 : vector<1x8x32xf32> to vector<8x32xf32>
    %227 = arith.addf %208, %12 : vector<8x32xf32>
    %228 = arith.mulf %216, %227 : vector<8x32xf32>
    %229 = arith.addf %226, %228 : vector<8x32xf32>
    %230 = math.tanh %229 : vector<8x32xf32>
    %cst_109 = arith.constant 1.000000e+00 : f32
    %231 = vector.broadcast %cst_109 : f32 to vector<8x32xf32>
    %232 = arith.subf %231, %224 : vector<8x32xf32>
    %233 = arith.mulf %232, %230 : vector<8x32xf32>
    %234 = arith.mulf %224, %204 : vector<8x32xf32>
    %235 = arith.addf %233, %234 : vector<8x32xf32>
    %236 = arith.addi %17, %197 : i32
    %237 = vector.broadcast %236 : i32 to vector<8x1xi32>
    %238 = arith.cmpi sgt, %13, %237 : vector<8x1xi32>
    %239 = vector.shape_cast %238 : vector<8x1xi1> to vector<8x1xi1>
    %240 = vector.broadcast %239 : vector<8x1xi1> to vector<8x32xi1>
    %241 = arith.select %240, %235, %204 : vector<8x32xi1>, vector<8x32xf32>
    %c0_110 = arith.constant 0 : index
    %c0_111 = arith.constant 0 : index
    %242 = vector.load %arg8[%c0_110, %c0_111] : memref<8x32xf32, #tpu.memory_space<vmem>>, vector<8x32xf32>
    tpu.vector_store %arg8[%c0_110, %c0_111], %241 {strides = array<i32>} : memref<8x32xf32, #tpu.memory_space<vmem>>, vector<8x32xf32>,
    %cst_112 = arith.constant 0.000000e+00 : f32
    %243 = vector.shape_cast %238 : vector<8x1xi1> to vector<8x1xi1>
    %244 = vector.broadcast %243 : vector<8x1xi1> to vector<8x32xi1>
    %245 = vector.broadcast %cst_112 : f32 to vector<8x32xf32>
    %246 = arith.select %244, %235, %245 : vector<8x32xi1>, vector<8x32xf32>
    %247 = arith.truncf %246 : vector<8x32xf32> to vector<8x32xbf16>
    %c0_i32_113 = arith.constant 0 : i32
    %c0_i32_114 = arith.constant 0 : i32
    %c0_i32_115 = arith.constant 0 : i32
    %248 = tpu.memref_slice %arg7[%c0_i32_18, %c0_i32_113, %c0_i32_114, %c0_i32_115] : memref<1x8x8x32xbf16, #tpu.memory_space<vmem>> -> memref<1x8x8x32xbf16, #tpu.memory_space<vmem>>
    %249 = tpu.memref_squeeze %248 : memref<1x8x8x32xbf16, #tpu.memory_space<vmem>> -> memref<8x8x32xbf16, #tpu.memory_space<vmem>>
    %250 = arith.index_cast %197 : i32 to index
    %c0_116 = arith.constant 0 : index
    %c0_117 = arith.constant 0 : index
    %251 = vector.load %249[%250, %c0_116, %c0_117] : memref<8x8x32xbf16, #tpu.memory_space<vmem>>, vector<1x8x32xbf16>
    %252 = vector.shape_cast %251 : vector<1x8x32xbf16> to vector<8x32xbf16>
    %253 = vector.shape_cast %247 : vector<8x32xbf16> to vector<1x8x32xbf16>
    tpu.vector_store %249[%250, %c0_116, %c0_117], %253 {strides = array<i32>} : memref<8x8x32xbf16, #tpu.memory_space<vmem>>, vector<1x8x32xbf16>,
    %c4_i32 = arith.constant 4 : i32
    %c0_i32_118 = arith.constant 0 : i32
    %254 = arith.cmpi eq, %arg0, %c0_i32_118 : i32
    %c7_i32_119 = arith.constant 7 : i32
    %255 = arith.subi %c7_i32_119, %c4_i32 : i32
    %256 = arith.select %254, %c4_i32, %255 : i32
    %c0_i32_120 = arith.constant 0 : i32
    %c0_i32_121 = arith.constant 0 : i32
    %c0_i32_122 = arith.constant 0 : i32
    %c0_i32_123 = arith.constant 0 : i32
    %257 = tpu.memref_slice %arg2[%c0_i32_17, %c0_i32_120, %c0_i32_121, %c0_i32_122, %c0_i32_123] : memref<1x8x3x8x32xbf16, #tpu.memory_space<vmem>> -> memref<1x8x3x8x32xbf16, #tpu.memory_space<vmem>>
    %258 = tpu.memref_squeeze %257 : memref<1x8x3x8x32xbf16, #tpu.memory_space<vmem>> -> memref<8x3x8x32xbf16, #tpu.memory_space<vmem>>
    %259 = arith.index_cast %256 : i32 to index
    %c0_124 = arith.constant 0 : index
    %c0_125 = arith.constant 0 : index
    %c0_126 = arith.constant 0 : index
    %260 = vector.load %258[%259, %c0_124, %c0_125, %c0_126] : memref<8x3x8x32xbf16, #tpu.memory_space<vmem>>, vector<1x3x8x32xbf16>
    %261 = vector.shape_cast %260 : vector<1x3x8x32xbf16> to vector<3x8x32xbf16>
    %262 = arith.extf %261 : vector<3x8x32xbf16> to vector<3x8x32xf32>
    %c0_127 = arith.constant 0 : index
    %c0_128 = arith.constant 0 : index
    %263 = vector.load %arg8[%c0_127, %c0_128] : memref<8x32xf32, #tpu.memory_space<vmem>>, vector<8x32xf32>
    %264 = arith.truncf %263 : vector<8x32xf32> to vector<8x32xbf16>
    %cst_129 = arith.constant dense<0.000000e+00> : vector<8x32xf32>
    %265 = tpu.matmul %264, %4, %cst_129 {dimension_numbers = #tpu.dot_dimension_numbers<[1], [0], [0], [1], [0, 0, 1, 1], [], []>} : vector<8x32xbf16>, vector<32x32xbf16>, vector<8x32xf32> -> vector<8x32xf32>
    %cst_130 = arith.constant dense<0.000000e+00> : vector<8x32xf32>
    %266 = tpu.matmul %264, %6, %cst_130 {dimension_numbers = #tpu.dot_dimension_numbers<[1], [0], [0], [1], [0, 0, 1, 1], [], []>} : vector<8x32xbf16>, vector<32x32xbf16>, vector<8x32xf32> -> vector<8x32xf32>
    %cst_131 = arith.constant dense<0.000000e+00> : vector<8x32xf32>
    %267 = tpu.matmul %264, %8, %cst_131 {dimension_numbers = #tpu.dot_dimension_numbers<[1], [0], [0], [1], [0, 0, 1, 1], [], []>} : vector<8x32xbf16>, vector<32x32xbf16>, vector<8x32xf32> -> vector<8x32xf32>
    %268 = vector.extract_strided_slice %262 {offsets = [0, 0, 0], sizes = [1, 8, 32], strides = [1, 1, 1]} : vector<3x8x32xf32> to vector<1x8x32xf32>
    %269 = vector.shape_cast %268 : vector<1x8x32xf32> to vector<8x32xf32>
    %270 = arith.addf %269, %265 : vector<8x32xf32>
    %271 = arith.negf %270 : vector<8x32xf32>
    %272 = math.exp %271 : vector<8x32xf32>
    %cst_132 = arith.constant 1.000000e+00 : f32
    %273 = vector.broadcast %cst_132 : f32 to vector<8x32xf32>
    %274 = arith.addf %273, %272 : vector<8x32xf32>
    %275 = arith.divf %273, %274 : vector<8x32xf32>
    %276 = vector.extract_strided_slice %262 {offsets = [1, 0, 0], sizes = [1, 8, 32], strides = [1, 1, 1]} : vector<3x8x32xf32> to vector<1x8x32xf32>
    %277 = vector.shape_cast %276 : vector<1x8x32xf32> to vector<8x32xf32>
    %278 = arith.addf %277, %266 : vector<8x32xf32>
    %279 = arith.negf %278 : vector<8x32xf32>
    %280 = math.exp %279 : vector<8x32xf32>
    %cst_133 = arith.constant 1.000000e+00 : f32
    %281 = vector.broadcast %cst_133 : f32 to vector<8x32xf32>
    %282 = arith.addf %281, %280 : vector<8x32xf32>
    %283 = arith.divf %281, %282 : vector<8x32xf32>
    %284 = vector.extract_strided_slice %262 {offsets = [2, 0, 0], sizes = [1, 8, 32], strides = [1, 1, 1]} : vector<3x8x32xf32> to vector<1x8x32xf32>
    %285 = vector.shape_cast %284 : vector<1x8x32xf32> to vector<8x32xf32>
    %286 = arith.addf %267, %12 : vector<8x32xf32>
    %287 = arith.mulf %275, %286 : vector<8x32xf32>
    %288 = arith.addf %285, %287 : vector<8x32xf32>
    %289 = math.tanh %288 : vector<8x32xf32>
    %cst_134 = arith.constant 1.000000e+00 : f32
    %290 = vector.broadcast %cst_134 : f32 to vector<8x32xf32>
    %291 = arith.subf %290, %283 : vector<8x32xf32>
    %292 = arith.mulf %291, %289 : vector<8x32xf32>
    %293 = arith.mulf %283, %263 : vector<8x32xf32>
    %294 = arith.addf %292, %293 : vector<8x32xf32>
    %295 = arith.addi %17, %256 : i32
    %296 = vector.broadcast %295 : i32 to vector<8x1xi32>
    %297 = arith.cmpi sgt, %13, %296 : vector<8x1xi32>
    %298 = vector.shape_cast %297 : vector<8x1xi1> to vector<8x1xi1>
    %299 = vector.broadcast %298 : vector<8x1xi1> to vector<8x32xi1>
    %300 = arith.select %299, %294, %263 : vector<8x32xi1>, vector<8x32xf32>
    %c0_135 = arith.constant 0 : index
    %c0_136 = arith.constant 0 : index
    %301 = vector.load %arg8[%c0_135, %c0_136] : memref<8x32xf32, #tpu.memory_space<vmem>>, vector<8x32xf32>
    tpu.vector_store %arg8[%c0_135, %c0_136], %300 {strides = array<i32>} : memref<8x32xf32, #tpu.memory_space<vmem>>, vector<8x32xf32>,
    %cst_137 = arith.constant 0.000000e+00 : f32
    %302 = vector.shape_cast %297 : vector<8x1xi1> to vector<8x1xi1>
    %303 = vector.broadcast %302 : vector<8x1xi1> to vector<8x32xi1>
    %304 = vector.broadcast %cst_137 : f32 to vector<8x32xf32>
    %305 = arith.select %303, %294, %304 : vector<8x32xi1>, vector<8x32xf32>
    %306 = arith.truncf %305 : vector<8x32xf32> to vector<8x32xbf16>
    %c0_i32_138 = arith.constant 0 : i32
    %c0_i32_139 = arith.constant 0 : i32
    %c0_i32_140 = arith.constant 0 : i32
    %307 = tpu.memref_slice %arg7[%c0_i32_18, %c0_i32_138, %c0_i32_139, %c0_i32_140] : memref<1x8x8x32xbf16, #tpu.memory_space<vmem>> -> memref<1x8x8x32xbf16, #tpu.memory_space<vmem>>
    %308 = tpu.memref_squeeze %307 : memref<1x8x8x32xbf16, #tpu.memory_space<vmem>> -> memref<8x8x32xbf16, #tpu.memory_space<vmem>>
    %309 = arith.index_cast %256 : i32 to index
    %c0_141 = arith.constant 0 : index
    %c0_142 = arith.constant 0 : index
    %310 = vector.load %308[%309, %c0_141, %c0_142] : memref<8x8x32xbf16, #tpu.memory_space<vmem>>, vector<1x8x32xbf16>
    %311 = vector.shape_cast %310 : vector<1x8x32xbf16> to vector<8x32xbf16>
    %312 = vector.shape_cast %306 : vector<8x32xbf16> to vector<1x8x32xbf16>
    tpu.vector_store %308[%309, %c0_141, %c0_142], %312 {strides = array<i32>} : memref<8x8x32xbf16, #tpu.memory_space<vmem>>, vector<1x8x32xbf16>,
    %c5_i32 = arith.constant 5 : i32
    %c0_i32_143 = arith.constant 0 : i32
    %313 = arith.cmpi eq, %arg0, %c0_i32_143 : i32
    %c7_i32_144 = arith.constant 7 : i32
    %314 = arith.subi %c7_i32_144, %c5_i32 : i32
    %315 = arith.select %313, %c5_i32, %314 : i32
    %c0_i32_145 = arith.constant 0 : i32
    %c0_i32_146 = arith.constant 0 : i32
    %c0_i32_147 = arith.constant 0 : i32
    %c0_i32_148 = arith.constant 0 : i32
    %316 = tpu.memref_slice %arg2[%c0_i32_17, %c0_i32_145, %c0_i32_146, %c0_i32_147, %c0_i32_148] : memref<1x8x3x8x32xbf16, #tpu.memory_space<vmem>> -> memref<1x8x3x8x32xbf16, #tpu.memory_space<vmem>>
    %317 = tpu.memref_squeeze %316 : memref<1x8x3x8x32xbf16, #tpu.memory_space<vmem>> -> memref<8x3x8x32xbf16, #tpu.memory_space<vmem>>
    %318 = arith.index_cast %315 : i32 to index
    %c0_149 = arith.constant 0 : index
    %c0_150 = arith.constant 0 : index
    %c0_151 = arith.constant 0 : index
    %319 = vector.load %317[%318, %c0_149, %c0_150, %c0_151] : memref<8x3x8x32xbf16, #tpu.memory_space<vmem>>, vector<1x3x8x32xbf16>
    %320 = vector.shape_cast %319 : vector<1x3x8x32xbf16> to vector<3x8x32xbf16>
    %321 = arith.extf %320 : vector<3x8x32xbf16> to vector<3x8x32xf32>
    %c0_152 = arith.constant 0 : index
    %c0_153 = arith.constant 0 : index
    %322 = vector.load %arg8[%c0_152, %c0_153] : memref<8x32xf32, #tpu.memory_space<vmem>>, vector<8x32xf32>
    %323 = arith.truncf %322 : vector<8x32xf32> to vector<8x32xbf16>
    %cst_154 = arith.constant dense<0.000000e+00> : vector<8x32xf32>
    %324 = tpu.matmul %323, %4, %cst_154 {dimension_numbers = #tpu.dot_dimension_numbers<[1], [0], [0], [1], [0, 0, 1, 1], [], []>} : vector<8x32xbf16>, vector<32x32xbf16>, vector<8x32xf32> -> vector<8x32xf32>
    %cst_155 = arith.constant dense<0.000000e+00> : vector<8x32xf32>
    %325 = tpu.matmul %323, %6, %cst_155 {dimension_numbers = #tpu.dot_dimension_numbers<[1], [0], [0], [1], [0, 0, 1, 1], [], []>} : vector<8x32xbf16>, vector<32x32xbf16>, vector<8x32xf32> -> vector<8x32xf32>
    %cst_156 = arith.constant dense<0.000000e+00> : vector<8x32xf32>
    %326 = tpu.matmul %323, %8, %cst_156 {dimension_numbers = #tpu.dot_dimension_numbers<[1], [0], [0], [1], [0, 0, 1, 1], [], []>} : vector<8x32xbf16>, vector<32x32xbf16>, vector<8x32xf32> -> vector<8x32xf32>
    %327 = vector.extract_strided_slice %321 {offsets = [0, 0, 0], sizes = [1, 8, 32], strides = [1, 1, 1]} : vector<3x8x32xf32> to vector<1x8x32xf32>
    %328 = vector.shape_cast %327 : vector<1x8x32xf32> to vector<8x32xf32>
    %329 = arith.addf %328, %324 : vector<8x32xf32>
    %330 = arith.negf %329 : vector<8x32xf32>
    %331 = math.exp %330 : vector<8x32xf32>
    %cst_157 = arith.constant 1.000000e+00 : f32
    %332 = vector.broadcast %cst_157 : f32 to vector<8x32xf32>
    %333 = arith.addf %332, %331 : vector<8x32xf32>
    %334 = arith.divf %332, %333 : vector<8x32xf32>
    %335 = vector.extract_strided_slice %321 {offsets = [1, 0, 0], sizes = [1, 8, 32], strides = [1, 1, 1]} : vector<3x8x32xf32> to vector<1x8x32xf32>
    %336 = vector.shape_cast %335 : vector<1x8x32xf32> to vector<8x32xf32>
    %337 = arith.addf %336, %325 : vector<8x32xf32>
    %338 = arith.negf %337 : vector<8x32xf32>
    %339 = math.exp %338 : vector<8x32xf32>
    %cst_158 = arith.constant 1.000000e+00 : f32
    %340 = vector.broadcast %cst_158 : f32 to vector<8x32xf32>
    %341 = arith.addf %340, %339 : vector<8x32xf32>
    %342 = arith.divf %340, %341 : vector<8x32xf32>
    %343 = vector.extract_strided_slice %321 {offsets = [2, 0, 0], sizes = [1, 8, 32], strides = [1, 1, 1]} : vector<3x8x32xf32> to vector<1x8x32xf32>
    %344 = vector.shape_cast %343 : vector<1x8x32xf32> to vector<8x32xf32>
    %345 = arith.addf %326, %12 : vector<8x32xf32>
    %346 = arith.mulf %334, %345 : vector<8x32xf32>
    %347 = arith.addf %344, %346 : vector<8x32xf32>
    %348 = math.tanh %347 : vector<8x32xf32>
    %cst_159 = arith.constant 1.000000e+00 : f32
    %349 = vector.broadcast %cst_159 : f32 to vector<8x32xf32>
    %350 = arith.subf %349, %342 : vector<8x32xf32>
    %351 = arith.mulf %350, %348 : vector<8x32xf32>
    %352 = arith.mulf %342, %322 : vector<8x32xf32>
    %353 = arith.addf %351, %352 : vector<8x32xf32>
    %354 = arith.addi %17, %315 : i32
    %355 = vector.broadcast %354 : i32 to vector<8x1xi32>
    %356 = arith.cmpi sgt, %13, %355 : vector<8x1xi32>
    %357 = vector.shape_cast %356 : vector<8x1xi1> to vector<8x1xi1>
    %358 = vector.broadcast %357 : vector<8x1xi1> to vector<8x32xi1>
    %359 = arith.select %358, %353, %322 : vector<8x32xi1>, vector<8x32xf32>
    %c0_160 = arith.constant 0 : index
    %c0_161 = arith.constant 0 : index
    %360 = vector.load %arg8[%c0_160, %c0_161] : memref<8x32xf32, #tpu.memory_space<vmem>>, vector<8x32xf32>
    tpu.vector_store %arg8[%c0_160, %c0_161], %359 {strides = array<i32>} : memref<8x32xf32, #tpu.memory_space<vmem>>, vector<8x32xf32>,
    %cst_162 = arith.constant 0.000000e+00 : f32
    %361 = vector.shape_cast %356 : vector<8x1xi1> to vector<8x1xi1>
    %362 = vector.broadcast %361 : vector<8x1xi1> to vector<8x32xi1>
    %363 = vector.broadcast %cst_162 : f32 to vector<8x32xf32>
    %364 = arith.select %362, %353, %363 : vector<8x32xi1>, vector<8x32xf32>
    %365 = arith.truncf %364 : vector<8x32xf32> to vector<8x32xbf16>
    %c0_i32_163 = arith.constant 0 : i32
    %c0_i32_164 = arith.constant 0 : i32
    %c0_i32_165 = arith.constant 0 : i32
    %366 = tpu.memref_slice %arg7[%c0_i32_18, %c0_i32_163, %c0_i32_164, %c0_i32_165] : memref<1x8x8x32xbf16, #tpu.memory_space<vmem>> -> memref<1x8x8x32xbf16, #tpu.memory_space<vmem>>
    %367 = tpu.memref_squeeze %366 : memref<1x8x8x32xbf16, #tpu.memory_space<vmem>> -> memref<8x8x32xbf16, #tpu.memory_space<vmem>>
    %368 = arith.index_cast %315 : i32 to index
    %c0_166 = arith.constant 0 : index
    %c0_167 = arith.constant 0 : index
    %369 = vector.load %367[%368, %c0_166, %c0_167] : memref<8x8x32xbf16, #tpu.memory_space<vmem>>, vector<1x8x32xbf16>
    %370 = vector.shape_cast %369 : vector<1x8x32xbf16> to vector<8x32xbf16>
    %371 = vector.shape_cast %365 : vector<8x32xbf16> to vector<1x8x32xbf16>
    tpu.vector_store %367[%368, %c0_166, %c0_167], %371 {strides = array<i32>} : memref<8x8x32xbf16, #tpu.memory_space<vmem>>, vector<1x8x32xbf16>,
    %c6_i32 = arith.constant 6 : i32
    %c0_i32_168 = arith.constant 0 : i32
    %372 = arith.cmpi eq, %arg0, %c0_i32_168 : i32
    %c7_i32_169 = arith.constant 7 : i32
    %373 = arith.subi %c7_i32_169, %c6_i32 : i32
    %374 = arith.select %372, %c6_i32, %373 : i32
    %c0_i32_170 = arith.constant 0 : i32
    %c0_i32_171 = arith.constant 0 : i32
    %c0_i32_172 = arith.constant 0 : i32
    %c0_i32_173 = arith.constant 0 : i32
    %375 = tpu.memref_slice %arg2[%c0_i32_17, %c0_i32_170, %c0_i32_171, %c0_i32_172, %c0_i32_173] : memref<1x8x3x8x32xbf16, #tpu.memory_space<vmem>> -> memref<1x8x3x8x32xbf16, #tpu.memory_space<vmem>>
    %376 = tpu.memref_squeeze %375 : memref<1x8x3x8x32xbf16, #tpu.memory_space<vmem>> -> memref<8x3x8x32xbf16, #tpu.memory_space<vmem>>
    %377 = arith.index_cast %374 : i32 to index
    %c0_174 = arith.constant 0 : index
    %c0_175 = arith.constant 0 : index
    %c0_176 = arith.constant 0 : index
    %378 = vector.load %376[%377, %c0_174, %c0_175, %c0_176] : memref<8x3x8x32xbf16, #tpu.memory_space<vmem>>, vector<1x3x8x32xbf16>
    %379 = vector.shape_cast %378 : vector<1x3x8x32xbf16> to vector<3x8x32xbf16>
    %380 = arith.extf %379 : vector<3x8x32xbf16> to vector<3x8x32xf32>
    %c0_177 = arith.constant 0 : index
    %c0_178 = arith.constant 0 : index
    %381 = vector.load %arg8[%c0_177, %c0_178] : memref<8x32xf32, #tpu.memory_space<vmem>>, vector<8x32xf32>
    %382 = arith.truncf %381 : vector<8x32xf32> to vector<8x32xbf16>
    %cst_179 = arith.constant dense<0.000000e+00> : vector<8x32xf32>
    %383 = tpu.matmul %382, %4, %cst_179 {dimension_numbers = #tpu.dot_dimension_numbers<[1], [0], [0], [1], [0, 0, 1, 1], [], []>} : vector<8x32xbf16>, vector<32x32xbf16>, vector<8x32xf32> -> vector<8x32xf32>
    %cst_180 = arith.constant dense<0.000000e+00> : vector<8x32xf32>
    %384 = tpu.matmul %382, %6, %cst_180 {dimension_numbers = #tpu.dot_dimension_numbers<[1], [0], [0], [1], [0, 0, 1, 1], [], []>} : vector<8x32xbf16>, vector<32x32xbf16>, vector<8x32xf32> -> vector<8x32xf32>
    %cst_181 = arith.constant dense<0.000000e+00> : vector<8x32xf32>
    %385 = tpu.matmul %382, %8, %cst_181 {dimension_numbers = #tpu.dot_dimension_numbers<[1], [0], [0], [1], [0, 0, 1, 1], [], []>} : vector<8x32xbf16>, vector<32x32xbf16>, vector<8x32xf32> -> vector<8x32xf32>
    %386 = vector.extract_strided_slice %380 {offsets = [0, 0, 0], sizes = [1, 8, 32], strides = [1, 1, 1]} : vector<3x8x32xf32> to vector<1x8x32xf32>
    %387 = vector.shape_cast %386 : vector<1x8x32xf32> to vector<8x32xf32>
    %388 = arith.addf %387, %383 : vector<8x32xf32>
    %389 = arith.negf %388 : vector<8x32xf32>
    %390 = math.exp %389 : vector<8x32xf32>
    %cst_182 = arith.constant 1.000000e+00 : f32
    %391 = vector.broadcast %cst_182 : f32 to vector<8x32xf32>
    %392 = arith.addf %391, %390 : vector<8x32xf32>
    %393 = arith.divf %391, %392 : vector<8x32xf32>
    %394 = vector.extract_strided_slice %380 {offsets = [1, 0, 0], sizes = [1, 8, 32], strides = [1, 1, 1]} : vector<3x8x32xf32> to vector<1x8x32xf32>
    %395 = vector.shape_cast %394 : vector<1x8x32xf32> to vector<8x32xf32>
    %396 = arith.addf %395, %384 : vector<8x32xf32>
    %397 = arith.negf %396 : vector<8x32xf32>
    %398 = math.exp %397 : vector<8x32xf32>
    %cst_183 = arith.constant 1.000000e+00 : f32
    %399 = vector.broadcast %cst_183 : f32 to vector<8x32xf32>
    %400 = arith.addf %399, %398 : vector<8x32xf32>
    %401 = arith.divf %399, %400 : vector<8x32xf32>
    %402 = vector.extract_strided_slice %380 {offsets = [2, 0, 0], sizes = [1, 8, 32], strides = [1, 1, 1]} : vector<3x8x32xf32> to vector<1x8x32xf32>
    %403 = vector.shape_cast %402 : vector<1x8x32xf32> to vector<8x32xf32>
    %404 = arith.addf %385, %12 : vector<8x32xf32>
    %405 = arith.mulf %393, %404 : vector<8x32xf32>
    %406 = arith.addf %403, %405 : vector<8x32xf32>
    %407 = math.tanh %406 : vector<8x32xf32>
    %cst_184 = arith.constant 1.000000e+00 : f32
    %408 = vector.broadcast %cst_184 : f32 to vector<8x32xf32>
    %409 = arith.subf %408, %401 : vector<8x32xf32>
    %410 = arith.mulf %409, %407 : vector<8x32xf32>
    %411 = arith.mulf %401, %381 : vector<8x32xf32>
    %412 = arith.addf %410, %411 : vector<8x32xf32>
    %413 = arith.addi %17, %374 : i32
    %414 = vector.broadcast %413 : i32 to vector<8x1xi32>
    %415 = arith.cmpi sgt, %13, %414 : vector<8x1xi32>
    %416 = vector.shape_cast %415 : vector<8x1xi1> to vector<8x1xi1>
    %417 = vector.broadcast %416 : vector<8x1xi1> to vector<8x32xi1>
    %418 = arith.select %417, %412, %381 : vector<8x32xi1>, vector<8x32xf32>
    %c0_185 = arith.constant 0 : index
    %c0_186 = arith.constant 0 : index
    %419 = vector.load %arg8[%c0_185, %c0_186] : memref<8x32xf32, #tpu.memory_space<vmem>>, vector<8x32xf32>
    tpu.vector_store %arg8[%c0_185, %c0_186], %418 {strides = array<i32>} : memref<8x32xf32, #tpu.memory_space<vmem>>, vector<8x32xf32>,
    %cst_187 = arith.constant 0.000000e+00 : f32
    %420 = vector.shape_cast %415 : vector<8x1xi1> to vector<8x1xi1>
    %421 = vector.broadcast %420 : vector<8x1xi1> to vector<8x32xi1>
    %422 = vector.broadcast %cst_187 : f32 to vector<8x32xf32>
    %423 = arith.select %421, %412, %422 : vector<8x32xi1>, vector<8x32xf32>
    %424 = arith.truncf %423 : vector<8x32xf32> to vector<8x32xbf16>
    %c0_i32_188 = arith.constant 0 : i32
    %c0_i32_189 = arith.constant 0 : i32
    %c0_i32_190 = arith.constant 0 : i32
    %425 = tpu.memref_slice %arg7[%c0_i32_18, %c0_i32_188, %c0_i32_189, %c0_i32_190] : memref<1x8x8x32xbf16, #tpu.memory_space<vmem>> -> memref<1x8x8x32xbf16, #tpu.memory_space<vmem>>
    %426 = tpu.memref_squeeze %425 : memref<1x8x8x32xbf16, #tpu.memory_space<vmem>> -> memref<8x8x32xbf16, #tpu.memory_space<vmem>>
    %427 = arith.index_cast %374 : i32 to index
    %c0_191 = arith.constant 0 : index
    %c0_192 = arith.constant 0 : index
    %428 = vector.load %426[%427, %c0_191, %c0_192] : memref<8x8x32xbf16, #tpu.memory_space<vmem>>, vector<1x8x32xbf16>
    %429 = vector.shape_cast %428 : vector<1x8x32xbf16> to vector<8x32xbf16>
    %430 = vector.shape_cast %424 : vector<8x32xbf16> to vector<1x8x32xbf16>
    tpu.vector_store %426[%427, %c0_191, %c0_192], %430 {strides = array<i32>} : memref<8x8x32xbf16, #tpu.memory_space<vmem>>, vector<1x8x32xbf16>,
    %c7_i32_193 = arith.constant 7 : i32
    %c0_i32_194 = arith.constant 0 : i32
    %431 = arith.cmpi eq, %arg0, %c0_i32_194 : i32
    %c7_i32_195 = arith.constant 7 : i32
    %432 = arith.subi %c7_i32_195, %c7_i32_193 : i32
    %433 = arith.select %431, %c7_i32_193, %432 : i32
    %c0_i32_196 = arith.constant 0 : i32
    %c0_i32_197 = arith.constant 0 : i32
    %c0_i32_198 = arith.constant 0 : i32
    %c0_i32_199 = arith.constant 0 : i32
    %434 = tpu.memref_slice %arg2[%c0_i32_17, %c0_i32_196, %c0_i32_197, %c0_i32_198, %c0_i32_199] : memref<1x8x3x8x32xbf16, #tpu.memory_space<vmem>> -> memref<1x8x3x8x32xbf16, #tpu.memory_space<vmem>>
    %435 = tpu.memref_squeeze %434 : memref<1x8x3x8x32xbf16, #tpu.memory_space<vmem>> -> memref<8x3x8x32xbf16, #tpu.memory_space<vmem>>
    %436 = arith.index_cast %433 : i32 to index
    %c0_200 = arith.constant 0 : index
    %c0_201 = arith.constant 0 : index
    %c0_202 = arith.constant 0 : index
    %437 = vector.load %435[%436, %c0_200, %c0_201, %c0_202] : memref<8x3x8x32xbf16, #tpu.memory_space<vmem>>, vector<1x3x8x32xbf16>
    %438 = vector.shape_cast %437 : vector<1x3x8x32xbf16> to vector<3x8x32xbf16>
    %439 = arith.extf %438 : vector<3x8x32xbf16> to vector<3x8x32xf32>
    %c0_203 = arith.constant 0 : index
    %c0_204 = arith.constant 0 : index
    %440 = vector.load %arg8[%c0_203, %c0_204] : memref<8x32xf32, #tpu.memory_space<vmem>>, vector<8x32xf32>
    %441 = arith.truncf %440 : vector<8x32xf32> to vector<8x32xbf16>
    %cst_205 = arith.constant dense<0.000000e+00> : vector<8x32xf32>
    %442 = tpu.matmul %441, %4, %cst_205 {dimension_numbers = #tpu.dot_dimension_numbers<[1], [0], [0], [1], [0, 0, 1, 1], [], []>} : vector<8x32xbf16>, vector<32x32xbf16>, vector<8x32xf32> -> vector<8x32xf32>
    %cst_206 = arith.constant dense<0.000000e+00> : vector<8x32xf32>
    %443 = tpu.matmul %441, %6, %cst_206 {dimension_numbers = #tpu.dot_dimension_numbers<[1], [0], [0], [1], [0, 0, 1, 1], [], []>} : vector<8x32xbf16>, vector<32x32xbf16>, vector<8x32xf32> -> vector<8x32xf32>
    %cst_207 = arith.constant dense<0.000000e+00> : vector<8x32xf32>
    %444 = tpu.matmul %441, %8, %cst_207 {dimension_numbers = #tpu.dot_dimension_numbers<[1], [0], [0], [1], [0, 0, 1, 1], [], []>} : vector<8x32xbf16>, vector<32x32xbf16>, vector<8x32xf32> -> vector<8x32xf32>
    %445 = vector.extract_strided_slice %439 {offsets = [0, 0, 0], sizes = [1, 8, 32], strides = [1, 1, 1]} : vector<3x8x32xf32> to vector<1x8x32xf32>
    %446 = vector.shape_cast %445 : vector<1x8x32xf32> to vector<8x32xf32>
    %447 = arith.addf %446, %442 : vector<8x32xf32>
    %448 = arith.negf %447 : vector<8x32xf32>
    %449 = math.exp %448 : vector<8x32xf32>
    %cst_208 = arith.constant 1.000000e+00 : f32
    %450 = vector.broadcast %cst_208 : f32 to vector<8x32xf32>
    %451 = arith.addf %450, %449 : vector<8x32xf32>
    %452 = arith.divf %450, %451 : vector<8x32xf32>
    %453 = vector.extract_strided_slice %439 {offsets = [1, 0, 0], sizes = [1, 8, 32], strides = [1, 1, 1]} : vector<3x8x32xf32> to vector<1x8x32xf32>
    %454 = vector.shape_cast %453 : vector<1x8x32xf32> to vector<8x32xf32>
    %455 = arith.addf %454, %443 : vector<8x32xf32>
    %456 = arith.negf %455 : vector<8x32xf32>
    %457 = math.exp %456 : vector<8x32xf32>
    %cst_209 = arith.constant 1.000000e+00 : f32
    %458 = vector.broadcast %cst_209 : f32 to vector<8x32xf32>
    %459 = arith.addf %458, %457 : vector<8x32xf32>
    %460 = arith.divf %458, %459 : vector<8x32xf32>
    %461 = vector.extract_strided_slice %439 {offsets = [2, 0, 0], sizes = [1, 8, 32], strides = [1, 1, 1]} : vector<3x8x32xf32> to vector<1x8x32xf32>
    %462 = vector.shape_cast %461 : vector<1x8x32xf32> to vector<8x32xf32>
    %463 = arith.addf %444, %12 : vector<8x32xf32>
    %464 = arith.mulf %452, %463 : vector<8x32xf32>
    %465 = arith.addf %462, %464 : vector<8x32xf32>
    %466 = math.tanh %465 : vector<8x32xf32>
    %cst_210 = arith.constant 1.000000e+00 : f32
    %467 = vector.broadcast %cst_210 : f32 to vector<8x32xf32>
    %468 = arith.subf %467, %460 : vector<8x32xf32>
    %469 = arith.mulf %468, %466 : vector<8x32xf32>
    %470 = arith.mulf %460, %440 : vector<8x32xf32>
    %471 = arith.addf %469, %470 : vector<8x32xf32>
    %472 = arith.addi %17, %433 : i32
    %473 = vector.broadcast %472 : i32 to vector<8x1xi32>
    %474 = arith.cmpi sgt, %13, %473 : vector<8x1xi32>
    %475 = vector.shape_cast %474 : vector<8x1xi1> to vector<8x1xi1>
    %476 = vector.broadcast %475 : vector<8x1xi1> to vector<8x32xi1>
    %477 = arith.select %476, %471, %440 : vector<8x32xi1>, vector<8x32xf32>
    %c0_211 = arith.constant 0 : index
    %c0_212 = arith.constant 0 : index
    %478 = vector.load %arg8[%c0_211, %c0_212] : memref<8x32xf32, #tpu.memory_space<vmem>>, vector<8x32xf32>
    tpu.vector_store %arg8[%c0_211, %c0_212], %477 {strides = array<i32>} : memref<8x32xf32, #tpu.memory_space<vmem>>, vector<8x32xf32>,
    %cst_213 = arith.constant 0.000000e+00 : f32
    %479 = vector.shape_cast %474 : vector<8x1xi1> to vector<8x1xi1>
    %480 = vector.broadcast %479 : vector<8x1xi1> to vector<8x32xi1>
    %481 = vector.broadcast %cst_213 : f32 to vector<8x32xf32>
    %482 = arith.select %480, %471, %481 : vector<8x32xi1>, vector<8x32xf32>
    %483 = arith.truncf %482 : vector<8x32xf32> to vector<8x32xbf16>
    %c0_i32_214 = arith.constant 0 : i32
    %c0_i32_215 = arith.constant 0 : i32
    %c0_i32_216 = arith.constant 0 : i32
    %484 = tpu.memref_slice %arg7[%c0_i32_18, %c0_i32_214, %c0_i32_215, %c0_i32_216] : memref<1x8x8x32xbf16, #tpu.memory_space<vmem>> -> memref<1x8x8x32xbf16, #tpu.memory_space<vmem>>
    %485 = tpu.memref_squeeze %484 : memref<1x8x8x32xbf16, #tpu.memory_space<vmem>> -> memref<8x8x32xbf16, #tpu.memory_space<vmem>>
    %486 = arith.index_cast %433 : i32 to index
    %c0_217 = arith.constant 0 : index
    %c0_218 = arith.constant 0 : index
    %487 = vector.load %485[%486, %c0_217, %c0_218] : memref<8x8x32xbf16, #tpu.memory_space<vmem>>, vector<1x8x32xbf16>
    %488 = vector.shape_cast %487 : vector<1x8x32xbf16> to vector<8x32xbf16>
    %489 = vector.shape_cast %483 : vector<8x32xbf16> to vector<1x8x32xbf16>
    tpu.vector_store %485[%486, %c0_217, %c0_218], %489 {strides = array<i32>} : memref<8x8x32xbf16, #tpu.memory_space<vmem>>, vector<1x8x32xbf16>,
    %c8_i32_219 = arith.constant 8 : i32
    return
  }
  func.func @transform_0(%arg0: i32, %arg1: i32) -> (i32, i32, i32, i32, i32) {
    %c1_i32 = arith.constant 1 : i32
    %0 = arith.subi %c1_i32, %arg0 : i32
    %1 = arith.muli %0, %arg1 : i32
    %c0_i32 = arith.constant 0 : i32
    %2 = arith.subi %c0_i32, %arg1 : i32
    %3 = arith.muli %arg0, %2 : i32
    %4 = arith.addi %1, %3 : i32
    %c0_i32_0 = arith.constant 0 : i32
    %c0_i32_1 = arith.constant 0 : i32
    %c0_i32_2 = arith.constant 0 : i32
    %c0_i32_3 = arith.constant 0 : i32
    return %arg0, %4, %c0_i32_0, %c0_i32_1, %c0_i32_2 : i32, i32, i32, i32, i32
  }
  func.func @transform_1(%arg0: i32, %arg1: i32) -> (i32, i32, i32, i32) {
    %c0_i32 = arith.constant 0 : i32
    %c0_i32_0 = arith.constant 0 : i32
    %c0_i32_1 = arith.constant 0 : i32
    %c0_i32_2 = arith.constant 0 : i32
    return %arg0, %c0_i32, %c0_i32_0, %c0_i32_1 : i32, i32, i32, i32
  }
  func.func @transform_2(%arg0: i32, %arg1: i32) -> (i32, i32, i32) {
    %c0_i32 = arith.constant 0 : i32
    %c0_i32_0 = arith.constant 0 : i32
    %c0_i32_1 = arith.constant 0 : i32
    return %arg0, %c0_i32, %c0_i32_0 : i32, i32, i32
  }
  func.func @transform_3(%arg0: i32, %arg1: i32) -> (i32, i32, i32) {
    %c0_i32 = arith.constant 0 : i32
    %c0_i32_0 = arith.constant 0 : i32
    %c0_i32_1 = arith.constant 0 : i32
    return %arg0, %c0_i32, %c0_i32_0 : i32, i32, i32
  }
  func.func @transform_4(%arg0: i32, %arg1: i32) -> (i32, i32) {
    %c0_i32 = arith.constant 0 : i32
    %c0_i32_0 = arith.constant 0 : i32
    %c0_i32_1 = arith.constant 0 : i32
    return %c0_i32, %c0_i32_0 : i32, i32
  }
  func.func @transform_5(%arg0: i32, %arg1: i32) -> (i32, i32, i32, i32) {
    %c1_i32 = arith.constant 1 : i32
    %0 = arith.subi %c1_i32, %arg0 : i32
    %1 = arith.muli %0, %arg1 : i32
    %c0_i32 = arith.constant 0 : i32
    %2 = arith.subi %c0_i32, %arg1 : i32
    %3 = arith.muli %arg0, %2 : i32
    %4 = arith.addi %1, %3 : i32
    %c0_i32_0 = arith.constant 0 : i32
    %c0_i32_1 = arith.constant 0 : i32
    %c0_i32_2 = arith.constant 0 : i32
    return %arg0, %4, %c0_i32_0, %c0_i32_1 : i32, i32, i32, i32
  }
}

module attributes {stable_mosaic.version = 11 : i64} {
  func.func @_bidir_gru_kernel(%arg0: i32, %arg1: i32, %arg2: memref<1x8x3x8x32xbf16, #tpu.memory_space<vmem>>, %arg3: memref<1x3x32x32xbf16, #tpu.memory_space<vmem>>, %arg4: memref<1x1x32xf32, #tpu.memory_space<vmem>>, %arg5: memref<1x8x32xf32, #tpu.memory_space<vmem>>, %arg6: memref<8x1xi32, #tpu.memory_space<vmem>>, %arg7: memref<1x8x8x32xf32, #tpu.memory_space<vmem>>, %arg8: memref<8x32xf32, #tpu.memory_space<vmem>>) attributes {dimension_semantics = [#tpu.dimension_semantics<parallel>, #tpu.dimension_semantics<arbitrary>], iteration_bounds = array<i64: 2, 1>, scalar_prefetch = 0 : i64, scratch_operands = 1 : i64, tpu.core_type = #tpu.core_type<tc>, window_params = [{transform_indices = @transform_0, window_bounds = array<i64: 1, 8, 3, 8, 32>}, {transform_indices = @transform_1, window_bounds = array<i64: 1, 3, 32, 32>}, {transform_indices = @transform_2, window_bounds = array<i64: 1, 1, 32>}, {transform_indices = @transform_3, window_bounds = array<i64: 1, 8, 32>}, {pipeline_mode = #tpu.pipeline_mode<synchronous>, transform_indices = @transform_4, window_bounds = array<i64: 8, 1>}, {transform_indices = @transform_5, window_bounds = array<i64: 1, 8, 8, 32>}]} {
    %c0_i32 = arith.constant 0 : i32
    %0 = arith.cmpi eq, %arg1, %c0_i32 : i32
    %1 = arith.extui %0 : i1 to i32
    %c0_i32_0 = arith.constant 0 : i32
    %2 = arith.cmpi ne, %1, %c0_i32_0 : i32
    scf.if %2 {
      %c0_220 = arith.constant 0 : index
      %c0_221 = arith.constant 0 : index
      %c0_222 = arith.constant 0 : index
      %482 = vector.load %arg5[%c0_220, %c0_221, %c0_222] : memref<1x8x32xf32, #tpu.memory_space<vmem>>, vector<1x8x32xf32>
      %483 = vector.shape_cast %482 : vector<1x8x32xf32> to vector<8x32xf32>
      %c0_223 = arith.constant 0 : index
      %c0_224 = arith.constant 0 : index
      %484 = vector.load %arg8[%c0_223, %c0_224] : memref<8x32xf32, #tpu.memory_space<vmem>>, vector<8x32xf32>
      tpu.vector_store %arg8[%c0_223, %c0_224], %483 {strides = array<i32>} : memref<8x32xf32, #tpu.memory_space<vmem>>, vector<8x32xf32>,
    } else {
    }
    %c0 = arith.constant 0 : index
    %c0_1 = arith.constant 0 : index
    %c0_2 = arith.constant 0 : index
    %c0_3 = arith.constant 0 : index
    %3 = vector.load %arg3[%c0, %c0_1, %c0_2, %c0_3] : memref<1x3x32x32xbf16, #tpu.memory_space<vmem>>, vector<1x1x32x32xbf16>
    %4 = vector.shape_cast %3 : vector<1x1x32x32xbf16> to vector<32x32xbf16>
    %c0_4 = arith.constant 0 : index
    %c1 = arith.constant 1 : index
    %c0_5 = arith.constant 0 : index
    %c0_6 = arith.constant 0 : index
    %5 = vector.load %arg3[%c0_4, %c1, %c0_5, %c0_6] : memref<1x3x32x32xbf16, #tpu.memory_space<vmem>>, vector<1x1x32x32xbf16>
    %6 = vector.shape_cast %5 : vector<1x1x32x32xbf16> to vector<32x32xbf16>
    %c0_7 = arith.constant 0 : index
    %c2 = arith.constant 2 : index
    %c0_8 = arith.constant 0 : index
    %c0_9 = arith.constant 0 : index
    %7 = vector.load %arg3[%c0_7, %c2, %c0_8, %c0_9] : memref<1x3x32x32xbf16, #tpu.memory_space<vmem>>, vector<1x1x32x32xbf16>
    %8 = vector.shape_cast %7 : vector<1x1x32x32xbf16> to vector<32x32xbf16>
    %c0_10 = arith.constant 0 : index
    %c0_11 = arith.constant 0 : index
    %c0_12 = arith.constant 0 : index
    %9 = vector.load %arg4[%c0_10, %c0_11, %c0_12] : memref<1x1x32xf32, #tpu.memory_space<vmem>>, vector<1x1x32xf32>
    %10 = vector.shape_cast %9 : vector<1x1x32xf32> to vector<1x32xf32>
    %11 = vector.shape_cast %10 : vector<1x32xf32> to vector<1x32xf32>
    %12 = vector.broadcast %11 : vector<1x32xf32> to vector<8x32xf32>
    %c0_13 = arith.constant 0 : index
    %c0_14 = arith.constant 0 : index
    %13 = vector.load %arg6[%c0_13, %c0_14] : memref<8x1xi32, #tpu.memory_space<vmem>>, vector<8x1xi32>
    %c0_i32_15 = arith.constant 0 : i32
    %14 = arith.cmpi eq, %arg0, %c0_i32_15 : i32
    %c0_i32_16 = arith.constant 0 : i32
    %15 = arith.subi %c0_i32_16, %arg1 : i32
    %16 = arith.select %14, %arg1, %15 : i32
    %c8_i32 = arith.constant 8 : i32
    %17 = arith.muli %16, %c8_i32 : i32
    %c0_i32_17 = arith.constant 0 : i32
    %c0_i32_18 = arith.constant 0 : i32
    %c0_i32_19 = arith.constant 0 : i32
    %c0_i32_20 = arith.constant 0 : i32
    %18 = arith.cmpi eq, %arg0, %c0_i32_20 : i32
    %c7_i32 = arith.constant 7 : i32
    %19 = arith.subi %c7_i32, %c0_i32_19 : i32
    %20 = arith.select %18, %c0_i32_19, %19 : i32
    %c0_i32_21 = arith.constant 0 : i32
    %c0_i32_22 = arith.constant 0 : i32
    %c0_i32_23 = arith.constant 0 : i32
    %c0_i32_24 = arith.constant 0 : i32
    %21 = tpu.memref_slice %arg2[%c0_i32_17, %c0_i32_21, %c0_i32_22, %c0_i32_23, %c0_i32_24] : memref<1x8x3x8x32xbf16, #tpu.memory_space<vmem>> -> memref<1x8x3x8x32xbf16, #tpu.memory_space<vmem>>
    %22 = tpu.memref_squeeze %21 : memref<1x8x3x8x32xbf16, #tpu.memory_space<vmem>> -> memref<8x3x8x32xbf16, #tpu.memory_space<vmem>>
    %23 = arith.index_cast %20 : i32 to index
    %c0_25 = arith.constant 0 : index
    %c0_26 = arith.constant 0 : index
    %c0_27 = arith.constant 0 : index
    %24 = vector.load %22[%23, %c0_25, %c0_26, %c0_27] : memref<8x3x8x32xbf16, #tpu.memory_space<vmem>>, vector<1x3x8x32xbf16>
    %25 = vector.shape_cast %24 : vector<1x3x8x32xbf16> to vector<3x8x32xbf16>
    %26 = arith.extf %25 : vector<3x8x32xbf16> to vector<3x8x32xf32>
    %c0_28 = arith.constant 0 : index
    %c0_29 = arith.constant 0 : index
    %27 = vector.load %arg8[%c0_28, %c0_29] : memref<8x32xf32, #tpu.memory_space<vmem>>, vector<8x32xf32>
    %28 = arith.truncf %27 : vector<8x32xf32> to vector<8x32xbf16>
    %cst = arith.constant dense<0.000000e+00> : vector<8x32xf32>
    %29 = tpu.matmul %28, %4, %cst {dimension_numbers = #tpu.dot_dimension_numbers<[1], [0], [0], [1], [0, 0, 1, 1], [], []>} : vector<8x32xbf16>, vector<32x32xbf16>, vector<8x32xf32> -> vector<8x32xf32>
    %cst_30 = arith.constant dense<0.000000e+00> : vector<8x32xf32>
    %30 = tpu.matmul %28, %6, %cst_30 {dimension_numbers = #tpu.dot_dimension_numbers<[1], [0], [0], [1], [0, 0, 1, 1], [], []>} : vector<8x32xbf16>, vector<32x32xbf16>, vector<8x32xf32> -> vector<8x32xf32>
    %cst_31 = arith.constant dense<0.000000e+00> : vector<8x32xf32>
    %31 = tpu.matmul %28, %8, %cst_31 {dimension_numbers = #tpu.dot_dimension_numbers<[1], [0], [0], [1], [0, 0, 1, 1], [], []>} : vector<8x32xbf16>, vector<32x32xbf16>, vector<8x32xf32> -> vector<8x32xf32>
    %32 = vector.extract_strided_slice %26 {offsets = [0, 0, 0], sizes = [1, 8, 32], strides = [1, 1, 1]} : vector<3x8x32xf32> to vector<1x8x32xf32>
    %33 = vector.shape_cast %32 : vector<1x8x32xf32> to vector<8x32xf32>
    %34 = arith.addf %33, %29 : vector<8x32xf32>
    %35 = arith.negf %34 : vector<8x32xf32>
    %36 = math.exp %35 : vector<8x32xf32>
    %cst_32 = arith.constant 1.000000e+00 : f32
    %37 = vector.broadcast %cst_32 : f32 to vector<8x32xf32>
    %38 = arith.addf %37, %36 : vector<8x32xf32>
    %39 = arith.divf %37, %38 : vector<8x32xf32>
    %40 = vector.extract_strided_slice %26 {offsets = [1, 0, 0], sizes = [1, 8, 32], strides = [1, 1, 1]} : vector<3x8x32xf32> to vector<1x8x32xf32>
    %41 = vector.shape_cast %40 : vector<1x8x32xf32> to vector<8x32xf32>
    %42 = arith.addf %41, %30 : vector<8x32xf32>
    %43 = arith.negf %42 : vector<8x32xf32>
    %44 = math.exp %43 : vector<8x32xf32>
    %cst_33 = arith.constant 1.000000e+00 : f32
    %45 = vector.broadcast %cst_33 : f32 to vector<8x32xf32>
    %46 = arith.addf %45, %44 : vector<8x32xf32>
    %47 = arith.divf %45, %46 : vector<8x32xf32>
    %48 = vector.extract_strided_slice %26 {offsets = [2, 0, 0], sizes = [1, 8, 32], strides = [1, 1, 1]} : vector<3x8x32xf32> to vector<1x8x32xf32>
    %49 = vector.shape_cast %48 : vector<1x8x32xf32> to vector<8x32xf32>
    %50 = arith.addf %31, %12 : vector<8x32xf32>
    %51 = arith.mulf %39, %50 : vector<8x32xf32>
    %52 = arith.addf %49, %51 : vector<8x32xf32>
    %53 = math.tanh %52 : vector<8x32xf32>
    %cst_34 = arith.constant 1.000000e+00 : f32
    %54 = vector.broadcast %cst_34 : f32 to vector<8x32xf32>
    %55 = arith.subf %54, %47 : vector<8x32xf32>
    %56 = arith.mulf %55, %53 : vector<8x32xf32>
    %57 = arith.mulf %47, %27 : vector<8x32xf32>
    %58 = arith.addf %56, %57 : vector<8x32xf32>
    %59 = arith.addi %17, %20 : i32
    %60 = vector.broadcast %59 : i32 to vector<8x1xi32>
    %61 = arith.cmpi sgt, %13, %60 : vector<8x1xi32>
    %62 = vector.shape_cast %61 : vector<8x1xi1> to vector<8x1xi1>
    %63 = vector.broadcast %62 : vector<8x1xi1> to vector<8x32xi1>
    %64 = arith.select %63, %58, %27 : vector<8x32xi1>, vector<8x32xf32>
    %c0_35 = arith.constant 0 : index
    %c0_36 = arith.constant 0 : index
    %65 = vector.load %arg8[%c0_35, %c0_36] : memref<8x32xf32, #tpu.memory_space<vmem>>, vector<8x32xf32>
    tpu.vector_store %arg8[%c0_35, %c0_36], %64 {strides = array<i32>} : memref<8x32xf32, #tpu.memory_space<vmem>>, vector<8x32xf32>,
    %cst_37 = arith.constant 0.000000e+00 : f32
    %66 = vector.shape_cast %61 : vector<8x1xi1> to vector<8x1xi1>
    %67 = vector.broadcast %66 : vector<8x1xi1> to vector<8x32xi1>
    %68 = vector.broadcast %cst_37 : f32 to vector<8x32xf32>
    %69 = arith.select %67, %58, %68 : vector<8x32xi1>, vector<8x32xf32>
    %c0_i32_38 = arith.constant 0 : i32
    %c0_i32_39 = arith.constant 0 : i32
    %c0_i32_40 = arith.constant 0 : i32
    %70 = tpu.memref_slice %arg7[%c0_i32_18, %c0_i32_38, %c0_i32_39, %c0_i32_40] : memref<1x8x8x32xf32, #tpu.memory_space<vmem>> -> memref<1x8x8x32xf32, #tpu.memory_space<vmem>>
    %71 = tpu.memref_squeeze %70 : memref<1x8x8x32xf32, #tpu.memory_space<vmem>> -> memref<8x8x32xf32, #tpu.memory_space<vmem>>
    %72 = arith.index_cast %20 : i32 to index
    %c0_41 = arith.constant 0 : index
    %c0_42 = arith.constant 0 : index
    %73 = vector.load %71[%72, %c0_41, %c0_42] : memref<8x8x32xf32, #tpu.memory_space<vmem>>, vector<1x8x32xf32>
    %74 = vector.shape_cast %73 : vector<1x8x32xf32> to vector<8x32xf32>
    %75 = vector.shape_cast %69 : vector<8x32xf32> to vector<1x8x32xf32>
    tpu.vector_store %71[%72, %c0_41, %c0_42], %75 {strides = array<i32>} : memref<8x8x32xf32, #tpu.memory_space<vmem>>, vector<1x8x32xf32>,
    %c1_i32 = arith.constant 1 : i32
    %c0_i32_43 = arith.constant 0 : i32
    %76 = arith.cmpi eq, %arg0, %c0_i32_43 : i32
    %c7_i32_44 = arith.constant 7 : i32
    %77 = arith.subi %c7_i32_44, %c1_i32 : i32
    %78 = arith.select %76, %c1_i32, %77 : i32
    %c0_i32_45 = arith.constant 0 : i32
    %c0_i32_46 = arith.constant 0 : i32
    %c0_i32_47 = arith.constant 0 : i32
    %c0_i32_48 = arith.constant 0 : i32
    %79 = tpu.memref_slice %arg2[%c0_i32_17, %c0_i32_45, %c0_i32_46, %c0_i32_47, %c0_i32_48] : memref<1x8x3x8x32xbf16, #tpu.memory_space<vmem>> -> memref<1x8x3x8x32xbf16, #tpu.memory_space<vmem>>
    %80 = tpu.memref_squeeze %79 : memref<1x8x3x8x32xbf16, #tpu.memory_space<vmem>> -> memref<8x3x8x32xbf16, #tpu.memory_space<vmem>>
    %81 = arith.index_cast %78 : i32 to index
    %c0_49 = arith.constant 0 : index
    %c0_50 = arith.constant 0 : index
    %c0_51 = arith.constant 0 : index
    %82 = vector.load %80[%81, %c0_49, %c0_50, %c0_51] : memref<8x3x8x32xbf16, #tpu.memory_space<vmem>>, vector<1x3x8x32xbf16>
    %83 = vector.shape_cast %82 : vector<1x3x8x32xbf16> to vector<3x8x32xbf16>
    %84 = arith.extf %83 : vector<3x8x32xbf16> to vector<3x8x32xf32>
    %c0_52 = arith.constant 0 : index
    %c0_53 = arith.constant 0 : index
    %85 = vector.load %arg8[%c0_52, %c0_53] : memref<8x32xf32, #tpu.memory_space<vmem>>, vector<8x32xf32>
    %86 = arith.truncf %85 : vector<8x32xf32> to vector<8x32xbf16>
    %cst_54 = arith.constant dense<0.000000e+00> : vector<8x32xf32>
    %87 = tpu.matmul %86, %4, %cst_54 {dimension_numbers = #tpu.dot_dimension_numbers<[1], [0], [0], [1], [0, 0, 1, 1], [], []>} : vector<8x32xbf16>, vector<32x32xbf16>, vector<8x32xf32> -> vector<8x32xf32>
    %cst_55 = arith.constant dense<0.000000e+00> : vector<8x32xf32>
    %88 = tpu.matmul %86, %6, %cst_55 {dimension_numbers = #tpu.dot_dimension_numbers<[1], [0], [0], [1], [0, 0, 1, 1], [], []>} : vector<8x32xbf16>, vector<32x32xbf16>, vector<8x32xf32> -> vector<8x32xf32>
    %cst_56 = arith.constant dense<0.000000e+00> : vector<8x32xf32>
    %89 = tpu.matmul %86, %8, %cst_56 {dimension_numbers = #tpu.dot_dimension_numbers<[1], [0], [0], [1], [0, 0, 1, 1], [], []>} : vector<8x32xbf16>, vector<32x32xbf16>, vector<8x32xf32> -> vector<8x32xf32>
    %90 = vector.extract_strided_slice %84 {offsets = [0, 0, 0], sizes = [1, 8, 32], strides = [1, 1, 1]} : vector<3x8x32xf32> to vector<1x8x32xf32>
    %91 = vector.shape_cast %90 : vector<1x8x32xf32> to vector<8x32xf32>
    %92 = arith.addf %91, %87 : vector<8x32xf32>
    %93 = arith.negf %92 : vector<8x32xf32>
    %94 = math.exp %93 : vector<8x32xf32>
    %cst_57 = arith.constant 1.000000e+00 : f32
    %95 = vector.broadcast %cst_57 : f32 to vector<8x32xf32>
    %96 = arith.addf %95, %94 : vector<8x32xf32>
    %97 = arith.divf %95, %96 : vector<8x32xf32>
    %98 = vector.extract_strided_slice %84 {offsets = [1, 0, 0], sizes = [1, 8, 32], strides = [1, 1, 1]} : vector<3x8x32xf32> to vector<1x8x32xf32>
    %99 = vector.shape_cast %98 : vector<1x8x32xf32> to vector<8x32xf32>
    %100 = arith.addf %99, %88 : vector<8x32xf32>
    %101 = arith.negf %100 : vector<8x32xf32>
    %102 = math.exp %101 : vector<8x32xf32>
    %cst_58 = arith.constant 1.000000e+00 : f32
    %103 = vector.broadcast %cst_58 : f32 to vector<8x32xf32>
    %104 = arith.addf %103, %102 : vector<8x32xf32>
    %105 = arith.divf %103, %104 : vector<8x32xf32>
    %106 = vector.extract_strided_slice %84 {offsets = [2, 0, 0], sizes = [1, 8, 32], strides = [1, 1, 1]} : vector<3x8x32xf32> to vector<1x8x32xf32>
    %107 = vector.shape_cast %106 : vector<1x8x32xf32> to vector<8x32xf32>
    %108 = arith.addf %89, %12 : vector<8x32xf32>
    %109 = arith.mulf %97, %108 : vector<8x32xf32>
    %110 = arith.addf %107, %109 : vector<8x32xf32>
    %111 = math.tanh %110 : vector<8x32xf32>
    %cst_59 = arith.constant 1.000000e+00 : f32
    %112 = vector.broadcast %cst_59 : f32 to vector<8x32xf32>
    %113 = arith.subf %112, %105 : vector<8x32xf32>
    %114 = arith.mulf %113, %111 : vector<8x32xf32>
    %115 = arith.mulf %105, %85 : vector<8x32xf32>
    %116 = arith.addf %114, %115 : vector<8x32xf32>
    %117 = arith.addi %17, %78 : i32
    %118 = vector.broadcast %117 : i32 to vector<8x1xi32>
    %119 = arith.cmpi sgt, %13, %118 : vector<8x1xi32>
    %120 = vector.shape_cast %119 : vector<8x1xi1> to vector<8x1xi1>
    %121 = vector.broadcast %120 : vector<8x1xi1> to vector<8x32xi1>
    %122 = arith.select %121, %116, %85 : vector<8x32xi1>, vector<8x32xf32>
    %c0_60 = arith.constant 0 : index
    %c0_61 = arith.constant 0 : index
    %123 = vector.load %arg8[%c0_60, %c0_61] : memref<8x32xf32, #tpu.memory_space<vmem>>, vector<8x32xf32>
    tpu.vector_store %arg8[%c0_60, %c0_61], %122 {strides = array<i32>} : memref<8x32xf32, #tpu.memory_space<vmem>>, vector<8x32xf32>,
    %cst_62 = arith.constant 0.000000e+00 : f32
    %124 = vector.shape_cast %119 : vector<8x1xi1> to vector<8x1xi1>
    %125 = vector.broadcast %124 : vector<8x1xi1> to vector<8x32xi1>
    %126 = vector.broadcast %cst_62 : f32 to vector<8x32xf32>
    %127 = arith.select %125, %116, %126 : vector<8x32xi1>, vector<8x32xf32>
    %c0_i32_63 = arith.constant 0 : i32
    %c0_i32_64 = arith.constant 0 : i32
    %c0_i32_65 = arith.constant 0 : i32
    %128 = tpu.memref_slice %arg7[%c0_i32_18, %c0_i32_63, %c0_i32_64, %c0_i32_65] : memref<1x8x8x32xf32, #tpu.memory_space<vmem>> -> memref<1x8x8x32xf32, #tpu.memory_space<vmem>>
    %129 = tpu.memref_squeeze %128 : memref<1x8x8x32xf32, #tpu.memory_space<vmem>> -> memref<8x8x32xf32, #tpu.memory_space<vmem>>
    %130 = arith.index_cast %78 : i32 to index
    %c0_66 = arith.constant 0 : index
    %c0_67 = arith.constant 0 : index
    %131 = vector.load %129[%130, %c0_66, %c0_67] : memref<8x8x32xf32, #tpu.memory_space<vmem>>, vector<1x8x32xf32>
    %132 = vector.shape_cast %131 : vector<1x8x32xf32> to vector<8x32xf32>
    %133 = vector.shape_cast %127 : vector<8x32xf32> to vector<1x8x32xf32>
    tpu.vector_store %129[%130, %c0_66, %c0_67], %133 {strides = array<i32>} : memref<8x8x32xf32, #tpu.memory_space<vmem>>, vector<1x8x32xf32>,
    %c2_i32 = arith.constant 2 : i32
    %c0_i32_68 = arith.constant 0 : i32
    %134 = arith.cmpi eq, %arg0, %c0_i32_68 : i32
    %c7_i32_69 = arith.constant 7 : i32
    %135 = arith.subi %c7_i32_69, %c2_i32 : i32
    %136 = arith.select %134, %c2_i32, %135 : i32
    %c0_i32_70 = arith.constant 0 : i32
    %c0_i32_71 = arith.constant 0 : i32
    %c0_i32_72 = arith.constant 0 : i32
    %c0_i32_73 = arith.constant 0 : i32
    %137 = tpu.memref_slice %arg2[%c0_i32_17, %c0_i32_70, %c0_i32_71, %c0_i32_72, %c0_i32_73] : memref<1x8x3x8x32xbf16, #tpu.memory_space<vmem>> -> memref<1x8x3x8x32xbf16, #tpu.memory_space<vmem>>
    %138 = tpu.memref_squeeze %137 : memref<1x8x3x8x32xbf16, #tpu.memory_space<vmem>> -> memref<8x3x8x32xbf16, #tpu.memory_space<vmem>>
    %139 = arith.index_cast %136 : i32 to index
    %c0_74 = arith.constant 0 : index
    %c0_75 = arith.constant 0 : index
    %c0_76 = arith.constant 0 : index
    %140 = vector.load %138[%139, %c0_74, %c0_75, %c0_76] : memref<8x3x8x32xbf16, #tpu.memory_space<vmem>>, vector<1x3x8x32xbf16>
    %141 = vector.shape_cast %140 : vector<1x3x8x32xbf16> to vector<3x8x32xbf16>
    %142 = arith.extf %141 : vector<3x8x32xbf16> to vector<3x8x32xf32>
    %c0_77 = arith.constant 0 : index
    %c0_78 = arith.constant 0 : index
    %143 = vector.load %arg8[%c0_77, %c0_78] : memref<8x32xf32, #tpu.memory_space<vmem>>, vector<8x32xf32>
    %144 = arith.truncf %143 : vector<8x32xf32> to vector<8x32xbf16>
    %cst_79 = arith.constant dense<0.000000e+00> : vector<8x32xf32>
    %145 = tpu.matmul %144, %4, %cst_79 {dimension_numbers = #tpu.dot_dimension_numbers<[1], [0], [0], [1], [0, 0, 1, 1], [], []>} : vector<8x32xbf16>, vector<32x32xbf16>, vector<8x32xf32> -> vector<8x32xf32>
    %cst_80 = arith.constant dense<0.000000e+00> : vector<8x32xf32>
    %146 = tpu.matmul %144, %6, %cst_80 {dimension_numbers = #tpu.dot_dimension_numbers<[1], [0], [0], [1], [0, 0, 1, 1], [], []>} : vector<8x32xbf16>, vector<32x32xbf16>, vector<8x32xf32> -> vector<8x32xf32>
    %cst_81 = arith.constant dense<0.000000e+00> : vector<8x32xf32>
    %147 = tpu.matmul %144, %8, %cst_81 {dimension_numbers = #tpu.dot_dimension_numbers<[1], [0], [0], [1], [0, 0, 1, 1], [], []>} : vector<8x32xbf16>, vector<32x32xbf16>, vector<8x32xf32> -> vector<8x32xf32>
    %148 = vector.extract_strided_slice %142 {offsets = [0, 0, 0], sizes = [1, 8, 32], strides = [1, 1, 1]} : vector<3x8x32xf32> to vector<1x8x32xf32>
    %149 = vector.shape_cast %148 : vector<1x8x32xf32> to vector<8x32xf32>
    %150 = arith.addf %149, %145 : vector<8x32xf32>
    %151 = arith.negf %150 : vector<8x32xf32>
    %152 = math.exp %151 : vector<8x32xf32>
    %cst_82 = arith.constant 1.000000e+00 : f32
    %153 = vector.broadcast %cst_82 : f32 to vector<8x32xf32>
    %154 = arith.addf %153, %152 : vector<8x32xf32>
    %155 = arith.divf %153, %154 : vector<8x32xf32>
    %156 = vector.extract_strided_slice %142 {offsets = [1, 0, 0], sizes = [1, 8, 32], strides = [1, 1, 1]} : vector<3x8x32xf32> to vector<1x8x32xf32>
    %157 = vector.shape_cast %156 : vector<1x8x32xf32> to vector<8x32xf32>
    %158 = arith.addf %157, %146 : vector<8x32xf32>
    %159 = arith.negf %158 : vector<8x32xf32>
    %160 = math.exp %159 : vector<8x32xf32>
    %cst_83 = arith.constant 1.000000e+00 : f32
    %161 = vector.broadcast %cst_83 : f32 to vector<8x32xf32>
    %162 = arith.addf %161, %160 : vector<8x32xf32>
    %163 = arith.divf %161, %162 : vector<8x32xf32>
    %164 = vector.extract_strided_slice %142 {offsets = [2, 0, 0], sizes = [1, 8, 32], strides = [1, 1, 1]} : vector<3x8x32xf32> to vector<1x8x32xf32>
    %165 = vector.shape_cast %164 : vector<1x8x32xf32> to vector<8x32xf32>
    %166 = arith.addf %147, %12 : vector<8x32xf32>
    %167 = arith.mulf %155, %166 : vector<8x32xf32>
    %168 = arith.addf %165, %167 : vector<8x32xf32>
    %169 = math.tanh %168 : vector<8x32xf32>
    %cst_84 = arith.constant 1.000000e+00 : f32
    %170 = vector.broadcast %cst_84 : f32 to vector<8x32xf32>
    %171 = arith.subf %170, %163 : vector<8x32xf32>
    %172 = arith.mulf %171, %169 : vector<8x32xf32>
    %173 = arith.mulf %163, %143 : vector<8x32xf32>
    %174 = arith.addf %172, %173 : vector<8x32xf32>
    %175 = arith.addi %17, %136 : i32
    %176 = vector.broadcast %175 : i32 to vector<8x1xi32>
    %177 = arith.cmpi sgt, %13, %176 : vector<8x1xi32>
    %178 = vector.shape_cast %177 : vector<8x1xi1> to vector<8x1xi1>
    %179 = vector.broadcast %178 : vector<8x1xi1> to vector<8x32xi1>
    %180 = arith.select %179, %174, %143 : vector<8x32xi1>, vector<8x32xf32>
    %c0_85 = arith.constant 0 : index
    %c0_86 = arith.constant 0 : index
    %181 = vector.load %arg8[%c0_85, %c0_86] : memref<8x32xf32, #tpu.memory_space<vmem>>, vector<8x32xf32>
    tpu.vector_store %arg8[%c0_85, %c0_86], %180 {strides = array<i32>} : memref<8x32xf32, #tpu.memory_space<vmem>>, vector<8x32xf32>,
    %cst_87 = arith.constant 0.000000e+00 : f32
    %182 = vector.shape_cast %177 : vector<8x1xi1> to vector<8x1xi1>
    %183 = vector.broadcast %182 : vector<8x1xi1> to vector<8x32xi1>
    %184 = vector.broadcast %cst_87 : f32 to vector<8x32xf32>
    %185 = arith.select %183, %174, %184 : vector<8x32xi1>, vector<8x32xf32>
    %c0_i32_88 = arith.constant 0 : i32
    %c0_i32_89 = arith.constant 0 : i32
    %c0_i32_90 = arith.constant 0 : i32
    %186 = tpu.memref_slice %arg7[%c0_i32_18, %c0_i32_88, %c0_i32_89, %c0_i32_90] : memref<1x8x8x32xf32, #tpu.memory_space<vmem>> -> memref<1x8x8x32xf32, #tpu.memory_space<vmem>>
    %187 = tpu.memref_squeeze %186 : memref<1x8x8x32xf32, #tpu.memory_space<vmem>> -> memref<8x8x32xf32, #tpu.memory_space<vmem>>
    %188 = arith.index_cast %136 : i32 to index
    %c0_91 = arith.constant 0 : index
    %c0_92 = arith.constant 0 : index
    %189 = vector.load %187[%188, %c0_91, %c0_92] : memref<8x8x32xf32, #tpu.memory_space<vmem>>, vector<1x8x32xf32>
    %190 = vector.shape_cast %189 : vector<1x8x32xf32> to vector<8x32xf32>
    %191 = vector.shape_cast %185 : vector<8x32xf32> to vector<1x8x32xf32>
    tpu.vector_store %187[%188, %c0_91, %c0_92], %191 {strides = array<i32>} : memref<8x8x32xf32, #tpu.memory_space<vmem>>, vector<1x8x32xf32>,
    %c3_i32 = arith.constant 3 : i32
    %c0_i32_93 = arith.constant 0 : i32
    %192 = arith.cmpi eq, %arg0, %c0_i32_93 : i32
    %c7_i32_94 = arith.constant 7 : i32
    %193 = arith.subi %c7_i32_94, %c3_i32 : i32
    %194 = arith.select %192, %c3_i32, %193 : i32
    %c0_i32_95 = arith.constant 0 : i32
    %c0_i32_96 = arith.constant 0 : i32
    %c0_i32_97 = arith.constant 0 : i32
    %c0_i32_98 = arith.constant 0 : i32
    %195 = tpu.memref_slice %arg2[%c0_i32_17, %c0_i32_95, %c0_i32_96, %c0_i32_97, %c0_i32_98] : memref<1x8x3x8x32xbf16, #tpu.memory_space<vmem>> -> memref<1x8x3x8x32xbf16, #tpu.memory_space<vmem>>
    %196 = tpu.memref_squeeze %195 : memref<1x8x3x8x32xbf16, #tpu.memory_space<vmem>> -> memref<8x3x8x32xbf16, #tpu.memory_space<vmem>>
    %197 = arith.index_cast %194 : i32 to index
    %c0_99 = arith.constant 0 : index
    %c0_100 = arith.constant 0 : index
    %c0_101 = arith.constant 0 : index
    %198 = vector.load %196[%197, %c0_99, %c0_100, %c0_101] : memref<8x3x8x32xbf16, #tpu.memory_space<vmem>>, vector<1x3x8x32xbf16>
    %199 = vector.shape_cast %198 : vector<1x3x8x32xbf16> to vector<3x8x32xbf16>
    %200 = arith.extf %199 : vector<3x8x32xbf16> to vector<3x8x32xf32>
    %c0_102 = arith.constant 0 : index
    %c0_103 = arith.constant 0 : index
    %201 = vector.load %arg8[%c0_102, %c0_103] : memref<8x32xf32, #tpu.memory_space<vmem>>, vector<8x32xf32>
    %202 = arith.truncf %201 : vector<8x32xf32> to vector<8x32xbf16>
    %cst_104 = arith.constant dense<0.000000e+00> : vector<8x32xf32>
    %203 = tpu.matmul %202, %4, %cst_104 {dimension_numbers = #tpu.dot_dimension_numbers<[1], [0], [0], [1], [0, 0, 1, 1], [], []>} : vector<8x32xbf16>, vector<32x32xbf16>, vector<8x32xf32> -> vector<8x32xf32>
    %cst_105 = arith.constant dense<0.000000e+00> : vector<8x32xf32>
    %204 = tpu.matmul %202, %6, %cst_105 {dimension_numbers = #tpu.dot_dimension_numbers<[1], [0], [0], [1], [0, 0, 1, 1], [], []>} : vector<8x32xbf16>, vector<32x32xbf16>, vector<8x32xf32> -> vector<8x32xf32>
    %cst_106 = arith.constant dense<0.000000e+00> : vector<8x32xf32>
    %205 = tpu.matmul %202, %8, %cst_106 {dimension_numbers = #tpu.dot_dimension_numbers<[1], [0], [0], [1], [0, 0, 1, 1], [], []>} : vector<8x32xbf16>, vector<32x32xbf16>, vector<8x32xf32> -> vector<8x32xf32>
    %206 = vector.extract_strided_slice %200 {offsets = [0, 0, 0], sizes = [1, 8, 32], strides = [1, 1, 1]} : vector<3x8x32xf32> to vector<1x8x32xf32>
    %207 = vector.shape_cast %206 : vector<1x8x32xf32> to vector<8x32xf32>
    %208 = arith.addf %207, %203 : vector<8x32xf32>
    %209 = arith.negf %208 : vector<8x32xf32>
    %210 = math.exp %209 : vector<8x32xf32>
    %cst_107 = arith.constant 1.000000e+00 : f32
    %211 = vector.broadcast %cst_107 : f32 to vector<8x32xf32>
    %212 = arith.addf %211, %210 : vector<8x32xf32>
    %213 = arith.divf %211, %212 : vector<8x32xf32>
    %214 = vector.extract_strided_slice %200 {offsets = [1, 0, 0], sizes = [1, 8, 32], strides = [1, 1, 1]} : vector<3x8x32xf32> to vector<1x8x32xf32>
    %215 = vector.shape_cast %214 : vector<1x8x32xf32> to vector<8x32xf32>
    %216 = arith.addf %215, %204 : vector<8x32xf32>
    %217 = arith.negf %216 : vector<8x32xf32>
    %218 = math.exp %217 : vector<8x32xf32>
    %cst_108 = arith.constant 1.000000e+00 : f32
    %219 = vector.broadcast %cst_108 : f32 to vector<8x32xf32>
    %220 = arith.addf %219, %218 : vector<8x32xf32>
    %221 = arith.divf %219, %220 : vector<8x32xf32>
    %222 = vector.extract_strided_slice %200 {offsets = [2, 0, 0], sizes = [1, 8, 32], strides = [1, 1, 1]} : vector<3x8x32xf32> to vector<1x8x32xf32>
    %223 = vector.shape_cast %222 : vector<1x8x32xf32> to vector<8x32xf32>
    %224 = arith.addf %205, %12 : vector<8x32xf32>
    %225 = arith.mulf %213, %224 : vector<8x32xf32>
    %226 = arith.addf %223, %225 : vector<8x32xf32>
    %227 = math.tanh %226 : vector<8x32xf32>
    %cst_109 = arith.constant 1.000000e+00 : f32
    %228 = vector.broadcast %cst_109 : f32 to vector<8x32xf32>
    %229 = arith.subf %228, %221 : vector<8x32xf32>
    %230 = arith.mulf %229, %227 : vector<8x32xf32>
    %231 = arith.mulf %221, %201 : vector<8x32xf32>
    %232 = arith.addf %230, %231 : vector<8x32xf32>
    %233 = arith.addi %17, %194 : i32
    %234 = vector.broadcast %233 : i32 to vector<8x1xi32>
    %235 = arith.cmpi sgt, %13, %234 : vector<8x1xi32>
    %236 = vector.shape_cast %235 : vector<8x1xi1> to vector<8x1xi1>
    %237 = vector.broadcast %236 : vector<8x1xi1> to vector<8x32xi1>
    %238 = arith.select %237, %232, %201 : vector<8x32xi1>, vector<8x32xf32>
    %c0_110 = arith.constant 0 : index
    %c0_111 = arith.constant 0 : index
    %239 = vector.load %arg8[%c0_110, %c0_111] : memref<8x32xf32, #tpu.memory_space<vmem>>, vector<8x32xf32>
    tpu.vector_store %arg8[%c0_110, %c0_111], %238 {strides = array<i32>} : memref<8x32xf32, #tpu.memory_space<vmem>>, vector<8x32xf32>,
    %cst_112 = arith.constant 0.000000e+00 : f32
    %240 = vector.shape_cast %235 : vector<8x1xi1> to vector<8x1xi1>
    %241 = vector.broadcast %240 : vector<8x1xi1> to vector<8x32xi1>
    %242 = vector.broadcast %cst_112 : f32 to vector<8x32xf32>
    %243 = arith.select %241, %232, %242 : vector<8x32xi1>, vector<8x32xf32>
    %c0_i32_113 = arith.constant 0 : i32
    %c0_i32_114 = arith.constant 0 : i32
    %c0_i32_115 = arith.constant 0 : i32
    %244 = tpu.memref_slice %arg7[%c0_i32_18, %c0_i32_113, %c0_i32_114, %c0_i32_115] : memref<1x8x8x32xf32, #tpu.memory_space<vmem>> -> memref<1x8x8x32xf32, #tpu.memory_space<vmem>>
    %245 = tpu.memref_squeeze %244 : memref<1x8x8x32xf32, #tpu.memory_space<vmem>> -> memref<8x8x32xf32, #tpu.memory_space<vmem>>
    %246 = arith.index_cast %194 : i32 to index
    %c0_116 = arith.constant 0 : index
    %c0_117 = arith.constant 0 : index
    %247 = vector.load %245[%246, %c0_116, %c0_117] : memref<8x8x32xf32, #tpu.memory_space<vmem>>, vector<1x8x32xf32>
    %248 = vector.shape_cast %247 : vector<1x8x32xf32> to vector<8x32xf32>
    %249 = vector.shape_cast %243 : vector<8x32xf32> to vector<1x8x32xf32>
    tpu.vector_store %245[%246, %c0_116, %c0_117], %249 {strides = array<i32>} : memref<8x8x32xf32, #tpu.memory_space<vmem>>, vector<1x8x32xf32>,
    %c4_i32 = arith.constant 4 : i32
    %c0_i32_118 = arith.constant 0 : i32
    %250 = arith.cmpi eq, %arg0, %c0_i32_118 : i32
    %c7_i32_119 = arith.constant 7 : i32
    %251 = arith.subi %c7_i32_119, %c4_i32 : i32
    %252 = arith.select %250, %c4_i32, %251 : i32
    %c0_i32_120 = arith.constant 0 : i32
    %c0_i32_121 = arith.constant 0 : i32
    %c0_i32_122 = arith.constant 0 : i32
    %c0_i32_123 = arith.constant 0 : i32
    %253 = tpu.memref_slice %arg2[%c0_i32_17, %c0_i32_120, %c0_i32_121, %c0_i32_122, %c0_i32_123] : memref<1x8x3x8x32xbf16, #tpu.memory_space<vmem>> -> memref<1x8x3x8x32xbf16, #tpu.memory_space<vmem>>
    %254 = tpu.memref_squeeze %253 : memref<1x8x3x8x32xbf16, #tpu.memory_space<vmem>> -> memref<8x3x8x32xbf16, #tpu.memory_space<vmem>>
    %255 = arith.index_cast %252 : i32 to index
    %c0_124 = arith.constant 0 : index
    %c0_125 = arith.constant 0 : index
    %c0_126 = arith.constant 0 : index
    %256 = vector.load %254[%255, %c0_124, %c0_125, %c0_126] : memref<8x3x8x32xbf16, #tpu.memory_space<vmem>>, vector<1x3x8x32xbf16>
    %257 = vector.shape_cast %256 : vector<1x3x8x32xbf16> to vector<3x8x32xbf16>
    %258 = arith.extf %257 : vector<3x8x32xbf16> to vector<3x8x32xf32>
    %c0_127 = arith.constant 0 : index
    %c0_128 = arith.constant 0 : index
    %259 = vector.load %arg8[%c0_127, %c0_128] : memref<8x32xf32, #tpu.memory_space<vmem>>, vector<8x32xf32>
    %260 = arith.truncf %259 : vector<8x32xf32> to vector<8x32xbf16>
    %cst_129 = arith.constant dense<0.000000e+00> : vector<8x32xf32>
    %261 = tpu.matmul %260, %4, %cst_129 {dimension_numbers = #tpu.dot_dimension_numbers<[1], [0], [0], [1], [0, 0, 1, 1], [], []>} : vector<8x32xbf16>, vector<32x32xbf16>, vector<8x32xf32> -> vector<8x32xf32>
    %cst_130 = arith.constant dense<0.000000e+00> : vector<8x32xf32>
    %262 = tpu.matmul %260, %6, %cst_130 {dimension_numbers = #tpu.dot_dimension_numbers<[1], [0], [0], [1], [0, 0, 1, 1], [], []>} : vector<8x32xbf16>, vector<32x32xbf16>, vector<8x32xf32> -> vector<8x32xf32>
    %cst_131 = arith.constant dense<0.000000e+00> : vector<8x32xf32>
    %263 = tpu.matmul %260, %8, %cst_131 {dimension_numbers = #tpu.dot_dimension_numbers<[1], [0], [0], [1], [0, 0, 1, 1], [], []>} : vector<8x32xbf16>, vector<32x32xbf16>, vector<8x32xf32> -> vector<8x32xf32>
    %264 = vector.extract_strided_slice %258 {offsets = [0, 0, 0], sizes = [1, 8, 32], strides = [1, 1, 1]} : vector<3x8x32xf32> to vector<1x8x32xf32>
    %265 = vector.shape_cast %264 : vector<1x8x32xf32> to vector<8x32xf32>
    %266 = arith.addf %265, %261 : vector<8x32xf32>
    %267 = arith.negf %266 : vector<8x32xf32>
    %268 = math.exp %267 : vector<8x32xf32>
    %cst_132 = arith.constant 1.000000e+00 : f32
    %269 = vector.broadcast %cst_132 : f32 to vector<8x32xf32>
    %270 = arith.addf %269, %268 : vector<8x32xf32>
    %271 = arith.divf %269, %270 : vector<8x32xf32>
    %272 = vector.extract_strided_slice %258 {offsets = [1, 0, 0], sizes = [1, 8, 32], strides = [1, 1, 1]} : vector<3x8x32xf32> to vector<1x8x32xf32>
    %273 = vector.shape_cast %272 : vector<1x8x32xf32> to vector<8x32xf32>
    %274 = arith.addf %273, %262 : vector<8x32xf32>
    %275 = arith.negf %274 : vector<8x32xf32>
    %276 = math.exp %275 : vector<8x32xf32>
    %cst_133 = arith.constant 1.000000e+00 : f32
    %277 = vector.broadcast %cst_133 : f32 to vector<8x32xf32>
    %278 = arith.addf %277, %276 : vector<8x32xf32>
    %279 = arith.divf %277, %278 : vector<8x32xf32>
    %280 = vector.extract_strided_slice %258 {offsets = [2, 0, 0], sizes = [1, 8, 32], strides = [1, 1, 1]} : vector<3x8x32xf32> to vector<1x8x32xf32>
    %281 = vector.shape_cast %280 : vector<1x8x32xf32> to vector<8x32xf32>
    %282 = arith.addf %263, %12 : vector<8x32xf32>
    %283 = arith.mulf %271, %282 : vector<8x32xf32>
    %284 = arith.addf %281, %283 : vector<8x32xf32>
    %285 = math.tanh %284 : vector<8x32xf32>
    %cst_134 = arith.constant 1.000000e+00 : f32
    %286 = vector.broadcast %cst_134 : f32 to vector<8x32xf32>
    %287 = arith.subf %286, %279 : vector<8x32xf32>
    %288 = arith.mulf %287, %285 : vector<8x32xf32>
    %289 = arith.mulf %279, %259 : vector<8x32xf32>
    %290 = arith.addf %288, %289 : vector<8x32xf32>
    %291 = arith.addi %17, %252 : i32
    %292 = vector.broadcast %291 : i32 to vector<8x1xi32>
    %293 = arith.cmpi sgt, %13, %292 : vector<8x1xi32>
    %294 = vector.shape_cast %293 : vector<8x1xi1> to vector<8x1xi1>
    %295 = vector.broadcast %294 : vector<8x1xi1> to vector<8x32xi1>
    %296 = arith.select %295, %290, %259 : vector<8x32xi1>, vector<8x32xf32>
    %c0_135 = arith.constant 0 : index
    %c0_136 = arith.constant 0 : index
    %297 = vector.load %arg8[%c0_135, %c0_136] : memref<8x32xf32, #tpu.memory_space<vmem>>, vector<8x32xf32>
    tpu.vector_store %arg8[%c0_135, %c0_136], %296 {strides = array<i32>} : memref<8x32xf32, #tpu.memory_space<vmem>>, vector<8x32xf32>,
    %cst_137 = arith.constant 0.000000e+00 : f32
    %298 = vector.shape_cast %293 : vector<8x1xi1> to vector<8x1xi1>
    %299 = vector.broadcast %298 : vector<8x1xi1> to vector<8x32xi1>
    %300 = vector.broadcast %cst_137 : f32 to vector<8x32xf32>
    %301 = arith.select %299, %290, %300 : vector<8x32xi1>, vector<8x32xf32>
    %c0_i32_138 = arith.constant 0 : i32
    %c0_i32_139 = arith.constant 0 : i32
    %c0_i32_140 = arith.constant 0 : i32
    %302 = tpu.memref_slice %arg7[%c0_i32_18, %c0_i32_138, %c0_i32_139, %c0_i32_140] : memref<1x8x8x32xf32, #tpu.memory_space<vmem>> -> memref<1x8x8x32xf32, #tpu.memory_space<vmem>>
    %303 = tpu.memref_squeeze %302 : memref<1x8x8x32xf32, #tpu.memory_space<vmem>> -> memref<8x8x32xf32, #tpu.memory_space<vmem>>
    %304 = arith.index_cast %252 : i32 to index
    %c0_141 = arith.constant 0 : index
    %c0_142 = arith.constant 0 : index
    %305 = vector.load %303[%304, %c0_141, %c0_142] : memref<8x8x32xf32, #tpu.memory_space<vmem>>, vector<1x8x32xf32>
    %306 = vector.shape_cast %305 : vector<1x8x32xf32> to vector<8x32xf32>
    %307 = vector.shape_cast %301 : vector<8x32xf32> to vector<1x8x32xf32>
    tpu.vector_store %303[%304, %c0_141, %c0_142], %307 {strides = array<i32>} : memref<8x8x32xf32, #tpu.memory_space<vmem>>, vector<1x8x32xf32>,
    %c5_i32 = arith.constant 5 : i32
    %c0_i32_143 = arith.constant 0 : i32
    %308 = arith.cmpi eq, %arg0, %c0_i32_143 : i32
    %c7_i32_144 = arith.constant 7 : i32
    %309 = arith.subi %c7_i32_144, %c5_i32 : i32
    %310 = arith.select %308, %c5_i32, %309 : i32
    %c0_i32_145 = arith.constant 0 : i32
    %c0_i32_146 = arith.constant 0 : i32
    %c0_i32_147 = arith.constant 0 : i32
    %c0_i32_148 = arith.constant 0 : i32
    %311 = tpu.memref_slice %arg2[%c0_i32_17, %c0_i32_145, %c0_i32_146, %c0_i32_147, %c0_i32_148] : memref<1x8x3x8x32xbf16, #tpu.memory_space<vmem>> -> memref<1x8x3x8x32xbf16, #tpu.memory_space<vmem>>
    %312 = tpu.memref_squeeze %311 : memref<1x8x3x8x32xbf16, #tpu.memory_space<vmem>> -> memref<8x3x8x32xbf16, #tpu.memory_space<vmem>>
    %313 = arith.index_cast %310 : i32 to index
    %c0_149 = arith.constant 0 : index
    %c0_150 = arith.constant 0 : index
    %c0_151 = arith.constant 0 : index
    %314 = vector.load %312[%313, %c0_149, %c0_150, %c0_151] : memref<8x3x8x32xbf16, #tpu.memory_space<vmem>>, vector<1x3x8x32xbf16>
    %315 = vector.shape_cast %314 : vector<1x3x8x32xbf16> to vector<3x8x32xbf16>
    %316 = arith.extf %315 : vector<3x8x32xbf16> to vector<3x8x32xf32>
    %c0_152 = arith.constant 0 : index
    %c0_153 = arith.constant 0 : index
    %317 = vector.load %arg8[%c0_152, %c0_153] : memref<8x32xf32, #tpu.memory_space<vmem>>, vector<8x32xf32>
    %318 = arith.truncf %317 : vector<8x32xf32> to vector<8x32xbf16>
    %cst_154 = arith.constant dense<0.000000e+00> : vector<8x32xf32>
    %319 = tpu.matmul %318, %4, %cst_154 {dimension_numbers = #tpu.dot_dimension_numbers<[1], [0], [0], [1], [0, 0, 1, 1], [], []>} : vector<8x32xbf16>, vector<32x32xbf16>, vector<8x32xf32> -> vector<8x32xf32>
    %cst_155 = arith.constant dense<0.000000e+00> : vector<8x32xf32>
    %320 = tpu.matmul %318, %6, %cst_155 {dimension_numbers = #tpu.dot_dimension_numbers<[1], [0], [0], [1], [0, 0, 1, 1], [], []>} : vector<8x32xbf16>, vector<32x32xbf16>, vector<8x32xf32> -> vector<8x32xf32>
    %cst_156 = arith.constant dense<0.000000e+00> : vector<8x32xf32>
    %321 = tpu.matmul %318, %8, %cst_156 {dimension_numbers = #tpu.dot_dimension_numbers<[1], [0], [0], [1], [0, 0, 1, 1], [], []>} : vector<8x32xbf16>, vector<32x32xbf16>, vector<8x32xf32> -> vector<8x32xf32>
    %322 = vector.extract_strided_slice %316 {offsets = [0, 0, 0], sizes = [1, 8, 32], strides = [1, 1, 1]} : vector<3x8x32xf32> to vector<1x8x32xf32>
    %323 = vector.shape_cast %322 : vector<1x8x32xf32> to vector<8x32xf32>
    %324 = arith.addf %323, %319 : vector<8x32xf32>
    %325 = arith.negf %324 : vector<8x32xf32>
    %326 = math.exp %325 : vector<8x32xf32>
    %cst_157 = arith.constant 1.000000e+00 : f32
    %327 = vector.broadcast %cst_157 : f32 to vector<8x32xf32>
    %328 = arith.addf %327, %326 : vector<8x32xf32>
    %329 = arith.divf %327, %328 : vector<8x32xf32>
    %330 = vector.extract_strided_slice %316 {offsets = [1, 0, 0], sizes = [1, 8, 32], strides = [1, 1, 1]} : vector<3x8x32xf32> to vector<1x8x32xf32>
    %331 = vector.shape_cast %330 : vector<1x8x32xf32> to vector<8x32xf32>
    %332 = arith.addf %331, %320 : vector<8x32xf32>
    %333 = arith.negf %332 : vector<8x32xf32>
    %334 = math.exp %333 : vector<8x32xf32>
    %cst_158 = arith.constant 1.000000e+00 : f32
    %335 = vector.broadcast %cst_158 : f32 to vector<8x32xf32>
    %336 = arith.addf %335, %334 : vector<8x32xf32>
    %337 = arith.divf %335, %336 : vector<8x32xf32>
    %338 = vector.extract_strided_slice %316 {offsets = [2, 0, 0], sizes = [1, 8, 32], strides = [1, 1, 1]} : vector<3x8x32xf32> to vector<1x8x32xf32>
    %339 = vector.shape_cast %338 : vector<1x8x32xf32> to vector<8x32xf32>
    %340 = arith.addf %321, %12 : vector<8x32xf32>
    %341 = arith.mulf %329, %340 : vector<8x32xf32>
    %342 = arith.addf %339, %341 : vector<8x32xf32>
    %343 = math.tanh %342 : vector<8x32xf32>
    %cst_159 = arith.constant 1.000000e+00 : f32
    %344 = vector.broadcast %cst_159 : f32 to vector<8x32xf32>
    %345 = arith.subf %344, %337 : vector<8x32xf32>
    %346 = arith.mulf %345, %343 : vector<8x32xf32>
    %347 = arith.mulf %337, %317 : vector<8x32xf32>
    %348 = arith.addf %346, %347 : vector<8x32xf32>
    %349 = arith.addi %17, %310 : i32
    %350 = vector.broadcast %349 : i32 to vector<8x1xi32>
    %351 = arith.cmpi sgt, %13, %350 : vector<8x1xi32>
    %352 = vector.shape_cast %351 : vector<8x1xi1> to vector<8x1xi1>
    %353 = vector.broadcast %352 : vector<8x1xi1> to vector<8x32xi1>
    %354 = arith.select %353, %348, %317 : vector<8x32xi1>, vector<8x32xf32>
    %c0_160 = arith.constant 0 : index
    %c0_161 = arith.constant 0 : index
    %355 = vector.load %arg8[%c0_160, %c0_161] : memref<8x32xf32, #tpu.memory_space<vmem>>, vector<8x32xf32>
    tpu.vector_store %arg8[%c0_160, %c0_161], %354 {strides = array<i32>} : memref<8x32xf32, #tpu.memory_space<vmem>>, vector<8x32xf32>,
    %cst_162 = arith.constant 0.000000e+00 : f32
    %356 = vector.shape_cast %351 : vector<8x1xi1> to vector<8x1xi1>
    %357 = vector.broadcast %356 : vector<8x1xi1> to vector<8x32xi1>
    %358 = vector.broadcast %cst_162 : f32 to vector<8x32xf32>
    %359 = arith.select %357, %348, %358 : vector<8x32xi1>, vector<8x32xf32>
    %c0_i32_163 = arith.constant 0 : i32
    %c0_i32_164 = arith.constant 0 : i32
    %c0_i32_165 = arith.constant 0 : i32
    %360 = tpu.memref_slice %arg7[%c0_i32_18, %c0_i32_163, %c0_i32_164, %c0_i32_165] : memref<1x8x8x32xf32, #tpu.memory_space<vmem>> -> memref<1x8x8x32xf32, #tpu.memory_space<vmem>>
    %361 = tpu.memref_squeeze %360 : memref<1x8x8x32xf32, #tpu.memory_space<vmem>> -> memref<8x8x32xf32, #tpu.memory_space<vmem>>
    %362 = arith.index_cast %310 : i32 to index
    %c0_166 = arith.constant 0 : index
    %c0_167 = arith.constant 0 : index
    %363 = vector.load %361[%362, %c0_166, %c0_167] : memref<8x8x32xf32, #tpu.memory_space<vmem>>, vector<1x8x32xf32>
    %364 = vector.shape_cast %363 : vector<1x8x32xf32> to vector<8x32xf32>
    %365 = vector.shape_cast %359 : vector<8x32xf32> to vector<1x8x32xf32>
    tpu.vector_store %361[%362, %c0_166, %c0_167], %365 {strides = array<i32>} : memref<8x8x32xf32, #tpu.memory_space<vmem>>, vector<1x8x32xf32>,
    %c6_i32 = arith.constant 6 : i32
    %c0_i32_168 = arith.constant 0 : i32
    %366 = arith.cmpi eq, %arg0, %c0_i32_168 : i32
    %c7_i32_169 = arith.constant 7 : i32
    %367 = arith.subi %c7_i32_169, %c6_i32 : i32
    %368 = arith.select %366, %c6_i32, %367 : i32
    %c0_i32_170 = arith.constant 0 : i32
    %c0_i32_171 = arith.constant 0 : i32
    %c0_i32_172 = arith.constant 0 : i32
    %c0_i32_173 = arith.constant 0 : i32
    %369 = tpu.memref_slice %arg2[%c0_i32_17, %c0_i32_170, %c0_i32_171, %c0_i32_172, %c0_i32_173] : memref<1x8x3x8x32xbf16, #tpu.memory_space<vmem>> -> memref<1x8x3x8x32xbf16, #tpu.memory_space<vmem>>
    %370 = tpu.memref_squeeze %369 : memref<1x8x3x8x32xbf16, #tpu.memory_space<vmem>> -> memref<8x3x8x32xbf16, #tpu.memory_space<vmem>>
    %371 = arith.index_cast %368 : i32 to index
    %c0_174 = arith.constant 0 : index
    %c0_175 = arith.constant 0 : index
    %c0_176 = arith.constant 0 : index
    %372 = vector.load %370[%371, %c0_174, %c0_175, %c0_176] : memref<8x3x8x32xbf16, #tpu.memory_space<vmem>>, vector<1x3x8x32xbf16>
    %373 = vector.shape_cast %372 : vector<1x3x8x32xbf16> to vector<3x8x32xbf16>
    %374 = arith.extf %373 : vector<3x8x32xbf16> to vector<3x8x32xf32>
    %c0_177 = arith.constant 0 : index
    %c0_178 = arith.constant 0 : index
    %375 = vector.load %arg8[%c0_177, %c0_178] : memref<8x32xf32, #tpu.memory_space<vmem>>, vector<8x32xf32>
    %376 = arith.truncf %375 : vector<8x32xf32> to vector<8x32xbf16>
    %cst_179 = arith.constant dense<0.000000e+00> : vector<8x32xf32>
    %377 = tpu.matmul %376, %4, %cst_179 {dimension_numbers = #tpu.dot_dimension_numbers<[1], [0], [0], [1], [0, 0, 1, 1], [], []>} : vector<8x32xbf16>, vector<32x32xbf16>, vector<8x32xf32> -> vector<8x32xf32>
    %cst_180 = arith.constant dense<0.000000e+00> : vector<8x32xf32>
    %378 = tpu.matmul %376, %6, %cst_180 {dimension_numbers = #tpu.dot_dimension_numbers<[1], [0], [0], [1], [0, 0, 1, 1], [], []>} : vector<8x32xbf16>, vector<32x32xbf16>, vector<8x32xf32> -> vector<8x32xf32>
    %cst_181 = arith.constant dense<0.000000e+00> : vector<8x32xf32>
    %379 = tpu.matmul %376, %8, %cst_181 {dimension_numbers = #tpu.dot_dimension_numbers<[1], [0], [0], [1], [0, 0, 1, 1], [], []>} : vector<8x32xbf16>, vector<32x32xbf16>, vector<8x32xf32> -> vector<8x32xf32>
    %380 = vector.extract_strided_slice %374 {offsets = [0, 0, 0], sizes = [1, 8, 32], strides = [1, 1, 1]} : vector<3x8x32xf32> to vector<1x8x32xf32>
    %381 = vector.shape_cast %380 : vector<1x8x32xf32> to vector<8x32xf32>
    %382 = arith.addf %381, %377 : vector<8x32xf32>
    %383 = arith.negf %382 : vector<8x32xf32>
    %384 = math.exp %383 : vector<8x32xf32>
    %cst_182 = arith.constant 1.000000e+00 : f32
    %385 = vector.broadcast %cst_182 : f32 to vector<8x32xf32>
    %386 = arith.addf %385, %384 : vector<8x32xf32>
    %387 = arith.divf %385, %386 : vector<8x32xf32>
    %388 = vector.extract_strided_slice %374 {offsets = [1, 0, 0], sizes = [1, 8, 32], strides = [1, 1, 1]} : vector<3x8x32xf32> to vector<1x8x32xf32>
    %389 = vector.shape_cast %388 : vector<1x8x32xf32> to vector<8x32xf32>
    %390 = arith.addf %389, %378 : vector<8x32xf32>
    %391 = arith.negf %390 : vector<8x32xf32>
    %392 = math.exp %391 : vector<8x32xf32>
    %cst_183 = arith.constant 1.000000e+00 : f32
    %393 = vector.broadcast %cst_183 : f32 to vector<8x32xf32>
    %394 = arith.addf %393, %392 : vector<8x32xf32>
    %395 = arith.divf %393, %394 : vector<8x32xf32>
    %396 = vector.extract_strided_slice %374 {offsets = [2, 0, 0], sizes = [1, 8, 32], strides = [1, 1, 1]} : vector<3x8x32xf32> to vector<1x8x32xf32>
    %397 = vector.shape_cast %396 : vector<1x8x32xf32> to vector<8x32xf32>
    %398 = arith.addf %379, %12 : vector<8x32xf32>
    %399 = arith.mulf %387, %398 : vector<8x32xf32>
    %400 = arith.addf %397, %399 : vector<8x32xf32>
    %401 = math.tanh %400 : vector<8x32xf32>
    %cst_184 = arith.constant 1.000000e+00 : f32
    %402 = vector.broadcast %cst_184 : f32 to vector<8x32xf32>
    %403 = arith.subf %402, %395 : vector<8x32xf32>
    %404 = arith.mulf %403, %401 : vector<8x32xf32>
    %405 = arith.mulf %395, %375 : vector<8x32xf32>
    %406 = arith.addf %404, %405 : vector<8x32xf32>
    %407 = arith.addi %17, %368 : i32
    %408 = vector.broadcast %407 : i32 to vector<8x1xi32>
    %409 = arith.cmpi sgt, %13, %408 : vector<8x1xi32>
    %410 = vector.shape_cast %409 : vector<8x1xi1> to vector<8x1xi1>
    %411 = vector.broadcast %410 : vector<8x1xi1> to vector<8x32xi1>
    %412 = arith.select %411, %406, %375 : vector<8x32xi1>, vector<8x32xf32>
    %c0_185 = arith.constant 0 : index
    %c0_186 = arith.constant 0 : index
    %413 = vector.load %arg8[%c0_185, %c0_186] : memref<8x32xf32, #tpu.memory_space<vmem>>, vector<8x32xf32>
    tpu.vector_store %arg8[%c0_185, %c0_186], %412 {strides = array<i32>} : memref<8x32xf32, #tpu.memory_space<vmem>>, vector<8x32xf32>,
    %cst_187 = arith.constant 0.000000e+00 : f32
    %414 = vector.shape_cast %409 : vector<8x1xi1> to vector<8x1xi1>
    %415 = vector.broadcast %414 : vector<8x1xi1> to vector<8x32xi1>
    %416 = vector.broadcast %cst_187 : f32 to vector<8x32xf32>
    %417 = arith.select %415, %406, %416 : vector<8x32xi1>, vector<8x32xf32>
    %c0_i32_188 = arith.constant 0 : i32
    %c0_i32_189 = arith.constant 0 : i32
    %c0_i32_190 = arith.constant 0 : i32
    %418 = tpu.memref_slice %arg7[%c0_i32_18, %c0_i32_188, %c0_i32_189, %c0_i32_190] : memref<1x8x8x32xf32, #tpu.memory_space<vmem>> -> memref<1x8x8x32xf32, #tpu.memory_space<vmem>>
    %419 = tpu.memref_squeeze %418 : memref<1x8x8x32xf32, #tpu.memory_space<vmem>> -> memref<8x8x32xf32, #tpu.memory_space<vmem>>
    %420 = arith.index_cast %368 : i32 to index
    %c0_191 = arith.constant 0 : index
    %c0_192 = arith.constant 0 : index
    %421 = vector.load %419[%420, %c0_191, %c0_192] : memref<8x8x32xf32, #tpu.memory_space<vmem>>, vector<1x8x32xf32>
    %422 = vector.shape_cast %421 : vector<1x8x32xf32> to vector<8x32xf32>
    %423 = vector.shape_cast %417 : vector<8x32xf32> to vector<1x8x32xf32>
    tpu.vector_store %419[%420, %c0_191, %c0_192], %423 {strides = array<i32>} : memref<8x8x32xf32, #tpu.memory_space<vmem>>, vector<1x8x32xf32>,
    %c7_i32_193 = arith.constant 7 : i32
    %c0_i32_194 = arith.constant 0 : i32
    %424 = arith.cmpi eq, %arg0, %c0_i32_194 : i32
    %c7_i32_195 = arith.constant 7 : i32
    %425 = arith.subi %c7_i32_195, %c7_i32_193 : i32
    %426 = arith.select %424, %c7_i32_193, %425 : i32
    %c0_i32_196 = arith.constant 0 : i32
    %c0_i32_197 = arith.constant 0 : i32
    %c0_i32_198 = arith.constant 0 : i32
    %c0_i32_199 = arith.constant 0 : i32
    %427 = tpu.memref_slice %arg2[%c0_i32_17, %c0_i32_196, %c0_i32_197, %c0_i32_198, %c0_i32_199] : memref<1x8x3x8x32xbf16, #tpu.memory_space<vmem>> -> memref<1x8x3x8x32xbf16, #tpu.memory_space<vmem>>
    %428 = tpu.memref_squeeze %427 : memref<1x8x3x8x32xbf16, #tpu.memory_space<vmem>> -> memref<8x3x8x32xbf16, #tpu.memory_space<vmem>>
    %429 = arith.index_cast %426 : i32 to index
    %c0_200 = arith.constant 0 : index
    %c0_201 = arith.constant 0 : index
    %c0_202 = arith.constant 0 : index
    %430 = vector.load %428[%429, %c0_200, %c0_201, %c0_202] : memref<8x3x8x32xbf16, #tpu.memory_space<vmem>>, vector<1x3x8x32xbf16>
    %431 = vector.shape_cast %430 : vector<1x3x8x32xbf16> to vector<3x8x32xbf16>
    %432 = arith.extf %431 : vector<3x8x32xbf16> to vector<3x8x32xf32>
    %c0_203 = arith.constant 0 : index
    %c0_204 = arith.constant 0 : index
    %433 = vector.load %arg8[%c0_203, %c0_204] : memref<8x32xf32, #tpu.memory_space<vmem>>, vector<8x32xf32>
    %434 = arith.truncf %433 : vector<8x32xf32> to vector<8x32xbf16>
    %cst_205 = arith.constant dense<0.000000e+00> : vector<8x32xf32>
    %435 = tpu.matmul %434, %4, %cst_205 {dimension_numbers = #tpu.dot_dimension_numbers<[1], [0], [0], [1], [0, 0, 1, 1], [], []>} : vector<8x32xbf16>, vector<32x32xbf16>, vector<8x32xf32> -> vector<8x32xf32>
    %cst_206 = arith.constant dense<0.000000e+00> : vector<8x32xf32>
    %436 = tpu.matmul %434, %6, %cst_206 {dimension_numbers = #tpu.dot_dimension_numbers<[1], [0], [0], [1], [0, 0, 1, 1], [], []>} : vector<8x32xbf16>, vector<32x32xbf16>, vector<8x32xf32> -> vector<8x32xf32>
    %cst_207 = arith.constant dense<0.000000e+00> : vector<8x32xf32>
    %437 = tpu.matmul %434, %8, %cst_207 {dimension_numbers = #tpu.dot_dimension_numbers<[1], [0], [0], [1], [0, 0, 1, 1], [], []>} : vector<8x32xbf16>, vector<32x32xbf16>, vector<8x32xf32> -> vector<8x32xf32>
    %438 = vector.extract_strided_slice %432 {offsets = [0, 0, 0], sizes = [1, 8, 32], strides = [1, 1, 1]} : vector<3x8x32xf32> to vector<1x8x32xf32>
    %439 = vector.shape_cast %438 : vector<1x8x32xf32> to vector<8x32xf32>
    %440 = arith.addf %439, %435 : vector<8x32xf32>
    %441 = arith.negf %440 : vector<8x32xf32>
    %442 = math.exp %441 : vector<8x32xf32>
    %cst_208 = arith.constant 1.000000e+00 : f32
    %443 = vector.broadcast %cst_208 : f32 to vector<8x32xf32>
    %444 = arith.addf %443, %442 : vector<8x32xf32>
    %445 = arith.divf %443, %444 : vector<8x32xf32>
    %446 = vector.extract_strided_slice %432 {offsets = [1, 0, 0], sizes = [1, 8, 32], strides = [1, 1, 1]} : vector<3x8x32xf32> to vector<1x8x32xf32>
    %447 = vector.shape_cast %446 : vector<1x8x32xf32> to vector<8x32xf32>
    %448 = arith.addf %447, %436 : vector<8x32xf32>
    %449 = arith.negf %448 : vector<8x32xf32>
    %450 = math.exp %449 : vector<8x32xf32>
    %cst_209 = arith.constant 1.000000e+00 : f32
    %451 = vector.broadcast %cst_209 : f32 to vector<8x32xf32>
    %452 = arith.addf %451, %450 : vector<8x32xf32>
    %453 = arith.divf %451, %452 : vector<8x32xf32>
    %454 = vector.extract_strided_slice %432 {offsets = [2, 0, 0], sizes = [1, 8, 32], strides = [1, 1, 1]} : vector<3x8x32xf32> to vector<1x8x32xf32>
    %455 = vector.shape_cast %454 : vector<1x8x32xf32> to vector<8x32xf32>
    %456 = arith.addf %437, %12 : vector<8x32xf32>
    %457 = arith.mulf %445, %456 : vector<8x32xf32>
    %458 = arith.addf %455, %457 : vector<8x32xf32>
    %459 = math.tanh %458 : vector<8x32xf32>
    %cst_210 = arith.constant 1.000000e+00 : f32
    %460 = vector.broadcast %cst_210 : f32 to vector<8x32xf32>
    %461 = arith.subf %460, %453 : vector<8x32xf32>
    %462 = arith.mulf %461, %459 : vector<8x32xf32>
    %463 = arith.mulf %453, %433 : vector<8x32xf32>
    %464 = arith.addf %462, %463 : vector<8x32xf32>
    %465 = arith.addi %17, %426 : i32
    %466 = vector.broadcast %465 : i32 to vector<8x1xi32>
    %467 = arith.cmpi sgt, %13, %466 : vector<8x1xi32>
    %468 = vector.shape_cast %467 : vector<8x1xi1> to vector<8x1xi1>
    %469 = vector.broadcast %468 : vector<8x1xi1> to vector<8x32xi1>
    %470 = arith.select %469, %464, %433 : vector<8x32xi1>, vector<8x32xf32>
    %c0_211 = arith.constant 0 : index
    %c0_212 = arith.constant 0 : index
    %471 = vector.load %arg8[%c0_211, %c0_212] : memref<8x32xf32, #tpu.memory_space<vmem>>, vector<8x32xf32>
    tpu.vector_store %arg8[%c0_211, %c0_212], %470 {strides = array<i32>} : memref<8x32xf32, #tpu.memory_space<vmem>>, vector<8x32xf32>,
    %cst_213 = arith.constant 0.000000e+00 : f32
    %472 = vector.shape_cast %467 : vector<8x1xi1> to vector<8x1xi1>
    %473 = vector.broadcast %472 : vector<8x1xi1> to vector<8x32xi1>
    %474 = vector.broadcast %cst_213 : f32 to vector<8x32xf32>
    %475 = arith.select %473, %464, %474 : vector<8x32xi1>, vector<8x32xf32>
    %c0_i32_214 = arith.constant 0 : i32
    %c0_i32_215 = arith.constant 0 : i32
    %c0_i32_216 = arith.constant 0 : i32
    %476 = tpu.memref_slice %arg7[%c0_i32_18, %c0_i32_214, %c0_i32_215, %c0_i32_216] : memref<1x8x8x32xf32, #tpu.memory_space<vmem>> -> memref<1x8x8x32xf32, #tpu.memory_space<vmem>>
    %477 = tpu.memref_squeeze %476 : memref<1x8x8x32xf32, #tpu.memory_space<vmem>> -> memref<8x8x32xf32, #tpu.memory_space<vmem>>
    %478 = arith.index_cast %426 : i32 to index
    %c0_217 = arith.constant 0 : index
    %c0_218 = arith.constant 0 : index
    %479 = vector.load %477[%478, %c0_217, %c0_218] : memref<8x8x32xf32, #tpu.memory_space<vmem>>, vector<1x8x32xf32>
    %480 = vector.shape_cast %479 : vector<1x8x32xf32> to vector<8x32xf32>
    %481 = vector.shape_cast %475 : vector<8x32xf32> to vector<1x8x32xf32>
    tpu.vector_store %477[%478, %c0_217, %c0_218], %481 {strides = array<i32>} : memref<8x8x32xf32, #tpu.memory_space<vmem>>, vector<1x8x32xf32>,
    %c8_i32_219 = arith.constant 8 : i32
    return
  }
  func.func @transform_0(%arg0: i32, %arg1: i32) -> (i32, i32, i32, i32, i32) {
    %c1_i32 = arith.constant 1 : i32
    %0 = arith.subi %c1_i32, %arg0 : i32
    %1 = arith.muli %0, %arg1 : i32
    %c0_i32 = arith.constant 0 : i32
    %2 = arith.subi %c0_i32, %arg1 : i32
    %3 = arith.muli %arg0, %2 : i32
    %4 = arith.addi %1, %3 : i32
    %c0_i32_0 = arith.constant 0 : i32
    %c0_i32_1 = arith.constant 0 : i32
    %c0_i32_2 = arith.constant 0 : i32
    %c0_i32_3 = arith.constant 0 : i32
    return %arg0, %4, %c0_i32_0, %c0_i32_1, %c0_i32_2 : i32, i32, i32, i32, i32
  }
  func.func @transform_1(%arg0: i32, %arg1: i32) -> (i32, i32, i32, i32) {
    %c0_i32 = arith.constant 0 : i32
    %c0_i32_0 = arith.constant 0 : i32
    %c0_i32_1 = arith.constant 0 : i32
    %c0_i32_2 = arith.constant 0 : i32
    return %arg0, %c0_i32, %c0_i32_0, %c0_i32_1 : i32, i32, i32, i32
  }
  func.func @transform_2(%arg0: i32, %arg1: i32) -> (i32, i32, i32) {
    %c0_i32 = arith.constant 0 : i32
    %c0_i32_0 = arith.constant 0 : i32
    %c0_i32_1 = arith.constant 0 : i32
    return %arg0, %c0_i32, %c0_i32_0 : i32, i32, i32
  }
  func.func @transform_3(%arg0: i32, %arg1: i32) -> (i32, i32, i32) {
    %c0_i32 = arith.constant 0 : i32
    %c0_i32_0 = arith.constant 0 : i32
    %c0_i32_1 = arith.constant 0 : i32
    return %arg0, %c0_i32, %c0_i32_0 : i32, i32, i32
  }
  func.func @transform_4(%arg0: i32, %arg1: i32) -> (i32, i32) {
    %c0_i32 = arith.constant 0 : i32
    %c0_i32_0 = arith.constant 0 : i32
    %c0_i32_1 = arith.constant 0 : i32
    return %c0_i32, %c0_i32_0 : i32, i32
  }
  func.func @transform_5(%arg0: i32, %arg1: i32) -> (i32, i32, i32, i32) {
    %c1_i32 = arith.constant 1 : i32
    %0 = arith.subi %c1_i32, %arg0 : i32
    %1 = arith.muli %0, %arg1 : i32
    %c0_i32 = arith.constant 0 : i32
    %2 = arith.subi %c0_i32, %arg1 : i32
    %3 = arith.muli %arg0, %2 : i32
    %4 = arith.addi %1, %3 : i32
    %c0_i32_0 = arith.constant 0 : i32
    %c0_i32_1 = arith.constant 0 : i32
    %c0_i32_2 = arith.constant 0 : i32
    return %arg0, %4, %c0_i32_0, %c0_i32_1 : i32, i32, i32, i32
  }
}

</mosaic_0001>

<bundles_post_ra>
// kernel: encoder_rnn_forward.2
= control target key start
LH: loop header
LB: loop body
LE: loop exit
PB: predicated region body
PF: predicated region fallthrough
CT: control target
= control target key end

     0   :  { %s1859_s18 = smov 0   ;;  %s1861_s19 = smov 0   ;;  %s2202_s0 = inlined_call_operand.vmem [shape: bf16[2,8,3,8,32], index: 0, kind: input, shape index: {}]   ;;  %s2203_s1 = inlined_call_operand.vmem [shape: bf16[2,3,32,32], index: 1, kind: input, shape index: {}]   ;;  %s2204_s2 = inlined_call_operand.vmem [shape: f32[2,1,32], index: 2, kind: input, shape index: {}]   ;;  %s2205_s3 = inlined_call_operand.vmem [shape: f32[2,8,32], index: 3, kind: input, shape index: {}]   ;;  %s2206_s4 = inlined_call_operand.vmem [shape: s32[8,1], index: 4, kind: input, shape index: {}]   ;;  %s2207_s5 = inlined_call_operand.vmem [shape: bf16[2,8,8,32], index: 5, kind: output, shape index: {}]  }
   0x1   :  { %s1863_s20 = smov 0  }
   0x2 LB: > { %s27_s21 = sadd.s32 1, %s1822_s19  ;;  %p1549_p0 = scmp.ge.s32.totalorder %s1826_s20, 1  ;;  %s1826_s20 = sphi %s1863_s20, %s15_s20   ;;  %s1822_s19 = sphi %s1861_s19, %s2209_s19   ;;  %s1818_s18 = sphi %s1859_s18, %s2208_s18  }
   0x3   : > { %p29_p1 = scmp.ge.s32.totalorder %s27_s21, 2  ;;  %p266_p2 = scmp.lt.s32.totalorder %s1826_s20, 3 }
   0x5   : > { %s2211_s21 = smov (%p29_p1, %s27_s21), 0  ;;  %p267_p3 = pnand %p1549_p0, %p266_p2 }
   0x6   : > { %p331_p4 = scmp.lt.s32.totalorder (!%p267_p3), %s1818_s18, 1  ;;  %p405_p5 = scmp.eq.s32.totalorder (!%p267_p3), %s1818_s18, 0 }
   0x7   : > { %270 = sbr.rel (%p267_p3) target bundleno = 1501 (0x5dd), region = 40 }
   0xc   : > { %v1828_v0 = vmov 0   ;;  %s1884_s22 = scalar_select %p331_p4, %s1818_s18, 1  ;;  %v1890_v1 = vld [vmem:[%s2206_s4] sm:$0xff]  ;;  %vm384_vm0 = vcmask 261120   ;;  %vm561_vm13 = vcmask 257024  }
   0xd   : > { %1719 = vset.pattern.permute.xlu0 %v1828_v0  ;;  %1720 = vset.pattern.permute.xlu1 %v1828_v0  ;;  %s1894_s25 = scalar_select %p405_p5, 0, 7 }
   0xe   : > { %1721 = vset.pattern.permute.xlu2 %v1828_v0  ;;  %s1693_s26 = smul.u32 48, %s1884_s22  ;;  %s1552_s27 = sshll.u32 %s1884_s22, 3 }
   0xf   : > { %s357_s30 = scalar_lea.vmem %s2205_s3, %s1552_s27  ;;  %v548_v2 = vstv %s1894_s25  ;;  %s1967_s13 = scalar_lea.vmem %s2204_s2, %s1884_s22 }
  0x10   : > { %s350_s8 = scalar_lea.vmem %s2203_s1, %s1693_s26  ;;  %v383_v3 = vld [vmem:[%s357_s30] sm:$0xff]  ;;  %vm549_vm1 = vcmp.gt.s32.totalorder %v1890_v1, %v548_v2  ;;  %s1692_s14 = smul.u32 96, %s1884_s22 }
  0x11   : > { %v1906_v4 = vld [vmem:[%s350_s8 + $0x8] sm:$0xff]  ;;  %v1908_v5 = vld [vmem:[%s350_s8 + $0x18] sm:$0xff]  ;;  %385 = vst.msk [vmem:[#allocation2] sm:$0xff] %vm384_vm0, %v383_v3  ;;  %v550_v6 = vsel %vm549_vm1, 1, %v1828_v0  ;;  %s1916_s9 = scalar_select %p405_p5, 1, 6 }
  0x12   : > { %v1912_v7 = vld [vmem:[%s350_s8 + $0x28] sm:$0xff]  ;;  %552 = vperm.xlu0 %1719, %v550_v6   ;;  %443 = vmatpush.bf16.msra.mxu0 %v1906_v4  ;;  %v1920_v8 = vld [vmem:[%s350_s8] sm:$0xff]  ;;  %v1922_v9 = vld [vmem:[%s350_s8 + $0x10] sm:$0xff]  ;;  %s1932_s10 = scalar_select %p405_p5, 6, 1 }
  0x13   : > { %468 = vmatpush.bf16.msra.mxu1 %v1908_v5  ;;  %533 = vmatpush.bf16.msra.mxu2 %v1912_v7  ;;  %v1925_v10 = vld [vmem:[%s350_s8 + $0x20] sm:$0xff]  ;;  %v665_v11 = vstv %s1916_s9  ;;  %s1652_s15 = smul.u32 12, %s1894_s25  ;;  %s1974_s23 = scalar_lea.vmem %s2202_s0, %s1692_s14 }
  0x14   : > { %584 = vmatpush.bf16.msra.mxu3 %v1906_v4  ;;  %vm666_vm2 = vcmp.gt.s32.totalorder %v1890_v1, %v665_v11  ;;  %v1245_v15 = vstv %s1932_s10  ;;  %v1981_v38 = vld [vmem:[%s1967_s13] ss:$0 sm:$0xff]  ;;  %s1645_s26 = sshll.u32 %s1884_s22, 5  ;;  %s1593_s30 = sshll.u32 %s1894_s25, 2 }
  0x15   : > { %v667_v12 = vsel %vm666_vm2, 1, %v1828_v0  ;;  %vm1246_vm3 = vcmp.gt.s32.totalorder %v1890_v1, %v1245_v15  ;;  %s1977_s24 = scalar_lea.vmem %s1974_s23, %s1652_s15  ;;  %s1990_s29 = scalar_lea.vmem %s2207_s5, %s1645_s26 }
  0x16   : > { %444 = vmatpush.bf16.msra.mxu0 %v1920_v8  ;;  %v1247_v16 = vsel %vm1246_vm3, 1, %v1828_v0  ;;  %v1661_v17 = vld [vmem:[%s1977_s24] sm:$0xff]   ;;  %v415_v44 = vld [vmem:[%s1977_s24 + $0x8] sm:$0xf]  ;;  %s560_s22 = scalar_lea.vmem %s1990_s29, %s1593_s30  ;;  %s1653_s25 = smul.u32 12, %s1916_s9 }
  0x17   : > { %469 = vmatpush.bf16.msra.mxu1 %v1922_v9  ;;  %534 = vmatpush.bf16.msra.mxu2 %v1925_v10  ;;  %v1662_v18 = vunpack.c.l.bf16 %v1661_v17  ;;  %v1663_v19 = vunpack.c.h.bf16 %v1661_v17  ;;  %v418_v49 = vunpack.c.l.bf16 %v415_v44  ;;  %s2017_s7 = scalar_select %p405_p5, 2, 5 }
  0x18   : > { %v1937_v13 = vld [vmem:[#allocation2] sm:$0xff]  ;;  %585 = vmatpush.bf16.msra.mxu3 %v1920_v8  ;;  %s2012_s6 = scalar_lea.vmem %s1974_s23, %s1653_s25  ;;  %s1600_s12 = sshll.u32 %s1916_s9, 2 }
  0x19   : > { %v420_v14 = vpack.c.bf16 %v1937_v13, %v1937_v13  ;;  %s2021_s8 = scalar_select %p405_p5, 3, 4  ;;  %v781_v44 = vstv %s2017_s7 }
  0x1a   : > { %597 = vmatpush.bf16.msrb.mxu0 %v1908_v5  ;;  %669 = vperm.xlu0 %1719, %v667_v12   ;;  %vm782_vm1 = vcmp.gt.s32.totalorder %v1890_v1, %v781_v44  ;;  %s2032_s11 = scalar_select %p405_p5, 7, 0 }
  0x1b   : > { %650 = vmatpush.bf16.msrb.mxu1 %v1912_v7  ;;  %700 = vmatpush.bf16.msrb.mxu2 %v1906_v4  ;;  %s677_s14 = scalar_lea.vmem %s1990_s29, %s1600_s12  ;;  %s1654_s9 = smul.u32 12, %s2017_s7 }
  0x1c   : > { %1572 = vmatmul.msk.bf16.vlgmr.msra.gmra.mxu0 %vm384_vm0, %v420_v14  ;;  %1581 = vmatmul.msk.bf16.vlgmr.msra.gmra.mxu1 %vm384_vm0, %v420_v14  ;;  %s1607_s16 = sshll.u32 %s2017_s7, 2  ;;  %s1655_s24 = smul.u32 12, %s2021_s8 }
  0x1d   : > { %1592 = vmatmul.msk.bf16.vlgmr.msra.gmra.mxu2 %vm384_vm0, %v420_v14  ;;  %713 = vmatpush.bf16.msrb.mxu3 %v1908_v5  ;;  %s2059_s15 = scalar_lea.vmem %s1974_s23, %s1654_s9  ;;  %s793_s17 = scalar_lea.vmem %s1990_s29, %s1607_s16 }
  0x1e   : > { %598 = vmatpush.bf16.msrb.mxu0 %v1922_v9  ;;  %s798_s26 = scalar_lea.vmem %s1974_s23, %s1655_s24  ;;  %s1614_s18 = sshll.u32 %s2021_s8, 2 }
  0x1f   : > { %651 = vmatpush.bf16.msrb.mxu1 %v1925_v10  ;;  %701 = vmatpush.bf16.msrb.mxu2 %v1920_v8  ;;  %s2087_s27 = scalar_select %p405_p5, 4, 3 }
  0x20   : > { %s2091_s28 = scalar_select %p405_p5, 5, 2 }
  0x21   : > { %714 = vmatpush.bf16.msrb.mxu3 %v1922_v9  ;;  %s909_s30 = scalar_lea.vmem %s1990_s29, %s1614_s18 }
  0x22   : > { %766 = vmatpush.bf16.msra.mxu0 %v1912_v7  ;;  %1249 = vperm.xlu0 %1719, %v1247_v16  }
  0x23   : > { %816 = vmatpush.bf16.msra.mxu1 %v1906_v4  ;;  %829 = vmatpush.bf16.msra.mxu2 %v1908_v5 }
  0x26   : > { %767 = vmatpush.bf16.msra.mxu0 %v1925_v10 }
  0x27   : > { %817 = vmatpush.bf16.msra.mxu1 %v1920_v8  ;;  %830 = vmatpush.bf16.msra.mxu2 %v1922_v9 }
  0x84   : > { %v553_v62 = vpop.permute.xlu0 %552 }
  0x85   : > { %vm554_vm12 = vcmp.eq.s32.totalorder %v553_v62, 1 }
  0x99   : > { %v446_v20 = vpop.f32.mrf.mxu0  ;;  %v471_v21 = vpop.f32.mrf.mxu1 }
  0x9a   : > { %v475_v22 = vadd.f32 %v1662_v18, %v446_v20  ;;  %v495_v23 = vadd.f32 %v1663_v19, %v471_v21 }
  0x9c   : > { %v1582_v24 = vmul.f32 -1.442695, %v475_v22  ;;  %v1583_v25 = vmul.f32 -1.442695, %v495_v23 }
  0x9e   : > { %1723 = vpow2.f32 %v1582_v24 }
  0x9f   : > { %1725 = vpow2.f32 %v1583_v25 }
  0xa0   : > { %v536_v26 = vpop.f32.mrf.mxu2 }
  0xa1   : > { %v448_v27 = vpop.f32.mrf.mxu0  ;;  %v473_v28 = vpop.f32.mrf.mxu1  ;;  %v537_v47 = vadd.f32 %v1981_v38, %v536_v26 }
  0xa4   : > { %v1724_v29 = vpop.eup %1723 }
  0xa5   : > { %v1726_v30 = vpop.eup %1725  ;;  %v479_v31 = vadd.f32 1.0, %v1724_v29 }
  0xa6   : > { %v499_v32 = vadd.f32 1.0, %v1726_v30 }
  0xa7   : > { %1727 = vrcp.f32 %v479_v31  ;;  %v491_v41 = vand.u32 2147483648, %v479_v31  ;;  %v489_v43 = vand.u32 2147483647, %v479_v31  ;;  %vm485_vm5 = vweird.f32 %v479_v31 }
  0xa8   : > { %1729 = vrcp.f32 %v499_v32  ;;  %v538_v33 = vpop.f32.mrf.mxu2  ;;  %vm505_vm8 = vweird.f32 %v499_v32  ;;  %v511_v54 = vand.u32 2147483648, %v499_v32  ;;  %v509_v55 = vand.u32 2147483647, %v499_v32 }
  0xa9   : > { %v492_v48 = vor.u32 1.1754944e-38, %v491_v41  ;;  %vm490_vm7 = vcmp.eq.f32.partialorder %v489_v43, 8.507059e+37 }
  0xaa   : > { %v512_v58 = vor.u32 1.1754944e-38, %v511_v54  ;;  %vm510_vm11 = vcmp.eq.f32.partialorder %v509_v55, 8.507059e+37 }
  0xad   : > { %v1728_v34 = vpop.eup %1727 }
  0xae   : > { %v1730_v35 = vpop.eup %1729  ;;  %v481_v36 = vmul.f32 %v1728_v34, %v479_v31  ;;  %vm486_vm4 = vweird.f32 %v1728_v34 }
  0xaf   : > { %v501_v37 = vmul.f32 %v1730_v35, %v499_v32  ;;  %vm487_vm6 = vmor %vm485_vm5, %vm486_vm4  ;;  %vm506_vm9 = vweird.f32 %v1730_v35 }
  0xb0   : > { %v482_v39 = vsub.f32 1.0, %v481_v36  ;;  %vm507_vm10 = vmor %vm505_vm8, %vm506_vm9 }
  0xb1   : > { %v502_v40 = vsub.f32 1.0, %v501_v37 }
  0xb2   : > { %v483_v42 = vmul.f32 %v1728_v34, %v482_v39 }
  0xb3   : > { %v503_v45 = vmul.f32 %v1730_v35, %v502_v40 }
  0xb4   : > { %v484_v46 = vadd.f32 %v1728_v34, %v483_v42  ;;  %v569_v42 = vld [vmem:[%s2012_s6 + $0x8] sm:$0xf] }
  0xb5   : > { %v504_v52 = vadd.f32 %v1730_v35, %v503_v45 }
  0xb6   : > { %v488_v50 = vsel %vm487_vm6, %v1728_v34, %v484_v46 }
  0xb7   : > { %v493_v51 = vsel %vm490_vm7, %v492_v48, %v488_v50  ;;  %v508_v57 = vsel %vm507_vm10, %v1730_v35, %v504_v52  ;;  %v897_v48 = vstv %s2021_s8  ;;  %s1657_s8 = smul.u32 12, %s2091_s28 }
  0xb8   : > { %v540_v53 = vmul.f32 %v537_v47, %v493_v51  ;;  %v513_v59 = vsel %vm510_vm11, %v512_v58, %v508_v57  ;;  %v783_v47 = vsel %vm782_vm1, 1, %v1828_v0  ;;  %vm898_vm5 = vcmp.gt.s32.totalorder %v1890_v1, %v897_v48 }
  0xb9   : > { %v543_v60 = vsub.f32 1.0, %v513_v59  ;;  %v545_v2 = vmul.f32 %v513_v59, %v1937_v13  ;;  %785 = vperm.xlu1 %1720, %v783_v47   ;;  %v899_v59 = vsel %vm898_vm5, 1, %v1828_v0  ;;  %s2143_s12 = scalar_lea.vmem %s1974_s23, %s1657_s8 }
  0xba   : > { %v541_v56 = vadd.f32 %v540_v53, %v418_v49  ;;  %v572_v49 = vunpack.c.l.bf16 %v569_v42 }
  0xbc   : > { %1731 = vtanh.f32 %v541_v56 }
  0xc1   : > { %901 = vperm.xlu1 %1720, %v899_v59  }
  0xc2   : > { %v1732_v61 = vpop.eup %1731 }
  0xc3   : > { %v544_v63 = vmul.f32 %v1732_v61, %v543_v60  ;;  %v1361_v61 = vstv %s2032_s11 }
  0xc4   : > { %vm1362_vm9 = vcmp.gt.s32.totalorder %v1890_v1, %v1361_v61 }
  0xc5   : > { %v546_v3 = vadd.f32 %v545_v2, %v544_v63 }
  0xc7   : > { %v555_v6 = vsel %vm554_vm12, %v546_v3, %v1937_v13  ;;  %v557_v11 = vsel %vm554_vm12, %v546_v3, 0.0  ;;  %v1665_v13 = vld [vmem:[%s2012_s6] sm:$0xff]   ;;  %s1621_s6 = sshll.u32 %s2087_s27, 2 }
  0xc8   : > { %556 = vst.msk [vmem:[#allocation2] sm:$0xff] %vm384_vm0, %v555_v6  ;;  %v558_v12 = vpack.c.bf16 %v557_v11, %v557_v11  ;;  %v1667_v16 = vunpack.c.h.bf16 %v1665_v13  ;;  %v1666_v21 = vunpack.c.l.bf16 %v1665_v13  ;;  %v1363_v11 = vsel %vm1362_vm9, 1, %v1828_v0  ;;  %s1025_s7 = scalar_lea.vmem %s1990_s29, %s1621_s6 }
  0xc9   : > { %1365 = vperm.xlu1 %1720, %v1363_v11  }
  0xca   : > { %562 = vst.msk [vmem:[%s560_s22] sm:$0xf] %vm561_vm13, %v558_v12  ;;  %v670_v12 = vpop.permute.xlu0 %669  ;;  %s1656_s22 = smul.u32 12, %s2087_s27 }
  0xcb   : > { %vm671_vm10 = vcmp.eq.s32.totalorder %v670_v12, 1 }
  0xcc   : > { %s2121_s25 = scalar_lea.vmem %s1974_s23, %s1656_s22 }
  0xcf   : > { %v1997_v14 = vld [vmem:[#allocation2] sm:$0xff] }
  0xd0   : > { %v574_v15 = vpack.c.bf16 %v1997_v14, %v1997_v14 }
  0xd2   : > { %1595 = vmatmul.msk.bf16.vlgmr.msra.gmra.mxu3 %vm384_vm0, %v574_v15  ;;  %1596 = vmatmul.msk.bf16.vlgmr.msrb.gmra.mxu0 %vm384_vm0, %v574_v15 }
  0xd3   : > { %1599 = vmatmul.msk.bf16.vlgmr.msrb.gmra.mxu1 %vm384_vm0, %v574_v15  ;;  %882 = vmatpush.bf16.msra.mxu3 %v1912_v7 }
  0xd4   : > { %932 = vmatpush.bf16.msrb.mxu0 %v1906_v4  ;;  %945 = vmatpush.bf16.msrb.mxu1 %v1908_v5 }
  0xd7   : > { %883 = vmatpush.bf16.msra.mxu3 %v1925_v10 }
  0xd8   : > { %933 = vmatpush.bf16.msrb.mxu0 %v1920_v8  ;;  %946 = vmatpush.bf16.msrb.mxu1 %v1922_v9 }
 0x14f   : > { %v600_v17 = vpop.f32.mrf.mxu0 }
 0x150   : > { %v624_v18 = vadd.f32 %v1667_v16, %v600_v17  ;;  %v653_v19 = vpop.f32.mrf.mxu1 }
 0x151   : > { %v654_v50 = vadd.f32 %v1981_v38, %v653_v19 }
 0x152   : > { %v1598_v20 = vmul.f32 -1.442695, %v624_v18 }
 0x154   : > { %1733 = vpow2.f32 %v1598_v20 }
 0x155   : > { %v587_v22 = vpop.f32.mrf.mxu3 }
 0x156   : > { %v604_v23 = vadd.f32 %v1666_v21, %v587_v22 }
 0x157   : > { %v602_v24 = vpop.f32.mrf.mxu0 }
 0x158   : > { %v1597_v25 = vmul.f32 -1.442695, %v604_v23  ;;  %v655_v26 = vpop.f32.mrf.mxu1 }
 0x15a   : > { %v1734_v27 = vpop.eup %1733  ;;  %1735 = vpow2.f32 %v1597_v25 }
 0x15b   : > { %v628_v28 = vadd.f32 1.0, %v1734_v27 }
 0x15d   : > { %v589_v29 = vpop.f32.mrf.mxu3  ;;  %1737 = vrcp.f32 %v628_v28  ;;  %v640_v54 = vand.u32 2147483648, %v628_v28  ;;  %vm634_vm6 = vweird.f32 %v628_v28  ;;  %v638_v56 = vand.u32 2147483647, %v628_v28 }
 0x15f   : > { %v641_v60 = vor.u32 1.1754944e-38, %v640_v54  ;;  %vm639_vm8 = vcmp.eq.f32.partialorder %v638_v56, 8.507059e+37 }
 0x160   : > { %v1736_v30 = vpop.eup %1735 }
 0x161   : > { %v608_v31 = vadd.f32 1.0, %v1736_v30 }
 0x163   : > { %1739 = vrcp.f32 %v608_v31  ;;  %v1738_v32 = vpop.eup %1737  ;;  %v620_v39 = vand.u32 2147483648, %v608_v31  ;;  %v618_v41 = vand.u32 2147483647, %v608_v31  ;;  %vm614_vm15 = vweird.f32 %v608_v31 }
 0x164   : > { %v630_v33 = vmul.f32 %v1738_v32, %v628_v28  ;;  %vm635_vm4 = vweird.f32 %v1738_v32 }
 0x165   : > { %v621_v46 = vor.u32 1.1754944e-38, %v620_v39  ;;  %vm619_vm3 = vcmp.eq.f32.partialorder %v618_v41, 8.507059e+37  ;;  %vm636_vm7 = vmor %vm634_vm6, %vm635_vm4 }
 0x166   : > { %v631_v36 = vsub.f32 1.0, %v630_v33 }
 0x168   : > { %v632_v43 = vmul.f32 %v1738_v32, %v631_v36 }
 0x169   : > { %v1740_v34 = vpop.eup %1739 }
 0x16a   : > { %v610_v35 = vmul.f32 %v1740_v34, %v608_v31  ;;  %vm615_vm14 = vweird.f32 %v1740_v34  ;;  %v633_v52 = vadd.f32 %v1738_v32, %v632_v43 }
 0x16b   : > { %vm616_vm2 = vmor %vm614_vm15, %vm615_vm14 }
 0x16c   : > { %v611_v37 = vsub.f32 1.0, %v610_v35  ;;  %v637_v58 = vsel %vm636_vm7, %v1738_v32, %v633_v52 }
 0x16d   : > { %v642_v62 = vsel %vm639_vm8, %v641_v60, %v637_v58 }
 0x16e   : > { %v612_v40 = vmul.f32 %v1740_v34, %v611_v37  ;;  %v660_v63 = vsub.f32 1.0, %v642_v62  ;;  %v662_v3 = vmul.f32 %v642_v62, %v1997_v14 }
 0x170   : > { %v613_v45 = vadd.f32 %v1740_v34, %v612_v40 }
 0x172   : > { %v617_v51 = vsel %vm616_vm2, %v1740_v34, %v613_v45 }
 0x173   : > { %v622_v53 = vsel %vm619_vm3, %v621_v46, %v617_v51  ;;  %v685_v46 = vld [vmem:[%s2059_s15 + $0x8] sm:$0xf] }
 0x174   : > { %v657_v55 = vmul.f32 %v654_v50, %v622_v53  ;;  %v688_v51 = vunpack.c.l.bf16 %v685_v46 }
 0x176   : > { %v658_v57 = vadd.f32 %v657_v55, %v572_v49 }
 0x178   : > { %1741 = vtanh.f32 %v658_v57 }
 0x17e   : > { %v1742_v2 = vpop.eup %1741 }
 0x17f   : > { %v661_v6 = vmul.f32 %v1742_v2, %v660_v63  ;;  %v786_v2 = vpop.permute.xlu1 %785 }
 0x180   : > { %vm787_vm5 = vcmp.eq.s32.totalorder %v786_v2, 1 }
 0x181   : > { %v663_v15 = vadd.f32 %v662_v3, %v661_v6 }
 0x183   : > { %v672_v13 = vsel %vm671_vm10, %v663_v15, %v1997_v14  ;;  %v674_v16 = vsel %vm671_vm10, %v663_v15, 0.0  ;;  %v1669_v14 = vld [vmem:[%s2059_s15] sm:$0xff]   ;;  %s1658_s15 = smul.u32 12, %s1932_s10 }
 0x184   : > { %673 = vst.msk [vmem:[#allocation2] sm:$0xff] %vm384_vm0, %v672_v13  ;;  %v675_v17 = vpack.c.bf16 %v674_v16, %v674_v16  ;;  %v1670_v21 = vunpack.c.l.bf16 %v1669_v14  ;;  %v1671_v22 = vunpack.c.h.bf16 %v1669_v14 }
 0x185   : > { %s2163_s16 = scalar_lea.vmem %s1974_s23, %s1658_s15 }
 0x186   : > { %678 = vst.msk [vmem:[%s677_s14] sm:$0xf] %vm561_vm13, %v675_v17  ;;  %s1628_s14 = sshll.u32 %s2091_s28, 2 }
 0x187   : > { %s1141_s9 = scalar_lea.vmem %s1990_s29, %s1628_s14 }
 0x18b   : > { %v2044_v18 = vld [vmem:[#allocation2] sm:$0xff] }
 0x18c   : > { %v690_v19 = vpack.c.bf16 %v2044_v18, %v2044_v18 }
 0x18e   : > { %1602 = vmatmul.msk.bf16.vlgmr.msrb.gmra.mxu2 %vm384_vm0, %v690_v19  ;;  %1603 = vmatmul.msk.bf16.vlgmr.msrb.gmra.mxu3 %vm384_vm0, %v690_v19 }
 0x18f   : > { %1606 = vmatmul.msk.bf16.vlgmr.msra.gmra.mxu0 %vm384_vm0, %v690_v19  ;;  %998 = vmatpush.bf16.msrb.mxu2 %v1912_v7 }
 0x190   : > { %1048 = vmatpush.bf16.msrb.mxu3 %v1906_v4  ;;  %1061 = vmatpush.bf16.msra.mxu0 %v1908_v5 }
 0x193   : > { %999 = vmatpush.bf16.msrb.mxu2 %v1925_v10 }
 0x194   : > { %1049 = vmatpush.bf16.msrb.mxu3 %v1920_v8  ;;  %1062 = vmatpush.bf16.msra.mxu0 %v1922_v9 }
 0x20c   : > { %v769_v20 = vpop.f32.mrf.mxu0 }
 0x20d   : > { %v770_v50 = vadd.f32 %v1981_v38, %v769_v20 }
 0x211   : > { %v703_v23 = vpop.f32.mrf.mxu2  ;;  %v716_v24 = vpop.f32.mrf.mxu3 }
 0x212   : > { %v720_v25 = vadd.f32 %v1670_v21, %v703_v23  ;;  %v740_v26 = vadd.f32 %v1671_v22, %v716_v24 }
 0x214   : > { %v1604_v27 = vmul.f32 -1.442695, %v720_v25  ;;  %v1605_v28 = vmul.f32 -1.442695, %v740_v26  ;;  %v771_v29 = vpop.f32.mrf.mxu0 }
 0x216   : > { %1743 = vpow2.f32 %v1604_v27 }
 0x217   : > { %1745 = vpow2.f32 %v1605_v28 }
 0x219   : > { %v705_v30 = vpop.f32.mrf.mxu2  ;;  %v718_v31 = vpop.f32.mrf.mxu3 }
 0x21c   : > { %v1744_v32 = vpop.eup %1743 }
 0x21d   : > { %v1746_v33 = vpop.eup %1745  ;;  %v724_v34 = vadd.f32 1.0, %v1744_v32 }
 0x21e   : > { %v744_v35 = vadd.f32 1.0, %v1746_v33 }
 0x21f   : > { %1747 = vrcp.f32 %v724_v34  ;;  %v736_v42 = vand.u32 2147483648, %v724_v34  ;;  %v734_v45 = vand.u32 2147483647, %v724_v34  ;;  %vm730_vm12 = vweird.f32 %v724_v34 }
 0x220   : > { %1749 = vrcp.f32 %v744_v35  ;;  %v756_v56 = vand.u32 2147483648, %v744_v35  ;;  %vm750_vm2 = vweird.f32 %v744_v35  ;;  %v754_v57 = vand.u32 2147483647, %v744_v35 }
 0x221   : > { %v737_v49 = vor.u32 1.1754944e-38, %v736_v42  ;;  %vm735_vm15 = vcmp.eq.f32.partialorder %v734_v45, 8.507059e+37 }
 0x222   : > { %v757_v60 = vor.u32 1.1754944e-38, %v756_v56  ;;  %vm755_vm4 = vcmp.eq.f32.partialorder %v754_v57, 8.507059e+37 }
 0x225   : > { %v1748_v36 = vpop.eup %1747 }
 0x226   : > { %v1750_v37 = vpop.eup %1749  ;;  %v726_v39 = vmul.f32 %v1748_v36, %v724_v34  ;;  %vm731_vm11 = vweird.f32 %v1748_v36 }
 0x227   : > { %v746_v40 = vmul.f32 %v1750_v37, %v744_v35  ;;  %vm732_vm14 = vmor %vm730_vm12, %vm731_vm11  ;;  %vm751_vm1 = vweird.f32 %v1750_v37 }
 0x228   : > { %v727_v41 = vsub.f32 1.0, %v726_v39  ;;  %vm752_vm3 = vmor %vm750_vm2, %vm751_vm1  ;;  %v801_v39 = vld [vmem:[%s798_s26 + $0x8] sm:$0xf] }
 0x229   : > { %v747_v43 = vsub.f32 1.0, %v746_v40  ;;  %v804_v46 = vunpack.c.l.bf16 %v801_v39 }
 0x22a   : > { %v728_v44 = vmul.f32 %v1748_v36, %v727_v41 }
 0x22b   : > { %v748_v47 = vmul.f32 %v1750_v37, %v747_v43  ;;  %v1013_v43 = vstv %s2087_s27 }
 0x22c   : > { %v729_v48 = vadd.f32 %v1748_v36, %v728_v44  ;;  %vm1014_vm8 = vcmp.gt.s32.totalorder %v1890_v1, %v1013_v43 }
 0x22d   : > { %v749_v54 = vadd.f32 %v1750_v37, %v748_v47 }
 0x22e   : > { %v733_v52 = vsel %vm732_vm14, %v1748_v36, %v729_v48  ;;  %v1015_v48 = vsel %vm1014_vm8, 1, %v1828_v0 }
 0x22f   : > { %v738_v53 = vsel %vm735_vm15, %v737_v49, %v733_v52  ;;  %v753_v59 = vsel %vm752_vm3, %v1750_v37, %v749_v54  ;;  %v1129_v49 = vstv %s2091_s28  ;;  %1017 = vperm.xlu2 %1721, %v1015_v48  }
 0x230   : > { %v773_v55 = vmul.f32 %v770_v50, %v738_v53  ;;  %v758_v61 = vsel %vm755_vm4, %v757_v60, %v753_v59  ;;  %vm1130_vm12 = vcmp.gt.s32.totalorder %v1890_v1, %v1129_v49 }
 0x231   : > { %v776_v62 = vsub.f32 1.0, %v758_v61  ;;  %v778_v6 = vmul.f32 %v758_v61, %v2044_v18  ;;  %v1131_v60 = vsel %vm1130_vm12, 1, %v1828_v0 }
 0x232   : > { %v774_v58 = vadd.f32 %v773_v55, %v688_v51 }
 0x234   : > { %1751 = vtanh.f32 %v774_v58 }
 0x237   : > { %1133 = vperm.xlu2 %1721, %v1131_v60  }
 0x23a   : > { %v1752_v63 = vpop.eup %1751 }
 0x23b   : > { %v777_v3 = vmul.f32 %v1752_v63, %v776_v62 }
 0x23d   : > { %v779_v11 = vadd.f32 %v778_v6, %v777_v3 }
 0x23f   : > { %v788_v12 = vsel %vm787_vm5, %v779_v11, %v2044_v18  ;;  %v790_v15 = vsel %vm787_vm5, %v779_v11, 0.0  ;;  %v1673_v18 = vld [vmem:[%s798_s26] sm:$0xff]   ;;  %v902_v11 = vpop.permute.xlu1 %901 }
 0x240   : > { %789 = vst.msk [vmem:[#allocation2] sm:$0xff] %vm384_vm0, %v788_v12  ;;  %v791_v13 = vpack.c.bf16 %v790_v15, %v790_v15  ;;  %v1674_v19 = vunpack.c.l.bf16 %v1673_v18  ;;  %v1675_v22 = vunpack.c.h.bf16 %v1673_v18  ;;  %vm903_vm2 = vcmp.eq.s32.totalorder %v902_v11, 1 }
 0x242   : > { %794 = vst.msk [vmem:[%s793_s17] sm:$0xf] %vm561_vm13, %v791_v13 }
 0x247   : > { %v2070_v16 = vld [vmem:[#allocation2] sm:$0xff] }
 0x248   : > { %v806_v17 = vpack.c.bf16 %v2070_v16, %v2070_v16 }
 0x24a   : > { %1609 = vmatmul.msk.bf16.vlgmr.msra.gmra.mxu1 %vm384_vm0, %v806_v17  ;;  %1610 = vmatmul.msk.bf16.vlgmr.msra.gmra.mxu2 %vm384_vm0, %v806_v17 }
 0x24b   : > { %1613 = vmatmul.msk.bf16.vlgmr.msra.gmra.mxu3 %vm384_vm0, %v806_v17  ;;  %1114 = vmatpush.bf16.msra.mxu1 %v1912_v7 }
 0x24c   : > { %1164 = vmatpush.bf16.msra.mxu2 %v1906_v4  ;;  %1177 = vmatpush.bf16.msra.mxu3 %v1908_v5 }
 0x24f   : > { %1115 = vmatpush.bf16.msra.mxu1 %v1925_v10 }
 0x250   : > { %1165 = vmatpush.bf16.msra.mxu2 %v1920_v8  ;;  %1178 = vmatpush.bf16.msra.mxu3 %v1922_v9 }
 0x2c7   : > { %v819_v14 = vpop.f32.mrf.mxu1 }
 0x2c8   : > { %v836_v20 = vadd.f32 %v1674_v19, %v819_v14 }
 0x2ca   : > { %v1611_v21 = vmul.f32 -1.442695, %v836_v20 }
 0x2cc   : > { %1753 = vpow2.f32 %v1611_v21 }
 0x2cd   : > { %v832_v23 = vpop.f32.mrf.mxu2 }
 0x2ce   : > { %v856_v24 = vadd.f32 %v1675_v22, %v832_v23  ;;  %v885_v25 = vpop.f32.mrf.mxu3 }
 0x2cf   : > { %v821_v26 = vpop.f32.mrf.mxu1  ;;  %v886_v52 = vadd.f32 %v1981_v38, %v885_v25 }
 0x2d0   : > { %v1612_v27 = vmul.f32 -1.442695, %v856_v24 }
 0x2d2   : > { %v1754_v28 = vpop.eup %1753  ;;  %1755 = vpow2.f32 %v1612_v27 }
 0x2d3   : > { %v840_v29 = vadd.f32 1.0, %v1754_v28 }
 0x2d5   : > { %1757 = vrcp.f32 %v840_v29  ;;  %v834_v30 = vpop.f32.mrf.mxu2  ;;  %v852_v37 = vand.u32 2147483648, %v840_v29  ;;  %v850_v41 = vand.u32 2147483647, %v840_v29  ;;  %vm846_vm7 = vweird.f32 %v840_v29 }
 0x2d6   : > { %v887_v31 = vpop.f32.mrf.mxu3 }
 0x2d7   : > { %v853_v47 = vor.u32 1.1754944e-38, %v852_v37  ;;  %vm851_vm10 = vcmp.eq.f32.partialorder %v850_v41, 8.507059e+37 }
 0x2d8   : > { %v1756_v32 = vpop.eup %1755 }
 0x2d9   : > { %v860_v33 = vadd.f32 1.0, %v1756_v32 }
 0x2db   : > { %v1758_v34 = vpop.eup %1757  ;;  %1759 = vrcp.f32 %v860_v33  ;;  %v872_v53 = vand.u32 2147483648, %v860_v33  ;;  %v870_v57 = vand.u32 2147483647, %v860_v33  ;;  %vm866_vm14 = vweird.f32 %v860_v33 }
 0x2dc   : > { %v842_v35 = vmul.f32 %v1758_v34, %v840_v29  ;;  %vm847_vm6 = vweird.f32 %v1758_v34 }
 0x2dd   : > { %vm848_vm9 = vmor %vm846_vm7, %vm847_vm6  ;;  %v873_v61 = vor.u32 1.1754944e-38, %v872_v53  ;;  %vm871_vm1 = vcmp.eq.f32.partialorder %v870_v57, 8.507059e+37 }
 0x2de   : > { %v843_v36 = vsub.f32 1.0, %v842_v35 }
 0x2e0   : > { %v844_v40 = vmul.f32 %v1758_v34, %v843_v36 }
 0x2e1   : > { %v1760_v42 = vpop.eup %1759 }
 0x2e2   : > { %v862_v44 = vmul.f32 %v1760_v42, %v860_v33  ;;  %v845_v45 = vadd.f32 %v1758_v34, %v844_v40  ;;  %vm867_vm11 = vweird.f32 %v1760_v42  ;;  %v917_v40 = vld [vmem:[%s2121_s25 + $0x8] sm:$0xf] }
 0x2e3   : > { %vm868_vm15 = vmor %vm866_vm14, %vm867_vm11 }
 0x2e4   : > { %v863_v50 = vsub.f32 1.0, %v862_v44  ;;  %v849_v51 = vsel %vm848_vm9, %v1758_v34, %v845_v45  ;;  %v920_v44 = vunpack.c.l.bf16 %v917_v40 }
 0x2e5   : > { %v854_v54 = vsel %vm851_vm10, %v853_v47, %v849_v51 }
 0x2e6   : > { %v864_v55 = vmul.f32 %v1760_v42, %v863_v50  ;;  %v889_v56 = vmul.f32 %v886_v52, %v854_v54 }
 0x2e8   : > { %v865_v58 = vadd.f32 %v1760_v42, %v864_v55  ;;  %v890_v59 = vadd.f32 %v889_v56, %v804_v46 }
 0x2ea   : > { %v869_v62 = vsel %vm868_vm15, %v1760_v42, %v865_v58  ;;  %1761 = vtanh.f32 %v890_v59  ;;  %v1018_v58 = vpop.permute.xlu2 %1017 }
 0x2eb   : > { %v874_v63 = vsel %vm871_vm1, %v873_v61, %v869_v62  ;;  %vm1019_vm11 = vcmp.eq.s32.totalorder %v1018_v58, 1 }
 0x2ec   : > { %v892_v2 = vsub.f32 1.0, %v874_v63  ;;  %v894_v1 = vmul.f32 %v874_v63, %v2070_v16 }
 0x2f0   : > { %v1762_v3 = vpop.eup %1761 }
 0x2f1   : > { %v893_v6 = vmul.f32 %v1762_v3, %v892_v2 }
 0x2f3   : > { %v895_v12 = vadd.f32 %v894_v1, %v893_v6  ;;  %v1681_v1 = vld [vmem:[%s2143_s12] sm:$0xff]  }
 0x2f4   : > { %v1683_v11 = vunpack.c.h.bf16 %v1681_v1 }
 0x2f5   : > { %v904_v15 = vsel %vm903_vm2, %v895_v12, %v2070_v16  ;;  %v906_v0 = vsel %vm903_vm2, %v895_v12, 0.0  ;;  %v1677_v16 = vld [vmem:[%s2121_s25] sm:$0xff]  }
 0x2f6   : > { %905 = vst.msk [vmem:[#allocation2] sm:$0xff] %vm384_vm0, %v904_v15  ;;  %v907_v13 = vpack.c.bf16 %v906_v0, %v906_v0  ;;  %v1678_v19 = vunpack.c.l.bf16 %v1677_v16  ;;  %v1679_v14 = vunpack.c.h.bf16 %v1677_v16 }
 0x2f8   : > { %910 = vst.msk [vmem:[%s909_s30] sm:$0xf] %vm561_vm13, %v907_v13 }
 0x2fd   : > { %v2106_v17 = vld [vmem:[#allocation2] sm:$0xff] }
 0x2fe   : > { %v922_v18 = vpack.c.bf16 %v2106_v17, %v2106_v17 }
 0x300   : > { %1616 = vmatmul.msk.bf16.vlgmr.msrb.gmra.mxu0 %vm384_vm0, %v922_v18  ;;  %1617 = vmatmul.msk.bf16.vlgmr.msrb.gmra.mxu1 %vm384_vm0, %v922_v18 }
 0x301   : > { %1620 = vmatmul.msk.bf16.vlgmr.msrb.gmra.mxu2 %vm384_vm0, %v922_v18  ;;  %1230 = vmatpush.bf16.msrb.mxu0 %v1912_v7 }
 0x302   : > { %1280 = vmatpush.bf16.msrb.mxu1 %v1906_v4  ;;  %1293 = vmatpush.bf16.msrb.mxu2 %v1908_v5 }
 0x305   : > { %1231 = vmatpush.bf16.msrb.mxu0 %v1925_v10 }
 0x306   : > { %1281 = vmatpush.bf16.msrb.mxu1 %v1920_v8  ;;  %1294 = vmatpush.bf16.msrb.mxu2 %v1922_v9 }
 0x37d   : > { %v935_v20 = vpop.f32.mrf.mxu0  ;;  %v948_v21 = vpop.f32.mrf.mxu1 }
 0x37e   : > { %v952_v22 = vadd.f32 %v1678_v19, %v935_v20  ;;  %v972_v23 = vadd.f32 %v1679_v14, %v948_v21 }
 0x380   : > { %v1618_v4 = vmul.f32 -1.442695, %v952_v22  ;;  %v1619_v24 = vmul.f32 -1.442695, %v972_v23 }
 0x382   : > { %1763 = vpow2.f32 %v1618_v4 }
 0x383   : > { %1765 = vpow2.f32 %v1619_v24 }
 0x384   : > { %v1001_v5 = vpop.f32.mrf.mxu2 }
 0x385   : > { %v937_v25 = vpop.f32.mrf.mxu0  ;;  %v950_v8 = vpop.f32.mrf.mxu1  ;;  %v1002_v46 = vadd.f32 %v1981_v38, %v1001_v5 }
 0x388   : > { %v1764_v26 = vpop.eup %1763 }
 0x389   : > { %v1766_v9 = vpop.eup %1765  ;;  %v956_v27 = vadd.f32 1.0, %v1764_v26 }
 0x38a   : > { %v976_v28 = vadd.f32 1.0, %v1766_v9 }
 0x38b   : > { %1767 = vrcp.f32 %v956_v27  ;;  %v968_v36 = vand.u32 2147483648, %v956_v27  ;;  %v966_v39 = vand.u32 2147483647, %v956_v27  ;;  %vm962_vm4 = vweird.f32 %v956_v27 }
 0x38c   : > { %1769 = vrcp.f32 %v976_v28  ;;  %v1003_v29 = vpop.f32.mrf.mxu2  ;;  %v988_v50 = vand.u32 2147483648, %v976_v28  ;;  %vm982_vm8 = vweird.f32 %v976_v28  ;;  %v986_v51 = vand.u32 2147483647, %v976_v28 }
 0x38d   : > { %v969_v43 = vor.u32 1.1754944e-38, %v968_v36  ;;  %vm967_vm6 = vcmp.eq.f32.partialorder %v966_v39, 8.507059e+37  ;;  %v1033_v29 = vld [vmem:[%s2143_s12 + $0x8] sm:$0xf] }
 0x38e   : > { %v989_v54 = vor.u32 1.1754944e-38, %v988_v50  ;;  %vm987_vm10 = vcmp.eq.f32.partialorder %v986_v51, 8.507059e+37 }
 0x391   : > { %v1768_v30 = vpop.eup %1767 }
 0x392   : > { %v1770_v31 = vpop.eup %1769  ;;  %v958_v32 = vmul.f32 %v1768_v30, %v956_v27  ;;  %vm963_vm3 = vweird.f32 %v1768_v30 }
 0x393   : > { %v978_v33 = vmul.f32 %v1770_v31, %v976_v28  ;;  %vm964_vm5 = vmor %vm962_vm4, %vm963_vm3  ;;  %vm983_vm7 = vweird.f32 %v1770_v31 }
 0x394   : > { %v959_v34 = vsub.f32 1.0, %v958_v32  ;;  %vm984_vm9 = vmor %vm982_vm8, %vm983_vm7 }
 0x395   : > { %v979_v35 = vsub.f32 1.0, %v978_v33  ;;  %v1036_v33 = vunpack.c.l.bf16 %v1033_v29 }
 0x396   : > { %v960_v37 = vmul.f32 %v1768_v30, %v959_v34 }
 0x397   : > { %v980_v41 = vmul.f32 %v1770_v31, %v979_v35 }
 0x398   : > { %v961_v42 = vadd.f32 %v1768_v30, %v960_v37 }
 0x399   : > { %v981_v48 = vadd.f32 %v1770_v31, %v980_v41 }
 0x39a   : > { %v965_v45 = vsel %vm964_vm5, %v1768_v30, %v961_v42 }
 0x39b   : > { %v970_v47 = vsel %vm967_vm6, %v969_v43, %v965_v45  ;;  %v985_v53 = vsel %vm984_vm9, %v1770_v31, %v981_v48 }
 0x39c   : > { %v1005_v49 = vmul.f32 %v1002_v46, %v970_v47  ;;  %v990_v55 = vsel %vm987_vm10, %v989_v54, %v985_v53  ;;  %v1134_v47 = vpop.permute.xlu2 %1133 }
 0x39d   : > { %v1008_v56 = vsub.f32 1.0, %v990_v55  ;;  %v1010_v60 = vmul.f32 %v990_v55, %v2106_v17  ;;  %vm1135_vm6 = vcmp.eq.s32.totalorder %v1134_v47, 1 }
 0x39e   : > { %v1006_v52 = vadd.f32 %v1005_v49, %v920_v44 }
 0x3a0   : > { %1771 = vtanh.f32 %v1006_v52 }
 0x3a6   : > { %v1772_v57 = vpop.eup %1771 }
 0x3a7   : > { %v1009_v59 = vmul.f32 %v1772_v57, %v1008_v56  ;;  %v1685_v56 = vld [vmem:[%s2163_s16] sm:$0xff]  }
 0x3a8   : > { %v1686_v58 = vunpack.c.l.bf16 %v1685_v56 }
 0x3a9   : > { %v1011_v61 = vadd.f32 %v1010_v60, %v1009_v59  ;;  %v1687_v59 = vunpack.c.h.bf16 %v1685_v56 }
 0x3ab   : > { %v1020_v62 = vsel %vm1019_vm11, %v1011_v61, %v2106_v17  ;;  %v1022_v63 = vsel %vm1019_vm11, %v1011_v61, 0.0  ;;  %v1682_v17 = vunpack.c.l.bf16 %v1681_v1 }
 0x3ac   : > { %1021 = vst.msk [vmem:[#allocation2] sm:$0xff] %vm384_vm0, %v1020_v62  ;;  %v1023_v2 = vpack.c.bf16 %v1022_v63, %v1022_v63 }
 0x3ae   : > { %1026 = vst.msk [vmem:[%s1025_s7] sm:$0xf] %vm561_vm13, %v1023_v2 }
 0x3b3   : > { %v2132_v3 = vld [vmem:[#allocation2] sm:$0xff] }
 0x3b4   : > { %v1038_v6 = vpack.c.bf16 %v2132_v3, %v2132_v3 }
 0x3b6   : > { %1623 = vmatmul.msk.bf16.vlgmr.msrb.gmra.mxu3 %vm384_vm0, %v1038_v6  ;;  %1624 = vmatmul.msk.bf16.vlgmr.msra.gmra.mxu0 %vm384_vm0, %v1038_v6 }
 0x3b7   : > { %1627 = vmatmul.msk.bf16.vlgmr.msra.gmra.mxu1 %vm384_vm0, %v1038_v6  ;;  %1346 = vmatpush.bf16.msrb.mxu3 %v1912_v7 }
 0x3bb   : > { %1347 = vmatpush.bf16.msrb.mxu3 %v1925_v10 }
 0x433   : > { %v1064_v12 = vpop.f32.mrf.mxu0 }
 0x434   : > { %v1088_v15 = vadd.f32 %v1683_v11, %v1064_v12  ;;  %v1117_v0 = vpop.f32.mrf.mxu1 }
 0x435   : > { %v1118_v34 = vadd.f32 %v1981_v38, %v1117_v0 }
 0x436   : > { %v1626_v13 = vmul.f32 -1.442695, %v1088_v15 }
 0x438   : > { %1773 = vpow2.f32 %v1626_v13 }
 0x439   : > { %v1051_v18 = vpop.f32.mrf.mxu3 }
 0x43a   : > { %v1068_v16 = vadd.f32 %v1682_v17, %v1051_v18 }
 0x43b   : > { %v1066_v19 = vpop.f32.mrf.mxu0 }
 0x43c   : > { %v1625_v14 = vmul.f32 -1.442695, %v1068_v16  ;;  %v1119_v20 = vpop.f32.mrf.mxu1 }
 0x43e   : > { %v1774_v7 = vpop.eup %1773  ;;  %1775 = vpow2.f32 %v1625_v14 }
 0x43f   : > { %v1092_v10 = vadd.f32 1.0, %v1774_v7 }
 0x441   : > { %v1053_v21 = vpop.f32.mrf.mxu3  ;;  %1777 = vrcp.f32 %v1092_v10  ;;  %v1104_v39 = vand.u32 2147483648, %v1092_v10  ;;  %vm1098_vm3 = vweird.f32 %v1092_v10  ;;  %v1102_v41 = vand.u32 2147483647, %v1092_v10 }
 0x443   : > { %v1105_v44 = vor.u32 1.1754944e-38, %v1104_v39  ;;  %vm1103_vm5 = vcmp.eq.f32.partialorder %v1102_v41, 8.507059e+37 }
 0x444   : > { %v1776_v22 = vpop.eup %1775 }
 0x445   : > { %v1072_v23 = vadd.f32 1.0, %v1776_v22  ;;  %v1149_v22 = vld [vmem:[%s2163_s16 + $0x8] sm:$0xf] }
 0x447   : > { %1779 = vrcp.f32 %v1072_v23  ;;  %v1778_v4 = vpop.eup %1777  ;;  %v1084_v9 = vand.u32 2147483648, %v1072_v23  ;;  %v1082_v28 = vand.u32 2147483647, %v1072_v23  ;;  %vm1078_vm14 = vweird.f32 %v1072_v23 }
 0x448   : > { %v1094_v24 = vmul.f32 %v1778_v4, %v1092_v10  ;;  %vm1099_vm2 = vweird.f32 %v1778_v4 }
 0x449   : > { %v1085_v32 = vor.u32 1.1754944e-38, %v1084_v9  ;;  %vm1083_vm1 = vcmp.eq.f32.partialorder %v1082_v28, 8.507059e+37  ;;  %vm1100_vm4 = vmor %vm1098_vm3, %vm1099_vm2 }
 0x44a   : > { %v1095_v8 = vsub.f32 1.0, %v1094_v24 }
 0x44c   : > { %v1096_v30 = vmul.f32 %v1778_v4, %v1095_v8  ;;  %v1152_v8 = vunpack.c.l.bf16 %v1149_v22 }
 0x44d   : > { %v1780_v5 = vpop.eup %1779 }
 0x44e   : > { %v1074_v25 = vmul.f32 %v1780_v5, %v1072_v23  ;;  %vm1079_vm12 = vweird.f32 %v1780_v5  ;;  %v1097_v36 = vadd.f32 %v1778_v4, %v1096_v30 }
 0x44f   : > { %vm1080_vm15 = vmor %vm1078_vm14, %vm1079_vm12 }
 0x450   : > { %v1075_v26 = vsub.f32 1.0, %v1074_v25  ;;  %v1101_v43 = vsel %vm1100_vm4, %v1778_v4, %v1097_v36 }
 0x451   : > { %v1106_v45 = vsel %vm1103_vm5, %v1105_v44, %v1101_v43 }
 0x452   : > { %v1076_v27 = vmul.f32 %v1780_v5, %v1075_v26  ;;  %v1124_v46 = vsub.f32 1.0, %v1106_v45  ;;  %v1126_v48 = vmul.f32 %v1106_v45, %v2132_v3 }
 0x454   : > { %v1077_v31 = vadd.f32 %v1780_v5, %v1076_v27 }
 0x456   : > { %v1081_v35 = vsel %vm1080_vm15, %v1780_v5, %v1077_v31  ;;  %v2168_v5 = vld [vmem:[%s1967_s13] ss:$0 sm:$0xff]  ;;  %s1635_s13 = sshll.u32 %s1932_s10, 2  ;;  %s1659_s10 = smul.u32 12, %s2032_s11 }
 0x457   : > { %v1086_v37 = vsel %vm1083_vm1, %v1085_v32, %v1081_v35  ;;  %s1257_s17 = scalar_lea.vmem %s1990_s29, %s1635_s13 }
 0x458   : > { %v1121_v40 = vmul.f32 %v1118_v34, %v1086_v37  ;;  %v1250_v37 = vpop.permute.xlu0 %1249  ;;  %s1262_s24 = scalar_lea.vmem %s1974_s23, %s1659_s10  ;;  %s1642_s23 = sshll.u32 %s2032_s11, 2 }
 0x459   : > { %vm1251_vm1 = vcmp.eq.s32.totalorder %v1250_v37, 1  ;;  %s1373_s26 = scalar_lea.vmem %s1990_s29, %s1642_s23 }
 0x45a   : > { %v1122_v42 = vadd.f32 %v1121_v40, %v1036_v33 }
 0x45c   : > { %1781 = vtanh.f32 %v1122_v42 }
 0x462   : > { %v1782_v38 = vpop.eup %1781 }
 0x463   : > { %v1125_v49 = vmul.f32 %v1782_v38, %v1124_v46  ;;  %v1689_v38 = vld [vmem:[%s1262_s24] sm:$0xff]  }
 0x464   : > { %v1690_v47 = vunpack.c.l.bf16 %v1689_v38 }
 0x465   : > { %v1127_v50 = vadd.f32 %v1126_v48, %v1125_v49 }
 0x467   : > { %v1136_v51 = vsel %vm1135_vm6, %v1127_v50, %v2132_v3  ;;  %v1138_v52 = vsel %vm1135_vm6, %v1127_v50, 0.0 }
 0x468   : > { %1137 = vst.msk [vmem:[#allocation2] sm:$0xff] %vm384_vm0, %v1136_v51  ;;  %v1139_v53 = vpack.c.bf16 %v1138_v52, %v1138_v52  ;;  %v1691_v51 = vunpack.c.h.bf16 %v1689_v38 }
 0x46a   : > { %1142 = vst.msk [vmem:[%s1141_s9] sm:$0xf] %vm561_vm13, %v1139_v53 }
 0x46f   : > { %v2154_v54 = vld [vmem:[#allocation2] sm:$0xff] }
 0x470   : > { %v1154_v55 = vpack.c.bf16 %v2154_v54, %v2154_v54 }
 0x472   : > { %1630 = vmatmul.msk.bf16.vlgmr.msra.gmra.mxu2 %vm384_vm0, %v1154_v55  ;;  %1631 = vmatmul.msk.bf16.vlgmr.msra.gmra.mxu3 %vm384_vm0, %v1154_v55 }
 0x473   : > { %1634 = vmatmul.msk.bf16.vlgmr.msrb.gmra.mxu0 %vm384_vm0, %v1154_v55 }
 0x4f0   : > { %v1233_v57 = vpop.f32.mrf.mxu0 }
 0x4f1   : > { %v1234_v25 = vadd.f32 %v2168_v5, %v1233_v57 }
 0x4f5   : > { %v1167_v60 = vpop.f32.mrf.mxu2  ;;  %v1180_v61 = vpop.f32.mrf.mxu3 }
 0x4f6   : > { %v1184_v62 = vadd.f32 %v1686_v58, %v1167_v60  ;;  %v1204_v63 = vadd.f32 %v1687_v59, %v1180_v61 }
 0x4f8   : > { %v1632_v2 = vmul.f32 -1.442695, %v1184_v62  ;;  %v1633_v3 = vmul.f32 -1.442695, %v1204_v63  ;;  %v1235_v6 = vpop.f32.mrf.mxu0 }
 0x4fa   : > { %1783 = vpow2.f32 %v1632_v2 }
 0x4fb   : > { %1785 = vpow2.f32 %v1633_v3 }
 0x4fd   : > { %v1169_v1 = vpop.f32.mrf.mxu2  ;;  %v1182_v11 = vpop.f32.mrf.mxu3 }
 0x4fe   : > { %v1265_v1 = vld [vmem:[%s1262_s24 + $0x8] sm:$0xf] }
 0x500   : > { %v1784_v12 = vpop.eup %1783 }
 0x501   : > { %v1786_v15 = vpop.eup %1785  ;;  %v1188_v0 = vadd.f32 1.0, %v1784_v12 }
 0x502   : > { %v1208_v13 = vadd.f32 1.0, %v1786_v15 }
 0x503   : > { %1787 = vrcp.f32 %v1188_v0  ;;  %v1200_v20 = vand.u32 2147483648, %v1188_v0  ;;  %v1198_v21 = vand.u32 2147483647, %v1188_v0  ;;  %vm1194_vm8 = vweird.f32 %v1188_v0 }
 0x504   : > { %1789 = vrcp.f32 %v1208_v13  ;;  %v1220_v29 = vand.u32 2147483648, %v1208_v13  ;;  %vm1214_vm12 = vweird.f32 %v1208_v13  ;;  %v1218_v30 = vand.u32 2147483647, %v1208_v13 }
 0x505   : > { %v1201_v24 = vor.u32 1.1754944e-38, %v1200_v20  ;;  %vm1199_vm10 = vcmp.eq.f32.partialorder %v1198_v21, 8.507059e+37 }
 0x506   : > { %v1221_v33 = vor.u32 1.1754944e-38, %v1220_v29  ;;  %vm1219_vm15 = vcmp.eq.f32.partialorder %v1218_v30, 8.507059e+37 }
 0x509   : > { %v1788_v17 = vpop.eup %1787 }
 0x50a   : > { %v1790_v18 = vpop.eup %1789  ;;  %v1190_v16 = vmul.f32 %v1788_v17, %v1188_v0  ;;  %vm1195_vm7 = vweird.f32 %v1788_v17 }
 0x50b   : > { %v1210_v19 = vmul.f32 %v1790_v18, %v1208_v13  ;;  %vm1196_vm9 = vmor %vm1194_vm8, %vm1195_vm7  ;;  %vm1215_vm11 = vweird.f32 %v1790_v18 }
 0x50c   : > { %v1191_v14 = vsub.f32 1.0, %v1190_v16  ;;  %vm1216_vm14 = vmor %vm1214_vm12, %vm1215_vm11 }
 0x50d   : > { %v1211_v7 = vsub.f32 1.0, %v1210_v19 }
 0x50e   : > { %v1192_v10 = vmul.f32 %v1788_v17, %v1191_v14 }
 0x50f   : > { %v1212_v23 = vmul.f32 %v1790_v18, %v1211_v7 }
 0x510   : > { %v1193_v4 = vadd.f32 %v1788_v17, %v1192_v10 }
 0x511   : > { %v1213_v27 = vadd.f32 %v1790_v18, %v1212_v23 }
 0x512   : > { %v1197_v26 = vsel %vm1196_vm9, %v1788_v17, %v1193_v4  ;;  %v1268_v17 = vunpack.c.l.bf16 %v1265_v1 }
 0x513   : > { %v1202_v9 = vsel %vm1199_vm10, %v1201_v24, %v1197_v26  ;;  %v1217_v32 = vsel %vm1216_vm14, %v1790_v18, %v1213_v27 }
 0x514   : > { %v1237_v28 = vmul.f32 %v1234_v25, %v1202_v9  ;;  %v1222_v34 = vsel %vm1219_vm15, %v1221_v33, %v1217_v32 }
 0x515   : > { %v1240_v35 = vsub.f32 1.0, %v1222_v34  ;;  %v1242_v40 = vmul.f32 %v1222_v34, %v2154_v54 }
 0x516   : > { %v1238_v31 = vadd.f32 %v1237_v28, %v1152_v8 }
 0x518   : > { %1791 = vtanh.f32 %v1238_v31 }
 0x51e   : > { %v1792_v36 = vpop.eup %1791 }
 0x51f   : > { %v1241_v39 = vmul.f32 %v1792_v36, %v1240_v35 }
 0x521   : > { %v1243_v41 = vadd.f32 %v1242_v40, %v1241_v39 }
 0x523   : > { %v1252_v42 = vsel %vm1251_vm1, %v1243_v41, %v2154_v54  ;;  %v1254_v43 = vsel %vm1251_vm1, %v1243_v41, 0.0 }
 0x524   : > { %1253 = vst.msk [vmem:[#allocation2] sm:$0xff] %vm384_vm0, %v1252_v42  ;;  %v1255_v44 = vpack.c.bf16 %v1254_v43, %v1254_v43 }
 0x526   : > { %1258 = vst.msk [vmem:[%s1257_s17] sm:$0xf] %vm561_vm13, %v1255_v44 }
 0x52b   : > { %v2177_v45 = vld [vmem:[#allocation2] sm:$0xff] }
 0x52c   : > { %v1270_v46 = vpack.c.bf16 %v2177_v45, %v2177_v45 }
 0x52e   : > { %1637 = vmatmul.msk.bf16.vlgmr.msrb.gmra.mxu1 %vm384_vm0, %v1270_v46  ;;  %1638 = vmatmul.msk.bf16.vlgmr.msrb.gmra.mxu2 %vm384_vm0, %v1270_v46 }
 0x52f   : > { %1641 = vmatmul.msk.bf16.vlgmr.msrb.gmra.mxu3 %vm384_vm0, %v1270_v46 }
 0x5ab   : > { %v1283_v48 = vpop.f32.mrf.mxu1 }
 0x5ac   : > { %v1300_v49 = vadd.f32 %v1690_v47, %v1283_v48 }
 0x5ae   : > { %v1639_v50 = vmul.f32 -1.442695, %v1300_v49 }
 0x5b0   : > { %1793 = vpow2.f32 %v1639_v50 }
 0x5b1   : > { %v1296_v52 = vpop.f32.mrf.mxu2 }
 0x5b2   : > { %v1320_v53 = vadd.f32 %v1691_v51, %v1296_v52  ;;  %v1349_v54 = vpop.f32.mrf.mxu3 }
 0x5b3   : > { %v1285_v55 = vpop.f32.mrf.mxu1  ;;  %v1350_v14 = vadd.f32 %v2168_v5, %v1349_v54  ;;  %v1366_v5 = vpop.permute.xlu1 %1365 }
 0x5b4   : > { %v1640_v56 = vmul.f32 -1.442695, %v1320_v53  ;;  %vm1367_vm10 = vcmp.eq.s32.totalorder %v1366_v5, 1 }
 0x5b6   : > { %v1794_v57 = vpop.eup %1793  ;;  %1795 = vpow2.f32 %v1640_v56 }
 0x5b7   : > { %v1304_v58 = vadd.f32 1.0, %v1794_v57 }
 0x5b9   : > { %1797 = vrcp.f32 %v1304_v58  ;;  %v1298_v59 = vpop.f32.mrf.mxu2  ;;  %v1316_v6 = vand.u32 2147483648, %v1304_v58  ;;  %v1314_v12 = vand.u32 2147483647, %v1304_v58  ;;  %vm1310_vm3 = vweird.f32 %v1304_v58 }
 0x5ba   : > { %v1351_v60 = vpop.f32.mrf.mxu3 }
 0x5bb   : > { %v1317_v18 = vor.u32 1.1754944e-38, %v1316_v6  ;;  %vm1315_vm5 = vcmp.eq.f32.partialorder %v1314_v12, 8.507059e+37 }
 0x5bc   : > { %v1796_v61 = vpop.eup %1795 }
 0x5bd   : > { %v1324_v62 = vadd.f32 1.0, %v1796_v61 }
 0x5bf   : > { %v1798_v63 = vpop.eup %1797  ;;  %1799 = vrcp.f32 %v1324_v62  ;;  %v1336_v10 = vand.u32 2147483648, %v1324_v62  ;;  %v1334_v22 = vand.u32 2147483647, %v1324_v62  ;;  %vm1330_vm7 = vweird.f32 %v1324_v62 }
 0x5c0   : > { %v1306_v2 = vmul.f32 %v1798_v63, %v1304_v58  ;;  %vm1311_vm2 = vweird.f32 %v1798_v63 }
 0x5c1   : > { %vm1312_vm4 = vmor %vm1310_vm3, %vm1311_vm2  ;;  %v1337_v24 = vor.u32 1.1754944e-38, %v1336_v10  ;;  %vm1335_vm9 = vcmp.eq.f32.partialorder %v1334_v22, 8.507059e+37 }
 0x5c2   : > { %v1307_v3 = vsub.f32 1.0, %v1306_v2 }
 0x5c4   : > { %v1308_v11 = vmul.f32 %v1798_v63, %v1307_v3 }
 0x5c5   : > { %v1800_v15 = vpop.eup %1799 }
 0x5c6   : > { %v1326_v0 = vmul.f32 %v1800_v15, %v1324_v62  ;;  %v1309_v13 = vadd.f32 %v1798_v63, %v1308_v11  ;;  %vm1331_vm6 = vweird.f32 %v1800_v15 }
 0x5c7   : > { %vm1332_vm8 = vmor %vm1330_vm7, %vm1331_vm6 }
 0x5c8   : > { %v1327_v16 = vsub.f32 1.0, %v1326_v0  ;;  %v1313_v19 = vsel %vm1312_vm4, %v1798_v63, %v1309_v13 }
 0x5c9   : > { %v1318_v20 = vsel %vm1315_vm5, %v1317_v18, %v1313_v19 }
 0x5ca   : > { %v1328_v7 = vmul.f32 %v1800_v15, %v1327_v16  ;;  %v1353_v21 = vmul.f32 %v1350_v14, %v1318_v20 }
 0x5cc   : > { %v1329_v23 = vadd.f32 %v1800_v15, %v1328_v7  ;;  %v1354_v4 = vadd.f32 %v1353_v21, %v1268_v17 }
 0x5ce   : > { %v1333_v25 = vsel %vm1332_vm8, %v1800_v15, %v1329_v23  ;;  %1801 = vtanh.f32 %v1354_v4 }
 0x5cf   : > { %v1338_v8 = vsel %vm1335_vm9, %v1337_v24, %v1333_v25 }
 0x5d0   : > { %v1356_v26 = vsub.f32 1.0, %v1338_v8  ;;  %v1358_v28 = vmul.f32 %v1338_v8, %v2177_v45 }
 0x5d4   : > { %v1802_v9 = vpop.eup %1801 }
 0x5d5   : > { %v1357_v27 = vmul.f32 %v1802_v9, %v1356_v26 }
 0x5d7   : > { %v1359_v29 = vadd.f32 %v1358_v28, %v1357_v27 }
 0x5d9   : > { %v1368_v30 = vsel %vm1367_vm10, %v1359_v29, %v2177_v45  ;;  %v1370_v31 = vsel %vm1367_vm10, %v1359_v29, 0.0 }
 0x5da   : > { %1369 = vst.msk [vmem:[#allocation2] sm:$0xff] %vm384_vm0, %v1368_v30  ;;  %v1371_v32 = vpack.c.bf16 %v1370_v31, %v1370_v31 }
 0x5dc   : > { %1374 = vst.msk [vmem:[%s1373_s26] sm:$0xf] %vm561_vm13, %v1371_v32 }
 0x5dd PF: > { %s15_s20 = sadd.s32 1, %s1826_s20   ;;  %s2208_s18 = smov %s1822_s19 }
 0x5de   : > { %p12_p6 = scmp.ge.s32.totalorder %s15_s20, 4   ;;  %s2209_s19 = smov %s2211_s21 }
 0x5e0   :  { %14 = sbr.rel (!%p12_p6) target bundleno = 2 (0x2), region = 101 }

// kernel: encoder_rnn_forward.3
= control target key start
LH: loop header
LB: loop body
LE: loop exit
PB: predicated region body
PF: predicated region fallthrough
CT: control target
= control target key end

     0   :  { %s1850_s18 = smov 0   ;;  %s1852_s19 = smov 0   ;;  %s2193_s0 = inlined_call_operand.vmem [shape: bf16[2,8,3,8,32], index: 0, kind: input, shape index: {}]   ;;  %s2194_s1 = inlined_call_operand.vmem [shape: bf16[2,3,32,32], index: 1, kind: input, shape index: {}]   ;;  %s2195_s2 = inlined_call_operand.vmem [shape: f32[2,1,32], index: 2, kind: input, shape index: {}]   ;;  %s2196_s3 = inlined_call_operand.vmem [shape: f32[2,8,32], index: 3, kind: input, shape index: {}]   ;;  %s2197_s4 = inlined_call_operand.vmem [shape: s32[8,1], index: 4, kind: input, shape index: {}]   ;;  %s2198_s5 = inlined_call_operand.vmem [shape: f32[2,8,8,32], index: 5, kind: output, shape index: {}]  }
   0x1   :  { %s1854_s20 = smov 0  }
   0x2 LB: > { %s27_s21 = sadd.s32 1, %s1813_s19  ;;  %p1540_p0 = scmp.ge.s32.totalorder %s1817_s20, 1  ;;  %s1817_s20 = sphi %s1854_s20, %s15_s20   ;;  %s1813_s19 = sphi %s1852_s19, %s2200_s19   ;;  %s1809_s18 = sphi %s1850_s18, %s2199_s18  }
   0x3   : > { %p29_p1 = scmp.ge.s32.totalorder %s27_s21, 2  ;;  %p266_p2 = scmp.lt.s32.totalorder %s1817_s20, 3 }
   0x5   : > { %s2202_s21 = smov (%p29_p1, %s27_s21), 0  ;;  %p267_p3 = pnand %p1540_p0, %p266_p2 }
   0x6   : > { %p331_p4 = scmp.lt.s32.totalorder (!%p267_p3), %s1809_s18, 1  ;;  %p405_p5 = scmp.eq.s32.totalorder (!%p267_p3), %s1809_s18, 0 }
   0x7   : > { %270 = sbr.rel (%p267_p3) target bundleno = 1500 (0x5dc), region = 40 }
   0xc   : > { %v1819_v0 = vmov 0   ;;  %s1875_s22 = scalar_select %p331_p4, %s1809_s18, 1  ;;  %v1881_v1 = vld [vmem:[%s2197_s4] sm:$0xff]  ;;  %vm384_vm0 = vcmask 261120  }
   0xd   : > { %1710 = vset.pattern.permute.xlu0 %v1819_v0  ;;  %1711 = vset.pattern.permute.xlu1 %v1819_v0  ;;  %s1885_s25 = scalar_select %p405_p5, 0, 7 }
   0xe   : > { %1712 = vset.pattern.permute.xlu2 %v1819_v0  ;;  %s1684_s26 = smul.u32 48, %s1875_s22  ;;  %s1543_s27 = sshll.u32 %s1875_s22, 3 }
   0xf   : > { %s357_s30 = scalar_lea.vmem %s2196_s3, %s1543_s27  ;;  %v548_v2 = vstv %s1885_s25  ;;  %s1958_s13 = scalar_lea.vmem %s2195_s2, %s1875_s22 }
  0x10   : > { %s350_s8 = scalar_lea.vmem %s2194_s1, %s1684_s26  ;;  %v383_v3 = vld [vmem:[%s357_s30] sm:$0xff]  ;;  %vm549_vm1 = vcmp.gt.s32.totalorder %v1881_v1, %v548_v2  ;;  %s1683_s14 = smul.u32 96, %s1875_s22 }
  0x11   : > { %v1897_v4 = vld [vmem:[%s350_s8 + $0x8] sm:$0xff]  ;;  %v1899_v5 = vld [vmem:[%s350_s8 + $0x18] sm:$0xff]  ;;  %385 = vst.msk [vmem:[#allocation2] sm:$0xff] %vm384_vm0, %v383_v3  ;;  %v550_v6 = vsel %vm549_vm1, 1, %v1819_v0  ;;  %s1907_s9 = scalar_select %p405_p5, 1, 6 }
  0x12   : > { %v1903_v7 = vld [vmem:[%s350_s8 + $0x28] sm:$0xff]  ;;  %552 = vperm.xlu0 %1710, %v550_v6   ;;  %443 = vmatpush.bf16.msra.mxu0 %v1897_v4  ;;  %v1911_v8 = vld [vmem:[%s350_s8] sm:$0xff]  ;;  %v1913_v9 = vld [vmem:[%s350_s8 + $0x10] sm:$0xff]  ;;  %s1923_s10 = scalar_select %p405_p5, 6, 1 }
  0x13   : > { %468 = vmatpush.bf16.msra.mxu1 %v1899_v5  ;;  %533 = vmatpush.bf16.msra.mxu2 %v1903_v7  ;;  %v1916_v10 = vld [vmem:[%s350_s8 + $0x20] sm:$0xff]  ;;  %v663_v11 = vstv %s1907_s9  ;;  %s1643_s15 = smul.u32 12, %s1885_s25  ;;  %s1965_s23 = scalar_lea.vmem %s2193_s0, %s1683_s14 }
  0x14   : > { %582 = vmatpush.bf16.msra.mxu3 %v1897_v4  ;;  %vm664_vm2 = vcmp.gt.s32.totalorder %v1881_v1, %v663_v11  ;;  %v1238_v15 = vstv %s1923_s10  ;;  %v1972_v38 = vld [vmem:[%s1958_s13] ss:$0 sm:$0xff]  ;;  %s1636_s26 = sshll.u32 %s1875_s22, 6  ;;  %s1584_s30 = sshll.u32 %s1885_s25, 3 }
  0x15   : > { %v665_v12 = vsel %vm664_vm2, 1, %v1819_v0  ;;  %vm1239_vm3 = vcmp.gt.s32.totalorder %v1881_v1, %v1238_v15  ;;  %s1968_s24 = scalar_lea.vmem %s1965_s23, %s1643_s15  ;;  %s1980_s29 = scalar_lea.vmem %s2198_s5, %s1636_s26 }
  0x16   : > { %444 = vmatpush.bf16.msra.mxu0 %v1911_v8  ;;  %v1240_v16 = vsel %vm1239_vm3, 1, %v1819_v0  ;;  %v1652_v17 = vld [vmem:[%s1968_s24] sm:$0xff]   ;;  %v415_v44 = vld [vmem:[%s1968_s24 + $0x8] sm:$0xf]  ;;  %s559_s6 = scalar_lea.vmem %s1980_s29, %s1584_s30  ;;  %s1644_s22 = smul.u32 12, %s1907_s9 }
  0x17   : > { %469 = vmatpush.bf16.msra.mxu1 %v1913_v9  ;;  %534 = vmatpush.bf16.msra.mxu2 %v1916_v10  ;;  %v1653_v18 = vunpack.c.l.bf16 %v1652_v17  ;;  %v1654_v19 = vunpack.c.h.bf16 %v1652_v17  ;;  %v418_v49 = vunpack.c.l.bf16 %v415_v44  ;;  %s2008_s7 = scalar_select %p405_p5, 2, 5 }
  0x18   : > { %v1928_v13 = vld [vmem:[#allocation2] sm:$0xff]  ;;  %583 = vmatpush.bf16.msra.mxu3 %v1911_v8  ;;  %s2003_s25 = scalar_lea.vmem %s1965_s23, %s1644_s22  ;;  %s1591_s12 = sshll.u32 %s1907_s9, 3 }
  0x19   : > { %v420_v14 = vpack.c.bf16 %v1928_v13, %v1928_v13  ;;  %s2012_s8 = scalar_select %p405_p5, 3, 4 }
  0x1a   : > { %595 = vmatpush.bf16.msrb.mxu0 %v1899_v5  ;;  %667 = vperm.xlu0 %1710, %v665_v12   ;;  %s2023_s11 = scalar_select %p405_p5, 7, 0 }
  0x1b   : > { %648 = vmatpush.bf16.msrb.mxu1 %v1903_v7  ;;  %697 = vmatpush.bf16.msrb.mxu2 %v1897_v4  ;;  %s674_s14 = scalar_lea.vmem %s1980_s29, %s1591_s12  ;;  %s1645_s9 = smul.u32 12, %s2008_s7 }
  0x1c   : > { %1563 = vmatmul.msk.bf16.vlgmr.msra.gmra.mxu0 %vm384_vm0, %v420_v14  ;;  %1572 = vmatmul.msk.bf16.vlgmr.msra.gmra.mxu1 %vm384_vm0, %v420_v14  ;;  %s1598_s16 = sshll.u32 %s2008_s7, 3  ;;  %s1646_s24 = smul.u32 12, %s2012_s8 }
  0x1d   : > { %1583 = vmatmul.msk.bf16.vlgmr.msra.gmra.mxu2 %vm384_vm0, %v420_v14  ;;  %710 = vmatpush.bf16.msrb.mxu3 %v1899_v5  ;;  %s2050_s15 = scalar_lea.vmem %s1965_s23, %s1645_s9  ;;  %s789_s17 = scalar_lea.vmem %s1980_s29, %s1598_s16 }
  0x1e   : > { %596 = vmatpush.bf16.msrb.mxu0 %v1913_v9  ;;  %s794_s26 = scalar_lea.vmem %s1965_s23, %s1646_s24  ;;  %s1605_s18 = sshll.u32 %s2012_s8, 3 }
  0x1f   : > { %649 = vmatpush.bf16.msrb.mxu1 %v1916_v10  ;;  %698 = vmatpush.bf16.msrb.mxu2 %v1911_v8  ;;  %s2078_s27 = scalar_select %p405_p5, 4, 3 }
  0x20   : > { %s2082_s28 = scalar_select %p405_p5, 5, 2 }
  0x21   : > { %711 = vmatpush.bf16.msrb.mxu3 %v1913_v9  ;;  %s904_s30 = scalar_lea.vmem %s1980_s29, %s1605_s18 }
  0x22   : > { %763 = vmatpush.bf16.msra.mxu0 %v1903_v7  ;;  %1242 = vperm.xlu0 %1710, %v1240_v16  }
  0x23   : > { %812 = vmatpush.bf16.msra.mxu1 %v1897_v4  ;;  %825 = vmatpush.bf16.msra.mxu2 %v1899_v5 }
  0x26   : > { %764 = vmatpush.bf16.msra.mxu0 %v1916_v10 }
  0x27   : > { %813 = vmatpush.bf16.msra.mxu1 %v1911_v8  ;;  %826 = vmatpush.bf16.msra.mxu2 %v1913_v9 }
  0x84   : > { %v553_v62 = vpop.permute.xlu0 %552 }
  0x85   : > { %vm554_vm12 = vcmp.eq.s32.totalorder %v553_v62, 1 }
  0x99   : > { %v446_v20 = vpop.f32.mrf.mxu0  ;;  %v471_v21 = vpop.f32.mrf.mxu1 }
  0x9a   : > { %v475_v22 = vadd.f32 %v1653_v18, %v446_v20  ;;  %v495_v23 = vadd.f32 %v1654_v19, %v471_v21 }
  0x9c   : > { %v1573_v24 = vmul.f32 -1.442695, %v475_v22  ;;  %v1574_v25 = vmul.f32 -1.442695, %v495_v23 }
  0x9e   : > { %1714 = vpow2.f32 %v1573_v24 }
  0x9f   : > { %1716 = vpow2.f32 %v1574_v25 }
  0xa0   : > { %v536_v26 = vpop.f32.mrf.mxu2 }
  0xa1   : > { %v448_v27 = vpop.f32.mrf.mxu0  ;;  %v473_v28 = vpop.f32.mrf.mxu1  ;;  %v537_v47 = vadd.f32 %v1972_v38, %v536_v26 }
  0xa4   : > { %v1715_v29 = vpop.eup %1714 }
  0xa5   : > { %v1717_v30 = vpop.eup %1716  ;;  %v479_v31 = vadd.f32 1.0, %v1715_v29 }
  0xa6   : > { %v499_v32 = vadd.f32 1.0, %v1717_v30 }
  0xa7   : > { %1718 = vrcp.f32 %v479_v31  ;;  %v491_v41 = vand.u32 2147483648, %v479_v31  ;;  %v489_v43 = vand.u32 2147483647, %v479_v31  ;;  %vm485_vm5 = vweird.f32 %v479_v31 }
  0xa8   : > { %1720 = vrcp.f32 %v499_v32  ;;  %v538_v33 = vpop.f32.mrf.mxu2  ;;  %vm505_vm8 = vweird.f32 %v499_v32  ;;  %v511_v54 = vand.u32 2147483648, %v499_v32  ;;  %v509_v55 = vand.u32 2147483647, %v499_v32 }
  0xa9   : > { %v492_v48 = vor.u32 1.1754944e-38, %v491_v41  ;;  %vm490_vm7 = vcmp.eq.f32.partialorder %v489_v43, 8.507059e+37  ;;  %v567_v41 = vld [vmem:[%s2003_s25 + $0x8] sm:$0xf]  ;;  %v778_v43 = vstv %s2008_s7 }
  0xaa   : > { %v512_v58 = vor.u32 1.1754944e-38, %v511_v54  ;;  %vm510_vm11 = vcmp.eq.f32.partialorder %v509_v55, 8.507059e+37  ;;  %vm779_vm15 = vcmp.gt.s32.totalorder %v1881_v1, %v778_v43 }
  0xad   : > { %v1719_v34 = vpop.eup %1718 }
  0xae   : > { %v1721_v35 = vpop.eup %1720  ;;  %v481_v36 = vmul.f32 %v1719_v34, %v479_v31  ;;  %vm486_vm4 = vweird.f32 %v1719_v34 }
  0xaf   : > { %v501_v37 = vmul.f32 %v1721_v35, %v499_v32  ;;  %vm487_vm6 = vmor %vm485_vm5, %vm486_vm4  ;;  %vm506_vm9 = vweird.f32 %v1721_v35 }
  0xb0   : > { %v482_v39 = vsub.f32 1.0, %v481_v36  ;;  %vm507_vm10 = vmor %vm505_vm8, %vm506_vm9 }
  0xb1   : > { %v502_v40 = vsub.f32 1.0, %v501_v37 }
  0xb2   : > { %v483_v42 = vmul.f32 %v1719_v34, %v482_v39 }
  0xb3   : > { %v503_v45 = vmul.f32 %v1721_v35, %v502_v40 }
  0xb4   : > { %v484_v46 = vadd.f32 %v1719_v34, %v483_v42 }
  0xb5   : > { %v504_v52 = vadd.f32 %v1721_v35, %v503_v45 }
  0xb6   : > { %v488_v50 = vsel %vm487_vm6, %v1719_v34, %v484_v46  ;;  %v780_v46 = vsel %vm779_vm15, 1, %v1819_v0 }
  0xb7   : > { %v493_v51 = vsel %vm490_vm7, %v492_v48, %v488_v50  ;;  %v508_v57 = vsel %vm507_vm10, %v1721_v35, %v504_v52  ;;  %v570_v48 = vunpack.c.l.bf16 %v567_v41  ;;  %782 = vperm.xlu1 %1711, %v780_v46  }
  0xb8   : > { %v540_v53 = vmul.f32 %v537_v47, %v493_v51  ;;  %v513_v59 = vsel %vm510_vm11, %v512_v58, %v508_v57  ;;  %v893_v47 = vstv %s2012_s8  ;;  %s1648_s8 = smul.u32 12, %s2082_s28 }
  0xb9   : > { %v543_v60 = vsub.f32 1.0, %v513_v59  ;;  %v545_v2 = vmul.f32 %v513_v59, %v1928_v13  ;;  %vm894_vm4 = vcmp.gt.s32.totalorder %v1881_v1, %v893_v47 }
  0xba   : > { %v541_v56 = vadd.f32 %v540_v53, %v418_v49  ;;  %v895_v58 = vsel %vm894_vm4, 1, %v1819_v0  ;;  %s2134_s12 = scalar_lea.vmem %s1965_s23, %s1648_s8 }
  0xbc   : > { %1722 = vtanh.f32 %v541_v56 }
  0xbf   : > { %897 = vperm.xlu1 %1711, %v895_v58  }
  0xc2   : > { %v1723_v61 = vpop.eup %1722 }
  0xc3   : > { %v544_v63 = vmul.f32 %v1723_v61, %v543_v60  ;;  %v1353_v60 = vstv %s2023_s11 }
  0xc4   : > { %vm1354_vm8 = vcmp.gt.s32.totalorder %v1881_v1, %v1353_v60 }
  0xc5   : > { %v546_v3 = vadd.f32 %v545_v2, %v544_v63 }
  0xc7   : > { %v555_v6 = vsel %vm554_vm12, %v546_v3, %v1928_v13  ;;  %v557_v11 = vsel %vm554_vm12, %v546_v3, 0.0  ;;  %v1656_v13 = vld [vmem:[%s2003_s25] sm:$0xff]   ;;  %s1612_s25 = sshll.u32 %s2078_s27, 3 }
  0xc8   : > { %556 = vst.msk [vmem:[#allocation2] sm:$0xff] %vm384_vm0, %v555_v6  ;;  %v1658_v15 = vunpack.c.h.bf16 %v1656_v13  ;;  %v1657_v20 = vunpack.c.l.bf16 %v1656_v13  ;;  %v1355_v6 = vsel %vm1354_vm8, 1, %v1819_v0  ;;  %s1019_s7 = scalar_lea.vmem %s1980_s29, %s1612_s25 }
  0xc9   : > { %560 = vst.msk [vmem:[%s559_s6] sm:$0xff] %vm384_vm0, %v557_v11  ;;  %v668_v11 = vpop.permute.xlu0 %667  ;;  %1357 = vperm.xlu1 %1711, %v1355_v6   ;;  %s1647_s6 = smul.u32 12, %s2078_s27 }
  0xca   : > { %vm669_vm9 = vcmp.eq.s32.totalorder %v668_v11, 1 }
  0xcb   : > { %s2112_s22 = scalar_lea.vmem %s1965_s23, %s1647_s6 }
  0xcf   : > { %v1988_v12 = vld [vmem:[#allocation2] sm:$0xff] }
  0xd0   : > { %v572_v14 = vpack.c.bf16 %v1988_v12, %v1988_v12 }
  0xd2   : > { %1586 = vmatmul.msk.bf16.vlgmr.msra.gmra.mxu3 %vm384_vm0, %v572_v14  ;;  %1587 = vmatmul.msk.bf16.vlgmr.msrb.gmra.mxu0 %vm384_vm0, %v572_v14 }
  0xd3   : > { %1590 = vmatmul.msk.bf16.vlgmr.msrb.gmra.mxu1 %vm384_vm0, %v572_v14  ;;  %878 = vmatpush.bf16.msra.mxu3 %v1903_v7 }
  0xd4   : > { %927 = vmatpush.bf16.msrb.mxu0 %v1897_v4  ;;  %940 = vmatpush.bf16.msrb.mxu1 %v1899_v5 }
  0xd7   : > { %879 = vmatpush.bf16.msra.mxu3 %v1916_v10 }
  0xd8   : > { %928 = vmatpush.bf16.msrb.mxu0 %v1911_v8  ;;  %941 = vmatpush.bf16.msrb.mxu1 %v1913_v9 }
 0x14f   : > { %v598_v16 = vpop.f32.mrf.mxu0 }
 0x150   : > { %v622_v17 = vadd.f32 %v1658_v15, %v598_v16  ;;  %v651_v18 = vpop.f32.mrf.mxu1 }
 0x151   : > { %v652_v49 = vadd.f32 %v1972_v38, %v651_v18 }
 0x152   : > { %v1589_v19 = vmul.f32 -1.442695, %v622_v17 }
 0x154   : > { %1724 = vpow2.f32 %v1589_v19 }
 0x155   : > { %v585_v21 = vpop.f32.mrf.mxu3 }
 0x156   : > { %v602_v22 = vadd.f32 %v1657_v20, %v585_v21 }
 0x157   : > { %v600_v23 = vpop.f32.mrf.mxu0 }
 0x158   : > { %v1588_v24 = vmul.f32 -1.442695, %v602_v22  ;;  %v653_v25 = vpop.f32.mrf.mxu1 }
 0x15a   : > { %v1725_v26 = vpop.eup %1724  ;;  %1726 = vpow2.f32 %v1588_v24 }
 0x15b   : > { %v626_v27 = vadd.f32 1.0, %v1725_v26 }
 0x15d   : > { %v587_v28 = vpop.f32.mrf.mxu3  ;;  %1728 = vrcp.f32 %v626_v27  ;;  %v638_v53 = vand.u32 2147483648, %v626_v27  ;;  %vm632_vm5 = vweird.f32 %v626_v27  ;;  %v636_v55 = vand.u32 2147483647, %v626_v27 }
 0x15f   : > { %v639_v59 = vor.u32 1.1754944e-38, %v638_v53  ;;  %vm637_vm7 = vcmp.eq.f32.partialorder %v636_v55, 8.507059e+37 }
 0x160   : > { %v1727_v29 = vpop.eup %1726 }
 0x161   : > { %v606_v30 = vadd.f32 1.0, %v1727_v29 }
 0x163   : > { %1730 = vrcp.f32 %v606_v30  ;;  %v1729_v31 = vpop.eup %1728  ;;  %v618_v37 = vand.u32 2147483648, %v606_v30  ;;  %v616_v40 = vand.u32 2147483647, %v606_v30  ;;  %vm612_vm14 = vweird.f32 %v606_v30 }
 0x164   : > { %v628_v32 = vmul.f32 %v1729_v31, %v626_v27  ;;  %vm633_vm3 = vweird.f32 %v1729_v31 }
 0x165   : > { %v619_v45 = vor.u32 1.1754944e-38, %v618_v37  ;;  %vm617_vm2 = vcmp.eq.f32.partialorder %v616_v40, 8.507059e+37  ;;  %vm634_vm6 = vmor %vm632_vm5, %vm633_vm3 }
 0x166   : > { %v629_v35 = vsub.f32 1.0, %v628_v32 }
 0x168   : > { %v630_v42 = vmul.f32 %v1729_v31, %v629_v35 }
 0x169   : > { %v1731_v33 = vpop.eup %1730 }
 0x16a   : > { %v608_v34 = vmul.f32 %v1731_v33, %v606_v30  ;;  %vm613_vm13 = vweird.f32 %v1731_v33  ;;  %v631_v51 = vadd.f32 %v1729_v31, %v630_v42 }
 0x16b   : > { %vm614_vm1 = vmor %vm612_vm14, %vm613_vm13 }
 0x16c   : > { %v609_v36 = vsub.f32 1.0, %v608_v34  ;;  %v635_v57 = vsel %vm634_vm6, %v1729_v31, %v631_v51 }
 0x16d   : > { %v640_v61 = vsel %vm637_vm7, %v639_v59, %v635_v57 }
 0x16e   : > { %v610_v39 = vmul.f32 %v1731_v33, %v609_v36  ;;  %v658_v62 = vsub.f32 1.0, %v640_v61  ;;  %v660_v2 = vmul.f32 %v640_v61, %v1988_v12 }
 0x170   : > { %v611_v44 = vadd.f32 %v1731_v33, %v610_v39 }
 0x172   : > { %v615_v50 = vsel %vm614_vm1, %v1731_v33, %v611_v44  ;;  %v682_v44 = vld [vmem:[%s2050_s15 + $0x8] sm:$0xf] }
 0x173   : > { %v620_v52 = vsel %vm617_vm2, %v619_v45, %v615_v50 }
 0x174   : > { %v655_v54 = vmul.f32 %v652_v49, %v620_v52  ;;  %v685_v49 = vunpack.c.l.bf16 %v682_v44 }
 0x176   : > { %v656_v56 = vadd.f32 %v655_v54, %v570_v48 }
 0x178   : > { %1732 = vtanh.f32 %v656_v56 }
 0x17e   : > { %v1733_v63 = vpop.eup %1732 }
 0x17f   : > { %v659_v3 = vmul.f32 %v1733_v63, %v658_v62  ;;  %v783_v62 = vpop.permute.xlu1 %782 }
 0x180   : > { %vm784_vm3 = vcmp.eq.s32.totalorder %v783_v62, 1 }
 0x181   : > { %v661_v14 = vadd.f32 %v660_v2, %v659_v3 }
 0x183   : > { %v670_v13 = vsel %vm669_vm9, %v661_v14, %v1988_v12  ;;  %v672_v15 = vsel %vm669_vm9, %v661_v14, 0.0  ;;  %v1660_v12 = vld [vmem:[%s2050_s15] sm:$0xff]   ;;  %s1649_s15 = smul.u32 12, %s1923_s10 }
 0x184   : > { %671 = vst.msk [vmem:[#allocation2] sm:$0xff] %vm384_vm0, %v670_v13  ;;  %v1661_v19 = vunpack.c.l.bf16 %v1660_v12  ;;  %v1662_v20 = vunpack.c.h.bf16 %v1660_v12 }
 0x185   : > { %675 = vst.msk [vmem:[%s674_s14] sm:$0xff] %vm384_vm0, %v672_v15  ;;  %v1664_v15 = vld [vmem:[%s794_s26] sm:$0xff]   ;;  %s1619_s14 = sshll.u32 %s2082_s28, 3  ;;  %s2154_s16 = scalar_lea.vmem %s1965_s23, %s1649_s15 }
 0x186   : > { %s1134_s9 = scalar_lea.vmem %s1980_s29, %s1619_s14 }
 0x18b   : > { %v2035_v16 = vld [vmem:[#allocation2] sm:$0xff] }
 0x18c   : > { %v687_v17 = vpack.c.bf16 %v2035_v16, %v2035_v16 }
 0x18e   : > { %1593 = vmatmul.msk.bf16.vlgmr.msrb.gmra.mxu2 %vm384_vm0, %v687_v17  ;;  %1594 = vmatmul.msk.bf16.vlgmr.msrb.gmra.mxu3 %vm384_vm0, %v687_v17 }
 0x18f   : > { %1597 = vmatmul.msk.bf16.vlgmr.msra.gmra.mxu0 %vm384_vm0, %v687_v17  ;;  %993 = vmatpush.bf16.msrb.mxu2 %v1903_v7 }
 0x190   : > { %1042 = vmatpush.bf16.msrb.mxu3 %v1897_v4  ;;  %1055 = vmatpush.bf16.msra.mxu0 %v1899_v5 }
 0x193   : > { %994 = vmatpush.bf16.msrb.mxu2 %v1916_v10 }
 0x194   : > { %1043 = vmatpush.bf16.msrb.mxu3 %v1911_v8  ;;  %1056 = vmatpush.bf16.msra.mxu0 %v1913_v9 }
 0x20c   : > { %v766_v18 = vpop.f32.mrf.mxu0 }
 0x20d   : > { %v767_v48 = vadd.f32 %v1972_v38, %v766_v18 }
 0x211   : > { %v700_v21 = vpop.f32.mrf.mxu2  ;;  %v713_v22 = vpop.f32.mrf.mxu3 }
 0x212   : > { %v717_v23 = vadd.f32 %v1661_v19, %v700_v21  ;;  %v737_v24 = vadd.f32 %v1662_v20, %v713_v22  ;;  %v1666_v19 = vunpack.c.h.bf16 %v1664_v15 }
 0x214   : > { %v1595_v25 = vmul.f32 -1.442695, %v717_v23  ;;  %v1596_v26 = vmul.f32 -1.442695, %v737_v24  ;;  %v768_v27 = vpop.f32.mrf.mxu0 }
 0x216   : > { %1734 = vpow2.f32 %v1595_v25 }
 0x217   : > { %1736 = vpow2.f32 %v1596_v26 }
 0x219   : > { %v702_v28 = vpop.f32.mrf.mxu2  ;;  %v715_v29 = vpop.f32.mrf.mxu3 }
 0x21c   : > { %v1735_v30 = vpop.eup %1734 }
 0x21d   : > { %v1737_v31 = vpop.eup %1736  ;;  %v721_v32 = vadd.f32 1.0, %v1735_v30 }
 0x21e   : > { %v741_v33 = vadd.f32 1.0, %v1737_v31 }
 0x21f   : > { %1738 = vrcp.f32 %v721_v32  ;;  %v733_v40 = vand.u32 2147483648, %v721_v32  ;;  %v731_v43 = vand.u32 2147483647, %v721_v32  ;;  %vm727_vm11 = vweird.f32 %v721_v32 }
 0x220   : > { %1740 = vrcp.f32 %v741_v33  ;;  %v753_v54 = vand.u32 2147483648, %v741_v33  ;;  %vm747_vm15 = vweird.f32 %v741_v33  ;;  %v751_v55 = vand.u32 2147483647, %v741_v33 }
 0x221   : > { %v734_v47 = vor.u32 1.1754944e-38, %v733_v40  ;;  %vm732_vm13 = vcmp.eq.f32.partialorder %v731_v43, 8.507059e+37  ;;  %v1008_v40 = vstv %s2078_s27 }
 0x222   : > { %v754_v58 = vor.u32 1.1754944e-38, %v753_v54  ;;  %vm752_vm2 = vcmp.eq.f32.partialorder %v751_v55, 8.507059e+37  ;;  %vm1009_vm6 = vcmp.gt.s32.totalorder %v1881_v1, %v1008_v40 }
 0x225   : > { %v1739_v34 = vpop.eup %1738 }
 0x226   : > { %v1741_v35 = vpop.eup %1740  ;;  %v723_v36 = vmul.f32 %v1739_v34, %v721_v32  ;;  %vm728_vm10 = vweird.f32 %v1739_v34 }
 0x227   : > { %v743_v37 = vmul.f32 %v1741_v35, %v741_v33  ;;  %vm729_vm12 = vmor %vm727_vm11, %vm728_vm10  ;;  %vm748_vm14 = vweird.f32 %v1741_v35 }
 0x228   : > { %v724_v39 = vsub.f32 1.0, %v723_v36  ;;  %vm749_vm1 = vmor %vm747_vm15, %vm748_vm14 }
 0x229   : > { %v744_v41 = vsub.f32 1.0, %v743_v37 }
 0x22a   : > { %v725_v42 = vmul.f32 %v1739_v34, %v724_v39 }
 0x22b   : > { %v745_v45 = vmul.f32 %v1741_v35, %v744_v41 }
 0x22c   : > { %v726_v46 = vadd.f32 %v1739_v34, %v725_v42 }
 0x22d   : > { %v746_v52 = vadd.f32 %v1741_v35, %v745_v45  ;;  %v1010_v45 = vsel %vm1009_vm6, 1, %v1819_v0 }
 0x22e   : > { %v730_v50 = vsel %vm729_vm12, %v1739_v34, %v726_v46  ;;  %v1123_v46 = vstv %s2082_s28  ;;  %1012 = vperm.xlu2 %1712, %v1010_v45  }
 0x22f   : > { %v735_v51 = vsel %vm732_vm13, %v734_v47, %v730_v50  ;;  %v750_v57 = vsel %vm749_vm1, %v1741_v35, %v746_v52  ;;  %v797_v35 = vld [vmem:[%s794_s26 + $0x8] sm:$0xf]  ;;  %vm1124_vm10 = vcmp.gt.s32.totalorder %v1881_v1, %v1123_v46 }
 0x230   : > { %v770_v53 = vmul.f32 %v767_v48, %v735_v51  ;;  %v755_v59 = vsel %vm752_vm2, %v754_v58, %v750_v57  ;;  %v800_v43 = vunpack.c.l.bf16 %v797_v35  ;;  %v1125_v57 = vsel %vm1124_vm10, 1, %v1819_v0  ;;  %v912_v35 = vld [vmem:[%s2112_s22 + $0x8] sm:$0xf] }
 0x231   : > { %v773_v60 = vsub.f32 1.0, %v755_v59  ;;  %v775_v2 = vmul.f32 %v755_v59, %v2035_v16  ;;  %v915_v40 = vunpack.c.l.bf16 %v912_v35 }
 0x232   : > { %v771_v56 = vadd.f32 %v770_v53, %v685_v49 }
 0x234   : > { %1742 = vtanh.f32 %v771_v56 }
 0x236   : > { %1127 = vperm.xlu2 %1712, %v1125_v57  }
 0x23a   : > { %v1743_v61 = vpop.eup %1742 }
 0x23b   : > { %v774_v63 = vmul.f32 %v1743_v61, %v773_v60 }
 0x23d   : > { %v776_v3 = vadd.f32 %v775_v2, %v774_v63  ;;  %v898_v2 = vpop.permute.xlu1 %897 }
 0x23e   : > { %vm899_vm14 = vcmp.eq.s32.totalorder %v898_v2, 1 }
 0x23f   : > { %v785_v6 = vsel %vm784_vm3, %v776_v3, %v2035_v16  ;;  %v787_v11 = vsel %vm784_vm3, %v776_v3, 0.0  ;;  %v1665_v16 = vunpack.c.l.bf16 %v1664_v15 }
 0x240   : > { %786 = vst.msk [vmem:[#allocation2] sm:$0xff] %vm384_vm0, %v785_v6 }
 0x241   : > { %790 = vst.msk [vmem:[%s789_s17] sm:$0xff] %vm384_vm0, %v787_v11 }
 0x247   : > { %v2061_v14 = vld [vmem:[#allocation2] sm:$0xff] }
 0x248   : > { %v802_v13 = vpack.c.bf16 %v2061_v14, %v2061_v14 }
 0x24a   : > { %1600 = vmatmul.msk.bf16.vlgmr.msra.gmra.mxu1 %vm384_vm0, %v802_v13  ;;  %1601 = vmatmul.msk.bf16.vlgmr.msra.gmra.mxu2 %vm384_vm0, %v802_v13 }
 0x24b   : > { %1604 = vmatmul.msk.bf16.vlgmr.msra.gmra.mxu3 %vm384_vm0, %v802_v13  ;;  %1108 = vmatpush.bf16.msra.mxu1 %v1903_v7 }
 0x24c   : > { %1157 = vmatpush.bf16.msra.mxu2 %v1897_v4  ;;  %1170 = vmatpush.bf16.msra.mxu3 %v1899_v5 }
 0x24f   : > { %1109 = vmatpush.bf16.msra.mxu1 %v1916_v10 }
 0x250   : > { %1158 = vmatpush.bf16.msra.mxu2 %v1911_v8  ;;  %1171 = vmatpush.bf16.msra.mxu3 %v1913_v9 }
 0x2c7   : > { %v815_v17 = vpop.f32.mrf.mxu1 }
 0x2c8   : > { %v832_v12 = vadd.f32 %v1665_v16, %v815_v17 }
 0x2ca   : > { %v1602_v18 = vmul.f32 -1.442695, %v832_v12 }
 0x2cc   : > { %1744 = vpow2.f32 %v1602_v18 }
 0x2cd   : > { %v828_v20 = vpop.f32.mrf.mxu2 }
 0x2ce   : > { %v852_v21 = vadd.f32 %v1666_v19, %v828_v20  ;;  %v881_v22 = vpop.f32.mrf.mxu3 }
 0x2cf   : > { %v817_v23 = vpop.f32.mrf.mxu1  ;;  %v882_v49 = vadd.f32 %v1972_v38, %v881_v22 }
 0x2d0   : > { %v1603_v24 = vmul.f32 -1.442695, %v852_v21 }
 0x2d2   : > { %v1745_v25 = vpop.eup %1744  ;;  %1746 = vpow2.f32 %v1603_v24 }
 0x2d3   : > { %v836_v26 = vadd.f32 1.0, %v1745_v25 }
 0x2d5   : > { %1748 = vrcp.f32 %v836_v26  ;;  %v830_v27 = vpop.f32.mrf.mxu2  ;;  %v848_v34 = vand.u32 2147483648, %v836_v26  ;;  %v846_v37 = vand.u32 2147483647, %v836_v26  ;;  %vm842_vm5 = vweird.f32 %v836_v26 }
 0x2d6   : > { %v883_v28 = vpop.f32.mrf.mxu3 }
 0x2d7   : > { %v849_v44 = vor.u32 1.1754944e-38, %v848_v34  ;;  %vm847_vm8 = vcmp.eq.f32.partialorder %v846_v37, 8.507059e+37 }
 0x2d8   : > { %v1747_v29 = vpop.eup %1746 }
 0x2d9   : > { %v856_v30 = vadd.f32 1.0, %v1747_v29 }
 0x2db   : > { %v1749_v31 = vpop.eup %1748  ;;  %1750 = vrcp.f32 %v856_v30  ;;  %v868_v50 = vand.u32 2147483648, %v856_v30  ;;  %v866_v54 = vand.u32 2147483647, %v856_v30  ;;  %vm862_vm11 = vweird.f32 %v856_v30 }
 0x2dc   : > { %v838_v32 = vmul.f32 %v1749_v31, %v836_v26  ;;  %vm843_vm4 = vweird.f32 %v1749_v31 }
 0x2dd   : > { %vm844_vm7 = vmor %vm842_vm5, %vm843_vm4  ;;  %v869_v58 = vor.u32 1.1754944e-38, %v868_v50  ;;  %vm867_vm13 = vcmp.eq.f32.partialorder %v866_v54, 8.507059e+37  ;;  %v1013_v54 = vpop.permute.xlu2 %1012 }
 0x2de   : > { %v839_v33 = vsub.f32 1.0, %v838_v32 }
 0x2e0   : > { %v840_v36 = vmul.f32 %v1749_v31, %v839_v33 }
 0x2e1   : > { %v1751_v39 = vpop.eup %1750 }
 0x2e2   : > { %v858_v41 = vmul.f32 %v1751_v39, %v856_v30  ;;  %v841_v42 = vadd.f32 %v1749_v31, %v840_v36  ;;  %vm863_vm9 = vweird.f32 %v1751_v39 }
 0x2e3   : > { %vm864_vm12 = vmor %vm862_vm11, %vm863_vm9 }
 0x2e4   : > { %v859_v47 = vsub.f32 1.0, %v858_v41  ;;  %v845_v48 = vsel %vm844_vm7, %v1749_v31, %v841_v42 }
 0x2e5   : > { %v850_v51 = vsel %vm847_vm8, %v849_v44, %v845_v48  ;;  %vm1014_vm8 = vcmp.eq.s32.totalorder %v1013_v54, 1 }
 0x2e6   : > { %v860_v52 = vmul.f32 %v1751_v39, %v859_v47  ;;  %v885_v53 = vmul.f32 %v882_v49, %v850_v51 }
 0x2e8   : > { %v861_v55 = vadd.f32 %v1751_v39, %v860_v52  ;;  %v886_v56 = vadd.f32 %v885_v53, %v800_v43 }
 0x2ea   : > { %v865_v59 = vsel %vm864_vm12, %v1751_v39, %v861_v55  ;;  %1752 = vtanh.f32 %v886_v56 }
 0x2eb   : > { %v870_v60 = vsel %vm867_vm13, %v869_v58, %v865_v59 }
 0x2ec   : > { %v888_v61 = vsub.f32 1.0, %v870_v60  ;;  %v890_v1 = vmul.f32 %v870_v60, %v2061_v14 }
 0x2f0   : > { %v1753_v62 = vpop.eup %1752 }
 0x2f1   : > { %v889_v63 = vmul.f32 %v1753_v62, %v888_v61  ;;  %v1672_v62 = vld [vmem:[%s2134_s12] sm:$0xff]  }
 0x2f3   : > { %v891_v3 = vadd.f32 %v890_v1, %v889_v63  ;;  %v1674_v63 = vunpack.c.h.bf16 %v1672_v62 }
 0x2f5   : > { %v900_v6 = vsel %vm899_vm14, %v891_v3, %v2061_v14  ;;  %v902_v0 = vsel %vm899_vm14, %v891_v3, 0.0  ;;  %v1668_v14 = vld [vmem:[%s2112_s22] sm:$0xff]  }
 0x2f6   : > { %901 = vst.msk [vmem:[#allocation2] sm:$0xff] %vm384_vm0, %v900_v6  ;;  %v1669_v15 = vunpack.c.l.bf16 %v1668_v14  ;;  %v1670_v16 = vunpack.c.h.bf16 %v1668_v14 }
 0x2f7   : > { %905 = vst.msk [vmem:[%s904_s30] sm:$0xff] %vm384_vm0, %v902_v0  ;;  %v1673_v0 = vunpack.c.l.bf16 %v1672_v62 }
 0x2fd   : > { %v2097_v11 = vld [vmem:[#allocation2] sm:$0xff] }
 0x2fe   : > { %v917_v13 = vpack.c.bf16 %v2097_v11, %v2097_v11 }
 0x300   : > { %1607 = vmatmul.msk.bf16.vlgmr.msrb.gmra.mxu0 %vm384_vm0, %v917_v13  ;;  %1608 = vmatmul.msk.bf16.vlgmr.msrb.gmra.mxu1 %vm384_vm0, %v917_v13 }
 0x301   : > { %1611 = vmatmul.msk.bf16.vlgmr.msrb.gmra.mxu2 %vm384_vm0, %v917_v13  ;;  %1223 = vmatpush.bf16.msrb.mxu0 %v1903_v7 }
 0x302   : > { %1272 = vmatpush.bf16.msrb.mxu1 %v1897_v4  ;;  %1285 = vmatpush.bf16.msrb.mxu2 %v1899_v5 }
 0x305   : > { %1224 = vmatpush.bf16.msrb.mxu0 %v1916_v10 }
 0x306   : > { %1273 = vmatpush.bf16.msrb.mxu1 %v1911_v8  ;;  %1286 = vmatpush.bf16.msrb.mxu2 %v1913_v9 }
 0x37d   : > { %v930_v17 = vpop.f32.mrf.mxu0  ;;  %v943_v12 = vpop.f32.mrf.mxu1 }
 0x37e   : > { %v947_v18 = vadd.f32 %v1669_v15, %v930_v17  ;;  %v967_v19 = vadd.f32 %v1670_v16, %v943_v12 }
 0x380   : > { %v1609_v4 = vmul.f32 -1.442695, %v947_v18  ;;  %v1610_v20 = vmul.f32 -1.442695, %v967_v19 }
 0x382   : > { %1754 = vpow2.f32 %v1609_v4 }
 0x383   : > { %1756 = vpow2.f32 %v1610_v20 }
 0x384   : > { %v996_v5 = vpop.f32.mrf.mxu2 }
 0x385   : > { %v932_v21 = vpop.f32.mrf.mxu0  ;;  %v945_v8 = vpop.f32.mrf.mxu1  ;;  %v997_v42 = vadd.f32 %v1972_v38, %v996_v5 }
 0x388   : > { %v1755_v22 = vpop.eup %1754 }
 0x389   : > { %v1757_v9 = vpop.eup %1756  ;;  %v951_v23 = vadd.f32 1.0, %v1755_v22 }
 0x38a   : > { %v971_v24 = vadd.f32 1.0, %v1757_v9 }
 0x38b   : > { %1758 = vrcp.f32 %v951_v23  ;;  %v963_v32 = vand.u32 2147483648, %v951_v23  ;;  %v961_v34 = vand.u32 2147483647, %v951_v23  ;;  %vm957_vm1 = vweird.f32 %v951_v23 }
 0x38c   : > { %1760 = vrcp.f32 %v971_v24  ;;  %v998_v25 = vpop.f32.mrf.mxu2  ;;  %v983_v46 = vand.u32 2147483648, %v971_v24  ;;  %vm977_vm5 = vweird.f32 %v971_v24  ;;  %v981_v47 = vand.u32 2147483647, %v971_v24 }
 0x38d   : > { %v964_v39 = vor.u32 1.1754944e-38, %v963_v32  ;;  %vm962_vm3 = vcmp.eq.f32.partialorder %v961_v34, 8.507059e+37 }
 0x38e   : > { %v984_v50 = vor.u32 1.1754944e-38, %v983_v46  ;;  %vm982_vm7 = vcmp.eq.f32.partialorder %v981_v47, 8.507059e+37 }
 0x391   : > { %v1759_v26 = vpop.eup %1758 }
 0x392   : > { %v1761_v27 = vpop.eup %1760  ;;  %v953_v28 = vmul.f32 %v1759_v26, %v951_v23  ;;  %vm958_vm15 = vweird.f32 %v1759_v26 }
 0x393   : > { %v973_v29 = vmul.f32 %v1761_v27, %v971_v24  ;;  %vm959_vm2 = vmor %vm957_vm1, %vm958_vm15  ;;  %vm978_vm4 = vweird.f32 %v1761_v27  ;;  %v1027_v24 = vld [vmem:[%s2134_s12 + $0x8] sm:$0xf] }
 0x394   : > { %v954_v30 = vsub.f32 1.0, %v953_v28  ;;  %vm979_vm6 = vmor %vm977_vm5, %vm978_vm4  ;;  %v1030_v28 = vunpack.c.l.bf16 %v1027_v24 }
 0x395   : > { %v974_v31 = vsub.f32 1.0, %v973_v29 }
 0x396   : > { %v955_v33 = vmul.f32 %v1759_v26, %v954_v30 }
 0x397   : > { %v975_v36 = vmul.f32 %v1761_v27, %v974_v31 }
 0x398   : > { %v956_v37 = vadd.f32 %v1759_v26, %v955_v33 }
 0x399   : > { %v976_v44 = vadd.f32 %v1761_v27, %v975_v36 }
 0x39a   : > { %v960_v41 = vsel %vm959_vm2, %v1759_v26, %v956_v37 }
 0x39b   : > { %v965_v43 = vsel %vm962_vm3, %v964_v39, %v960_v41  ;;  %v980_v49 = vsel %vm979_vm6, %v1761_v27, %v976_v44 }
 0x39c   : > { %v1000_v45 = vmul.f32 %v997_v42, %v965_v43  ;;  %v985_v51 = vsel %vm982_vm7, %v984_v50, %v980_v49  ;;  %v1128_v42 = vpop.permute.xlu2 %1127  ;;  %v1676_v50 = vld [vmem:[%s2154_s16] sm:$0xff]  }
 0x39d   : > { %v1003_v52 = vsub.f32 1.0, %v985_v51  ;;  %v1005_v56 = vmul.f32 %v985_v51, %v2097_v11  ;;  %vm1129_vm2 = vcmp.eq.s32.totalorder %v1128_v42, 1 }
 0x39e   : > { %v1001_v48 = vadd.f32 %v1000_v45, %v915_v40 }
 0x3a0   : > { %1762 = vtanh.f32 %v1001_v48 }
 0x3a6   : > { %v1763_v53 = vpop.eup %1762 }
 0x3a7   : > { %v1004_v55 = vmul.f32 %v1763_v53, %v1003_v52  ;;  %v1677_v52 = vunpack.c.l.bf16 %v1676_v50  ;;  %v1678_v53 = vunpack.c.h.bf16 %v1676_v50 }
 0x3a9   : > { %v1006_v57 = vadd.f32 %v1005_v56, %v1004_v55 }
 0x3ab   : > { %v1015_v58 = vsel %vm1014_vm8, %v1006_v57, %v2097_v11  ;;  %v1017_v59 = vsel %vm1014_vm8, %v1006_v57, 0.0 }
 0x3ac   : > { %1016 = vst.msk [vmem:[#allocation2] sm:$0xff] %vm384_vm0, %v1015_v58 }
 0x3ad   : > { %1020 = vst.msk [vmem:[%s1019_s7] sm:$0xff] %vm384_vm0, %v1017_v59 }
 0x3b3   : > { %v2123_v60 = vld [vmem:[#allocation2] sm:$0xff] }
 0x3b4   : > { %v1032_v61 = vpack.c.bf16 %v2123_v60, %v2123_v60 }
 0x3b6   : > { %1614 = vmatmul.msk.bf16.vlgmr.msrb.gmra.mxu3 %vm384_vm0, %v1032_v61  ;;  %1615 = vmatmul.msk.bf16.vlgmr.msra.gmra.mxu0 %vm384_vm0, %v1032_v61 }
 0x3b7   : > { %1618 = vmatmul.msk.bf16.vlgmr.msra.gmra.mxu1 %vm384_vm0, %v1032_v61  ;;  %1338 = vmatpush.bf16.msrb.mxu3 %v1903_v7 }
 0x3bb   : > { %1339 = vmatpush.bf16.msrb.mxu3 %v1916_v10 }
 0x433   : > { %v1058_v1 = vpop.f32.mrf.mxu0 }
 0x434   : > { %v1082_v2 = vadd.f32 %v1674_v63, %v1058_v1  ;;  %v1111_v3 = vpop.f32.mrf.mxu1 }
 0x435   : > { %v1112_v29 = vadd.f32 %v1972_v38, %v1111_v3 }
 0x436   : > { %v1617_v6 = vmul.f32 -1.442695, %v1082_v2 }
 0x438   : > { %1764 = vpow2.f32 %v1617_v6 }
 0x439   : > { %v1045_v11 = vpop.f32.mrf.mxu3 }
 0x43a   : > { %v1062_v13 = vadd.f32 %v1673_v0, %v1045_v11 }
 0x43b   : > { %v1060_v14 = vpop.f32.mrf.mxu0 }
 0x43c   : > { %v1616_v15 = vmul.f32 -1.442695, %v1062_v13  ;;  %v1113_v16 = vpop.f32.mrf.mxu1 }
 0x43e   : > { %v1765_v7 = vpop.eup %1764  ;;  %1766 = vpow2.f32 %v1616_v15 }
 0x43f   : > { %v1086_v10 = vadd.f32 1.0, %v1765_v7 }
 0x441   : > { %v1047_v17 = vpop.f32.mrf.mxu3  ;;  %1768 = vrcp.f32 %v1086_v10  ;;  %v1098_v33 = vand.u32 2147483648, %v1086_v10  ;;  %vm1092_vm14 = vweird.f32 %v1086_v10  ;;  %v1096_v35 = vand.u32 2147483647, %v1086_v10 }
 0x442   : > { %v1142_v17 = vld [vmem:[%s2154_s16 + $0x8] sm:$0xf] }
 0x443   : > { %v1099_v39 = vor.u32 1.1754944e-38, %v1098_v33  ;;  %vm1097_vm1 = vcmp.eq.f32.partialorder %v1096_v35, 8.507059e+37 }
 0x444   : > { %v1767_v12 = vpop.eup %1766 }
 0x445   : > { %v1066_v18 = vadd.f32 1.0, %v1767_v12 }
 0x447   : > { %1770 = vrcp.f32 %v1066_v18  ;;  %v1769_v19 = vpop.eup %1768  ;;  %v1078_v22 = vand.u32 2147483648, %v1066_v18  ;;  %v1076_v23 = vand.u32 2147483647, %v1066_v18  ;;  %vm1072_vm10 = vweird.f32 %v1066_v18 }
 0x448   : > { %v1088_v4 = vmul.f32 %v1769_v19, %v1086_v10  ;;  %vm1093_vm13 = vweird.f32 %v1769_v19 }
 0x449   : > { %v1079_v27 = vor.u32 1.1754944e-38, %v1078_v22  ;;  %vm1077_vm12 = vcmp.eq.f32.partialorder %v1076_v23, 8.507059e+37  ;;  %vm1094_vm15 = vmor %vm1092_vm14, %vm1093_vm13 }
 0x44a   : > { %v1089_v21 = vsub.f32 1.0, %v1088_v4  ;;  %v2159_v4 = vld [vmem:[%s1958_s13] ss:$0 sm:$0xff]  ;;  %s1626_s13 = sshll.u32 %s1923_s10, 3  ;;  %s1650_s10 = smul.u32 12, %s2023_s11 }
 0x44b   : > { %s1249_s17 = scalar_lea.vmem %s1980_s29, %s1626_s13 }
 0x44c   : > { %v1090_v25 = vmul.f32 %v1769_v19, %v1089_v21  ;;  %s1254_s24 = scalar_lea.vmem %s1965_s23, %s1650_s10  ;;  %s1633_s23 = sshll.u32 %s2023_s11, 3 }
 0x44d   : > { %v1771_v20 = vpop.eup %1770  ;;  %s1364_s26 = scalar_lea.vmem %s1980_s29, %s1633_s23 }
 0x44e   : > { %v1068_v5 = vmul.f32 %v1771_v20, %v1066_v18  ;;  %vm1073_vm9 = vweird.f32 %v1771_v20  ;;  %v1091_v31 = vadd.f32 %v1769_v19, %v1090_v25 }
 0x44f   : > { %vm1074_vm11 = vmor %vm1072_vm10, %vm1073_vm9 }
 0x450   : > { %v1069_v8 = vsub.f32 1.0, %v1068_v5  ;;  %v1095_v37 = vsel %vm1094_vm15, %v1769_v19, %v1091_v31  ;;  %v1145_v5 = vunpack.c.l.bf16 %v1142_v17  ;;  %v1243_v31 = vpop.permute.xlu0 %1242 }
 0x451   : > { %v1100_v40 = vsel %vm1097_vm1, %v1099_v39, %v1095_v37 }
 0x452   : > { %v1070_v9 = vmul.f32 %v1771_v20, %v1069_v8  ;;  %v1118_v41 = vsub.f32 1.0, %v1100_v40  ;;  %v1120_v43 = vmul.f32 %v1100_v40, %v2123_v60  ;;  %v1680_v40 = vld [vmem:[%s1254_s24] sm:$0xff]  }
 0x454   : > { %v1071_v26 = vadd.f32 %v1771_v20, %v1070_v9 }
 0x456   : > { %v1075_v30 = vsel %vm1074_vm11, %v1771_v20, %v1071_v26  ;;  %vm1244_vm11 = vcmp.eq.s32.totalorder %v1243_v31, 1 }
 0x457   : > { %v1080_v32 = vsel %vm1077_vm12, %v1079_v27, %v1075_v30 }
 0x458   : > { %v1115_v34 = vmul.f32 %v1112_v29, %v1080_v32 }
 0x45a   : > { %v1116_v36 = vadd.f32 %v1115_v34, %v1030_v28 }
 0x45c   : > { %1772 = vtanh.f32 %v1116_v36 }
 0x462   : > { %v1773_v38 = vpop.eup %1772 }
 0x463   : > { %v1119_v44 = vmul.f32 %v1773_v38, %v1118_v41  ;;  %v1681_v41 = vunpack.c.l.bf16 %v1680_v40 }
 0x465   : > { %v1121_v45 = vadd.f32 %v1120_v43, %v1119_v44  ;;  %v1682_v44 = vunpack.c.h.bf16 %v1680_v40 }
 0x467   : > { %v1130_v46 = vsel %vm1129_vm2, %v1121_v45, %v2123_v60  ;;  %v1132_v47 = vsel %vm1129_vm2, %v1121_v45, 0.0 }
 0x468   : > { %1131 = vst.msk [vmem:[#allocation2] sm:$0xff] %vm384_vm0, %v1130_v46 }
 0x469   : > { %1135 = vst.msk [vmem:[%s1134_s9] sm:$0xff] %vm384_vm0, %v1132_v47 }
 0x46f   : > { %v2145_v48 = vld [vmem:[#allocation2] sm:$0xff] }
 0x470   : > { %v1147_v49 = vpack.c.bf16 %v2145_v48, %v2145_v48 }
 0x472   : > { %1621 = vmatmul.msk.bf16.vlgmr.msra.gmra.mxu2 %vm384_vm0, %v1147_v49  ;;  %1622 = vmatmul.msk.bf16.vlgmr.msra.gmra.mxu3 %vm384_vm0, %v1147_v49 }
 0x473   : > { %1625 = vmatmul.msk.bf16.vlgmr.msrb.gmra.mxu0 %vm384_vm0, %v1147_v49 }
 0x4f0   : > { %v1226_v51 = vpop.f32.mrf.mxu0 }
 0x4f1   : > { %v1227_v20 = vadd.f32 %v2159_v4, %v1226_v51 }
 0x4f5   : > { %v1160_v54 = vpop.f32.mrf.mxu2  ;;  %v1173_v55 = vpop.f32.mrf.mxu3 }
 0x4f6   : > { %v1177_v56 = vadd.f32 %v1677_v52, %v1160_v54  ;;  %v1197_v57 = vadd.f32 %v1678_v53, %v1173_v55 }
 0x4f8   : > { %v1623_v58 = vmul.f32 -1.442695, %v1177_v56  ;;  %v1624_v59 = vmul.f32 -1.442695, %v1197_v57  ;;  %v1228_v60 = vpop.f32.mrf.mxu0 }
 0x4f9   : > { %v1257_v60 = vld [vmem:[%s1254_s24 + $0x8] sm:$0xf] }
 0x4fa   : > { %1774 = vpow2.f32 %v1623_v58 }
 0x4fb   : > { %1776 = vpow2.f32 %v1624_v59 }
 0x4fd   : > { %v1162_v61 = vpop.f32.mrf.mxu2  ;;  %v1175_v62 = vpop.f32.mrf.mxu3 }
 0x500   : > { %v1775_v63 = vpop.eup %1774 }
 0x501   : > { %v1777_v1 = vpop.eup %1776  ;;  %v1181_v2 = vadd.f32 1.0, %v1775_v63 }
 0x502   : > { %v1201_v3 = vadd.f32 1.0, %v1777_v1 }
 0x503   : > { %1778 = vrcp.f32 %v1181_v2  ;;  %v1193_v15 = vand.u32 2147483648, %v1181_v2  ;;  %v1191_v10 = vand.u32 2147483647, %v1181_v2  ;;  %vm1187_vm4 = vweird.f32 %v1181_v2 }
 0x504   : > { %1780 = vrcp.f32 %v1201_v3  ;;  %v1213_v23 = vand.u32 2147483648, %v1201_v3  ;;  %vm1207_vm8 = vweird.f32 %v1201_v3  ;;  %v1211_v24 = vand.u32 2147483647, %v1201_v3 }
 0x505   : > { %v1194_v19 = vor.u32 1.1754944e-38, %v1193_v15  ;;  %vm1192_vm6 = vcmp.eq.f32.partialorder %v1191_v10, 8.507059e+37 }
 0x506   : > { %v1214_v27 = vor.u32 1.1754944e-38, %v1213_v23  ;;  %vm1212_vm10 = vcmp.eq.f32.partialorder %v1211_v24, 8.507059e+37 }
 0x509   : > { %v1779_v6 = vpop.eup %1778 }
 0x50a   : > { %v1781_v0 = vpop.eup %1780  ;;  %v1183_v11 = vmul.f32 %v1779_v6, %v1181_v2  ;;  %vm1188_vm3 = vweird.f32 %v1779_v6 }
 0x50b   : > { %v1203_v13 = vmul.f32 %v1781_v0, %v1201_v3  ;;  %vm1189_vm5 = vmor %vm1187_vm4, %vm1188_vm3  ;;  %vm1208_vm7 = vweird.f32 %v1781_v0  ;;  %v1260_v3 = vunpack.c.l.bf16 %v1257_v60 }
 0x50c   : > { %v1184_v14 = vsub.f32 1.0, %v1183_v11  ;;  %vm1209_vm9 = vmor %vm1207_vm8, %vm1208_vm7 }
 0x50d   : > { %v1204_v16 = vsub.f32 1.0, %v1203_v13 }
 0x50e   : > { %v1185_v7 = vmul.f32 %v1779_v6, %v1184_v14 }
 0x50f   : > { %v1205_v12 = vmul.f32 %v1781_v0, %v1204_v16 }
 0x510   : > { %v1186_v18 = vadd.f32 %v1779_v6, %v1185_v7 }
 0x511   : > { %v1206_v22 = vadd.f32 %v1781_v0, %v1205_v12 }
 0x512   : > { %v1190_v21 = vsel %vm1189_vm5, %v1779_v6, %v1186_v18 }
 0x513   : > { %v1195_v8 = vsel %vm1192_vm6, %v1194_v19, %v1190_v21  ;;  %v1210_v26 = vsel %vm1209_vm9, %v1781_v0, %v1206_v22 }
 0x514   : > { %v1230_v9 = vmul.f32 %v1227_v20, %v1195_v8  ;;  %v1215_v28 = vsel %vm1212_vm10, %v1214_v27, %v1210_v26 }
 0x515   : > { %v1233_v29 = vsub.f32 1.0, %v1215_v28  ;;  %v1235_v33 = vmul.f32 %v1215_v28, %v2145_v48 }
 0x516   : > { %v1231_v25 = vadd.f32 %v1230_v9, %v1145_v5 }
 0x518   : > { %1782 = vtanh.f32 %v1231_v25 }
 0x51e   : > { %v1783_v30 = vpop.eup %1782 }
 0x51f   : > { %v1234_v32 = vmul.f32 %v1783_v30, %v1233_v29 }
 0x521   : > { %v1236_v34 = vadd.f32 %v1235_v33, %v1234_v32 }
 0x523   : > { %v1245_v35 = vsel %vm1244_vm11, %v1236_v34, %v2145_v48  ;;  %v1247_v36 = vsel %vm1244_vm11, %v1236_v34, 0.0 }
 0x524   : > { %1246 = vst.msk [vmem:[#allocation2] sm:$0xff] %vm384_vm0, %v1245_v35 }
 0x525   : > { %1250 = vst.msk [vmem:[%s1249_s17] sm:$0xff] %vm384_vm0, %v1247_v36 }
 0x52b   : > { %v2168_v37 = vld [vmem:[#allocation2] sm:$0xff] }
 0x52c   : > { %v1262_v39 = vpack.c.bf16 %v2168_v37, %v2168_v37 }
 0x52e   : > { %1628 = vmatmul.msk.bf16.vlgmr.msrb.gmra.mxu1 %vm384_vm0, %v1262_v39  ;;  %1629 = vmatmul.msk.bf16.vlgmr.msrb.gmra.mxu2 %vm384_vm0, %v1262_v39 }
 0x52f   : > { %1632 = vmatmul.msk.bf16.vlgmr.msrb.gmra.mxu3 %vm384_vm0, %v1262_v39 }
 0x5ab   : > { %v1275_v38 = vpop.f32.mrf.mxu1 }
 0x5ac   : > { %v1292_v42 = vadd.f32 %v1681_v41, %v1275_v38 }
 0x5ae   : > { %v1630_v43 = vmul.f32 -1.442695, %v1292_v42 }
 0x5b0   : > { %1784 = vpow2.f32 %v1630_v43 }
 0x5b1   : > { %v1288_v45 = vpop.f32.mrf.mxu2 }
 0x5b2   : > { %v1312_v46 = vadd.f32 %v1682_v44, %v1288_v45  ;;  %v1341_v47 = vpop.f32.mrf.mxu3 }
 0x5b3   : > { %v1277_v48 = vpop.f32.mrf.mxu1  ;;  %v1342_v13 = vadd.f32 %v2159_v4, %v1341_v47  ;;  %v1358_v4 = vpop.permute.xlu1 %1357 }
 0x5b4   : > { %v1631_v49 = vmul.f32 -1.442695, %v1312_v46  ;;  %vm1359_vm5 = vcmp.eq.s32.totalorder %v1358_v4, 1 }
 0x5b6   : > { %v1785_v50 = vpop.eup %1784  ;;  %1786 = vpow2.f32 %v1631_v49 }
 0x5b7   : > { %v1296_v51 = vadd.f32 1.0, %v1785_v50 }
 0x5b9   : > { %1788 = vrcp.f32 %v1296_v51  ;;  %v1290_v52 = vpop.f32.mrf.mxu2  ;;  %v1308_v59 = vand.u32 2147483648, %v1296_v51  ;;  %v1306_v62 = vand.u32 2147483647, %v1296_v51  ;;  %vm1302_vm13 = vweird.f32 %v1296_v51 }
 0x5ba   : > { %v1343_v53 = vpop.f32.mrf.mxu3 }
 0x5bb   : > { %v1309_v6 = vor.u32 1.1754944e-38, %v1308_v59  ;;  %vm1307_vm15 = vcmp.eq.f32.partialorder %v1306_v62, 8.507059e+37 }
 0x5bc   : > { %v1787_v54 = vpop.eup %1786 }
 0x5bd   : > { %v1316_v55 = vadd.f32 1.0, %v1787_v54 }
 0x5bf   : > { %v1789_v56 = vpop.eup %1788  ;;  %1790 = vrcp.f32 %v1316_v55  ;;  %v1328_v16 = vand.u32 2147483648, %v1316_v55  ;;  %v1326_v10 = vand.u32 2147483647, %v1316_v55  ;;  %vm1322_vm2 = vweird.f32 %v1316_v55 }
 0x5c0   : > { %v1298_v57 = vmul.f32 %v1789_v56, %v1296_v51  ;;  %vm1303_vm12 = vweird.f32 %v1789_v56 }
 0x5c1   : > { %vm1304_vm14 = vmor %vm1302_vm13, %vm1303_vm12  ;;  %v1329_v18 = vor.u32 1.1754944e-38, %v1328_v16  ;;  %vm1327_vm4 = vcmp.eq.f32.partialorder %v1326_v10, 8.507059e+37 }
 0x5c2   : > { %v1299_v58 = vsub.f32 1.0, %v1298_v57 }
 0x5c4   : > { %v1300_v61 = vmul.f32 %v1789_v56, %v1299_v58 }
 0x5c5   : > { %v1791_v63 = vpop.eup %1790 }
 0x5c6   : > { %v1318_v1 = vmul.f32 %v1791_v63, %v1316_v55  ;;  %v1301_v2 = vadd.f32 %v1789_v56, %v1300_v61  ;;  %vm1323_vm1 = vweird.f32 %v1791_v63 }
 0x5c7   : > { %vm1324_vm3 = vmor %vm1322_vm2, %vm1323_vm1 }
 0x5c8   : > { %v1319_v0 = vsub.f32 1.0, %v1318_v1  ;;  %v1305_v11 = vsel %vm1304_vm14, %v1789_v56, %v1301_v2 }
 0x5c9   : > { %v1310_v14 = vsel %vm1307_vm15, %v1309_v6, %v1305_v11 }
 0x5ca   : > { %v1320_v15 = vmul.f32 %v1791_v63, %v1319_v0  ;;  %v1345_v7 = vmul.f32 %v1342_v13, %v1310_v14 }
 0x5cc   : > { %v1321_v17 = vadd.f32 %v1791_v63, %v1320_v15  ;;  %v1346_v12 = vadd.f32 %v1345_v7, %v1260_v3 }
 0x5ce   : > { %v1325_v19 = vsel %vm1324_vm3, %v1791_v63, %v1321_v17  ;;  %1792 = vtanh.f32 %v1346_v12 }
 0x5cf   : > { %v1330_v20 = vsel %vm1327_vm4, %v1329_v18, %v1325_v19 }
 0x5d0   : > { %v1348_v5 = vsub.f32 1.0, %v1330_v20  ;;  %v1350_v22 = vmul.f32 %v1330_v20, %v2168_v37 }
 0x5d4   : > { %v1793_v21 = vpop.eup %1792 }
 0x5d5   : > { %v1349_v8 = vmul.f32 %v1793_v21, %v1348_v5 }
 0x5d7   : > { %v1351_v9 = vadd.f32 %v1350_v22, %v1349_v8 }
 0x5d9   : > { %v1360_v23 = vsel %vm1359_vm5, %v1351_v9, %v2168_v37  ;;  %v1362_v24 = vsel %vm1359_vm5, %v1351_v9, 0.0 }
 0x5da   : > { %1361 = vst.msk [vmem:[#allocation2] sm:$0xff] %vm384_vm0, %v1360_v23 }
 0x5db   : > { %1365 = vst.msk [vmem:[%s1364_s26] sm:$0xff] %vm384_vm0, %v1362_v24 }
 0x5dc PF: > { %s15_s20 = sadd.s32 1, %s1817_s20   ;;  %s2199_s18 = smov %s1813_s19 }
 0x5dd   : > { %p12_p6 = scmp.ge.s32.totalorder %s15_s20, 4   ;;  %s2200_s19 = smov %s2202_s21 }
 0x5df   :  { %14 = sbr.rel (!%p12_p6) target bundleno = 2 (0x2), region = 101 }

</bundles_post_ra>
